<compile_context>
chip_gen: v6e
topology: v6e:2x2x1
jax: 0.10.0
libtpu: 0.0.40
codegen_flags: <defaults>
</compile_context>

<pallas_src>
import numpy as np

import jax
import jax.numpy as jnp
from jax.experimental import pallas as pl
from jax.experimental.pallas import tpu as pltpu


# ------------------------------ fused kernel ------------------------------- #

def fused_net_kernel(x_ref, m1_ref, b1_ref, s1_ref, m2_ref, b2_ref, s2_ref,
                     wf1_ref, bf1_ref, wf2_ref, bf2_ref, o_ref):
    f32 = jnp.float32
    x = x_ref[0].astype(f32)                                     # (28, 28)

    # ---- conv1 + 2x2 max-pool (banded matmuls, cols = c1*12 + pw) ----
    def conv1_cols(dw):
        acc = jnp.zeros((24, 240), f32)
        for kh in range(5):
            w = m1_ref[kh, dw].astype(f32)                       # (28, 240)
            acc = acc + jnp.dot(x[kh:kh + 24, :], w,
                                preferred_element_type=f32)
        return acc

    wmax1 = jnp.maximum(conv1_cols(0), conv1_cols(1))            # (24, 240)
    # h-pool: exact 0/1 row-selection matmuls (rows 2i and 2i+1)
    p1 = jnp.maximum(
        jnp.dot(s1_ref[0], wmax1, preferred_element_type=f32),
        jnp.dot(s1_ref[1], wmax1, preferred_element_type=f32))   # (12, 240)
    # pool commutes with per-channel bias + monotone ReLU
    p1 = jnp.maximum(p1 + b1_ref[...], 0.0)

    # ---- conv2 + 2x2 max-pool (cols = c2*4 + pw) ----
    def conv2_cols(dw):
        acc = jnp.zeros((8, 200), f32)
        for kh in range(5):
            w = m2_ref[kh, dw].astype(f32)                       # (240, 200)
            acc = acc + jnp.dot(p1[kh:kh + 8, :], w,
                                preferred_element_type=f32)
        return acc

    wmax2 = jnp.maximum(conv2_cols(0), conv2_cols(1))            # (8, 200)
    p2 = jnp.maximum(
        jnp.dot(s2_ref[0], wmax2, preferred_element_type=f32),
        jnp.dot(s2_ref[1], wmax2, preferred_element_type=f32))   # (4, 200)
    p2 = jnp.maximum(p2 + b2_ref[...], 0.0)

    # ---- fc1 + relu + fc2 + log_softmax (no flatten: 4 per-row matmuls) ----
    h = bf1_ref[...]                                             # (1, 512)
    for r in range(4):
        h = h + jnp.dot(p2[r:r + 1, :], wf1_ref[r].astype(f32),
                        preferred_element_type=f32)
    h = jnp.maximum(h, 0.0)

    logits = jnp.dot(h, wf2_ref[...].astype(f32),
                     preferred_element_type=f32) + bf2_ref[...]  # (1, 128)
    lane = jax.lax.broadcasted_iota(jnp.int32, logits.shape, 1)
    logits = jnp.where(lane < 10, logits, -1e30)                 # mask pad lanes
    m = jnp.max(logits, axis=-1, keepdims=True)
    s = logits - m
    lse = jnp.log(jnp.sum(jnp.exp(s), axis=-1, keepdims=True))
    o_ref[0] = (s - lse).astype(o_ref.dtype)                     # (1, 128)


# --------------------- one-time parameter preprocessing --------------------- #

def prepare_params(params):
    """Build banded conv matrices, pool-selection matrices and fc blocks.

    All layout transforms / padding happen once here; the kernel only does
    matmuls, maxes and elementwise math.
    """
    f32 = jnp.float32
    bf16 = jnp.bfloat16

    # conv1: M1[kh, dw][win, c*12 + pw] = W1[c, 0, kh, win - (2*pw + dw)], banded
    ind1 = np.zeros((2, 28, 12, 5), np.float32)
    for d in range(2):
        for p in range(12):
            for k in range(5):
                ind1[d, 2 * p + d + k, p, k] = 1.0
    w1v = params["conv1_w"][:, 0]                                # (20, 5, 5)
    m1 = jnp.einsum("dipk,chk->hdicp", jnp.asarray(ind1), w1v)   # (5,2,28,20,12)
    m1 = m1.reshape(5, 2, 28, 240).astype(bf16)
    b1 = jnp.repeat(params["conv1_b"], 12).reshape(1, 240).astype(f32)

    # conv2: M2[kh, dw][c1*12 + win, c2*4 + pw] = W2[c2, c1, kh, win-(2pw+dw)]
    ind2 = np.zeros((2, 12, 4, 5), np.float32)
    for d in range(2):
        for p in range(4):
            for k in range(5):
                ind2[d, 2 * p + d + k, p, k] = 1.0
    w2v = params["conv2_w"]                                      # (50, 20, 5, 5)
    m2 = jnp.einsum("dipk,bchk->hdcibp", jnp.asarray(ind2), w2v)  # (5,2,20,12,50,4)
    m2 = m2.reshape(5, 2, 240, 200).astype(bf16)
    b2 = jnp.repeat(params["conv2_b"], 4).reshape(1, 200).astype(f32)

    # 0/1 row-selection matrices for the h-direction max-pool
    s1 = np.zeros((2, 12, 24), np.float32)
    for d in range(2):
        for i in range(12):
            s1[d, i, 2 * i + d] = 1.0
    s2 = np.zeros((2, 4, 8), np.float32)
    for d in range(2):
        for i in range(4):
            s2[d, i, 2 * i + d] = 1.0

    # fc1: PyTorch flattens NCHW (c2*16 + h2*4 + w2); our pooled2 layout is
    # rows = h2, cols = c2*4 + w2, so split the weight into 4 per-row blocks.
    wf1 = params["fc1_w"].reshape(500, 50, 4, 4)                 # (n, c2, h2, w2)
    wf1 = jnp.transpose(wf1, (2, 1, 3, 0))                       # (h2, c2, w2, n)
    wf1 = wf1.reshape(4, 200, 500)
    wf1 = jnp.pad(wf1, ((0, 0), (0, 0), (0, 12))).astype(bf16)   # N 500 -> 512
    bf1 = jnp.pad(params["fc1_b"], (0, 12)).reshape(1, 512).astype(f32)

    # fc2: (10, 500) -> (500, 10) -> zero-pad to (512, 128)
    wf2 = jnp.pad(params["fc2_w"].T, ((0, 12), (0, 118))).astype(bf16)
    bf2 = jnp.pad(params["fc2_b"], (0, 118)).reshape(1, 128).astype(f32)

    return {"m1": m1, "b1": b1, "s1": jnp.asarray(s1),
            "m2": m2, "b2": b2, "s2": jnp.asarray(s2),
            "wf1": wf1, "bf1": bf1, "wf2": wf2, "bf2": bf2}


# -------------------------------- forward pass ------------------------------- #

def net_forward(prep, x_nchw):
    B = x_nchw.shape[0]
    x = x_nchw.astype(jnp.float32).reshape(B, 28, 28)            # cin == 1

    out = pl.pallas_call(
        fused_net_kernel,
        out_shape=jax.ShapeDtypeStruct((B, 1, 128), jnp.float32),
        grid=(B,),
        in_specs=[
            pl.BlockSpec((1, 28, 28), lambda b: (b, 0, 0)),          # x (per image)
            pl.BlockSpec((5, 2, 28, 240), lambda b: (0, 0, 0, 0)),   # conv1 banded W
            pl.BlockSpec((1, 240), lambda b: (0, 0)),                # conv1 bias
            pl.BlockSpec((2, 12, 24), lambda b: (0, 0, 0)),          # pool1 select
            pl.BlockSpec((5, 2, 240, 200), lambda b: (0, 0, 0, 0)),  # conv2 banded W
            pl.BlockSpec((1, 200), lambda b: (0, 0)),                # conv2 bias
            pl.BlockSpec((2, 4, 8), lambda b: (0, 0, 0)),            # pool2 select
            pl.BlockSpec((4, 200, 512), lambda b: (0, 0, 0)),        # fc1 blocks
            pl.BlockSpec((1, 512), lambda b: (0, 0)),                # fc1 bias
            pl.BlockSpec((512, 128), lambda b: (0, 0)),              # fc2 weight
            pl.BlockSpec((1, 128), lambda b: (0, 0)),                # fc2 bias
        ],
        out_specs=pl.BlockSpec((1, 1, 128), lambda b: (b, 0, 0)),
        compiler_params=pltpu.CompilerParams(
            dimension_semantics=("parallel",)),
    )(x, prep["m1"], prep["b1"], prep["s1"], prep["m2"], prep["b2"],
      prep["s2"], prep["wf1"], prep["bf1"], prep["wf2"], prep["bf2"])

    return out.reshape(B, 128)[:, :10]


# ------------------------------ reference check ------------------------------ #

def net_reference(params, x_nchw):
    hi = jax.lax.Precision.HIGHEST
    y = jax.lax.conv_general_dilated(
        x_nchw, params["conv1_w"], (1, 1), "VALID",
        dimension_numbers=("NCHW", "OIHW", "NCHW"), precision=hi)
    y = jnp.maximum(y + params["conv1_b"][None, :, None, None], 0.0)
    y = jax.lax.reduce_window(y, -jnp.inf, jax.lax.max,
                              (1, 1, 2, 2), (1, 1, 2, 2), "VALID")
    y = jax.lax.conv_general_dilated(
        y, params["conv2_w"], (1, 1), "VALID",
        dimension_numbers=("NCHW", "OIHW", "NCHW"), precision=hi)
    y = jnp.maximum(y + params["conv2_b"][None, :, None, None], 0.0)
    y = jax.lax.reduce_window(y, -jnp.inf, jax.lax.max,
                              (1, 1, 2, 2), (1, 1, 2, 2), "VALID")
    flat = y.reshape(y.shape[0], -1)
    h = jnp.maximum(jnp.dot(flat, params["fc1_w"].T, precision=hi)
                    + params["fc1_b"], 0.0)
    logits = jnp.dot(h, params["fc2_w"].T, precision=hi) + params["fc2_b"]
    return jax.nn.log_softmax(logits, axis=-1)


# --------------------------- deterministic params ---------------------------- #

def init_params(key):
    ks = jax.random.split(key, 8)
    return {
        "conv1_w": jax.random.normal(ks[0], (20, 1, 5, 5), jnp.float32) * 0.10,
        "conv1_b": jax.random.normal(ks[1], (20,), jnp.float32) * 0.10,
        "conv2_w": jax.random.normal(ks[2], (50, 20, 5, 5), jnp.float32) * 0.05,
        "conv2_b": jax.random.normal(ks[3], (50,), jnp.float32) * 0.05,
        "fc1_w":   jax.random.normal(ks[4], (500, 800), jnp.float32) * 0.02,
        "fc1_b":   jax.random.normal(ks[5], (500,), jnp.float32) * 0.02,
        "fc2_w":   jax.random.normal(ks[6], (10, 500), jnp.float32) * 0.05,
        "fc2_b":   jax.random.normal(ks[7], (10,), jnp.float32) * 0.05,
    }


if __name__ == "__main__":
    key = jax.random.PRNGKey(0)
    pkey, xkey = jax.random.split(key)
    params = init_params(pkey)
    prepared = prepare_params(params)   # one-time weight layout transforms

    # Spatial size 28x28 is forced by the module's hardcoded 4*4*50 flatten.
    x = jax.random.normal(xkey, (2, 1, 28, 28), jnp.float32)

    out = jax.block_until_ready(jax.jit(net_forward)(prepared, x))

    assert out.shape == (2, 10)
    # log_softmax rows must exponentiate-sum to 1
    assert bool(jnp.allclose(jnp.sum(jnp.exp(out), axis=1), 1.0, atol=1e-4))

    # Structural check vs. a plain-XLA f32 reference.  Weights are bf16 in the
    # kernel, so tiny (~1e-3) numeric drift is expected; a layout/permutation
    # bug would be O(1) off.
    ref = jax.block_until_ready(jax.jit(net_reference)(params, x))
    err = float(jnp.max(jnp.abs(out - ref)))
    assert err < 2e-2, err

    print("KERNEL_OK")
</pallas_src>

<mosaic_0001>
module attributes {stable_mosaic.version = 11 : i64} {
  func.func @fused_net_kernel(%arg0: i32, %arg1: memref<1x28x28xf32, #tpu.memory_space<vmem>>, %arg2: memref<5x2x28x240xbf16, #tpu.memory_space<vmem>>, %arg3: memref<1x240xf32, #tpu.memory_space<vmem>>, %arg4: memref<2x12x24xf32, #tpu.memory_space<vmem>>, %arg5: memref<5x2x240x200xbf16, #tpu.memory_space<vmem>>, %arg6: memref<1x200xf32, #tpu.memory_space<vmem>>, %arg7: memref<2x4x8xf32, #tpu.memory_space<vmem>>, %arg8: memref<4x200x512xbf16, #tpu.memory_space<vmem>>, %arg9: memref<1x512xf32, #tpu.memory_space<vmem>>, %arg10: memref<512x128xbf16, #tpu.memory_space<vmem>>, %arg11: memref<1x128xf32, #tpu.memory_space<vmem>>, %arg12: memref<1x1x128xf32, #tpu.memory_space<vmem>>) attributes {dimension_semantics = [#tpu.dimension_semantics<parallel>], iteration_bounds = array<i64: 2>, scalar_prefetch = 0 : i64, scratch_operands = 0 : i64, tpu.core_type = #tpu.core_type<tc>, window_params = [{transform_indices = @transform_0, window_bounds = array<i64: 1, 28, 28>}, {pipeline_mode = #tpu.pipeline_mode<synchronous>, transform_indices = @transform_1, window_bounds = array<i64: 5, 2, 28, 240>}, {pipeline_mode = #tpu.pipeline_mode<synchronous>, transform_indices = @transform_2, window_bounds = array<i64: 1, 240>}, {pipeline_mode = #tpu.pipeline_mode<synchronous>, transform_indices = @transform_3, window_bounds = array<i64: 2, 12, 24>}, {pipeline_mode = #tpu.pipeline_mode<synchronous>, transform_indices = @transform_4, window_bounds = array<i64: 5, 2, 240, 200>}, {pipeline_mode = #tpu.pipeline_mode<synchronous>, transform_indices = @transform_5, window_bounds = array<i64: 1, 200>}, {pipeline_mode = #tpu.pipeline_mode<synchronous>, transform_indices = @transform_6, window_bounds = array<i64: 2, 4, 8>}, {pipeline_mode = #tpu.pipeline_mode<synchronous>, transform_indices = @transform_7, window_bounds = array<i64: 4, 200, 512>}, {pipeline_mode = #tpu.pipeline_mode<synchronous>, transform_indices = @transform_8, window_bounds = array<i64: 1, 512>}, {pipeline_mode = #tpu.pipeline_mode<synchronous>, transform_indices = @transform_9, window_bounds = array<i64: 512, 128>}, {pipeline_mode = #tpu.pipeline_mode<synchronous>, transform_indices = @transform_10, window_bounds = array<i64: 1, 128>}, {transform_indices = @transform_11, window_bounds = array<i64: 1, 1, 128>}]} {
    %c0 = arith.constant 0 : index
    %c0_0 = arith.constant 0 : index
    %c0_1 = arith.constant 0 : index
    %0 = vector.load %arg1[%c0, %c0_0, %c0_1] : memref<1x28x28xf32, #tpu.memory_space<vmem>>, vector<1x28x28xf32>
    %1 = vector.shape_cast %0 : vector<1x28x28xf32> to vector<28x28xf32>
    %cst = arith.constant 0.000000e+00 : f32
    %2 = vector.broadcast %cst : f32 to vector<24x240xf32>
    %c0_2 = arith.constant 0 : index
    %c0_3 = arith.constant 0 : index
    %c0_4 = arith.constant 0 : index
    %c0_5 = arith.constant 0 : index
    %3 = vector.load %arg2[%c0_2, %c0_3, %c0_4, %c0_5] : memref<5x2x28x240xbf16, #tpu.memory_space<vmem>>, vector<1x1x28x240xbf16>
    %4 = vector.shape_cast %3 : vector<1x1x28x240xbf16> to vector<28x240xbf16>
    %5 = arith.extf %4 : vector<28x240xbf16> to vector<28x240xf32>
    %6 = vector.extract_strided_slice %1 {offsets = [0, 0], sizes = [24, 28], strides = [1, 1]} : vector<28x28xf32> to vector<24x28xf32>
    %cst_6 = arith.constant dense<0.000000e+00> : vector<24x240xf32>
    %7 = tpu.matmul %6, %5, %cst_6 {dimension_numbers = #tpu.dot_dimension_numbers<[1], [0], [0], [1], [0, 0, 1, 1], [], []>} : vector<24x28xf32>, vector<28x240xf32>, vector<24x240xf32> -> vector<24x240xf32>
    %8 = arith.addf %2, %7 : vector<24x240xf32>
    %c1 = arith.constant 1 : index
    %c0_7 = arith.constant 0 : index
    %c0_8 = arith.constant 0 : index
    %c0_9 = arith.constant 0 : index
    %9 = vector.load %arg2[%c1, %c0_7, %c0_8, %c0_9] : memref<5x2x28x240xbf16, #tpu.memory_space<vmem>>, vector<1x1x28x240xbf16>
    %10 = vector.shape_cast %9 : vector<1x1x28x240xbf16> to vector<28x240xbf16>
    %11 = arith.extf %10 : vector<28x240xbf16> to vector<28x240xf32>
    %12 = vector.extract_strided_slice %1 {offsets = [1, 0], sizes = [24, 28], strides = [1, 1]} : vector<28x28xf32> to vector<24x28xf32>
    %cst_10 = arith.constant dense<0.000000e+00> : vector<24x240xf32>
    %13 = tpu.matmul %12, %11, %cst_10 {dimension_numbers = #tpu.dot_dimension_numbers<[1], [0], [0], [1], [0, 0, 1, 1], [], []>} : vector<24x28xf32>, vector<28x240xf32>, vector<24x240xf32> -> vector<24x240xf32>
    %14 = arith.addf %8, %13 : vector<24x240xf32>
    %c2 = arith.constant 2 : index
    %c0_11 = arith.constant 0 : index
    %c0_12 = arith.constant 0 : index
    %c0_13 = arith.constant 0 : index
    %15 = vector.load %arg2[%c2, %c0_11, %c0_12, %c0_13] : memref<5x2x28x240xbf16, #tpu.memory_space<vmem>>, vector<1x1x28x240xbf16>
    %16 = vector.shape_cast %15 : vector<1x1x28x240xbf16> to vector<28x240xbf16>
    %17 = arith.extf %16 : vector<28x240xbf16> to vector<28x240xf32>
    %18 = vector.extract_strided_slice %1 {offsets = [2, 0], sizes = [24, 28], strides = [1, 1]} : vector<28x28xf32> to vector<24x28xf32>
    %cst_14 = arith.constant dense<0.000000e+00> : vector<24x240xf32>
    %19 = tpu.matmul %18, %17, %cst_14 {dimension_numbers = #tpu.dot_dimension_numbers<[1], [0], [0], [1], [0, 0, 1, 1], [], []>} : vector<24x28xf32>, vector<28x240xf32>, vector<24x240xf32> -> vector<24x240xf32>
    %20 = arith.addf %14, %19 : vector<24x240xf32>
    %c3 = arith.constant 3 : index
    %c0_15 = arith.constant 0 : index
    %c0_16 = arith.constant 0 : index
    %c0_17 = arith.constant 0 : index
    %21 = vector.load %arg2[%c3, %c0_15, %c0_16, %c0_17] : memref<5x2x28x240xbf16, #tpu.memory_space<vmem>>, vector<1x1x28x240xbf16>
    %22 = vector.shape_cast %21 : vector<1x1x28x240xbf16> to vector<28x240xbf16>
    %23 = arith.extf %22 : vector<28x240xbf16> to vector<28x240xf32>
    %24 = vector.extract_strided_slice %1 {offsets = [3, 0], sizes = [24, 28], strides = [1, 1]} : vector<28x28xf32> to vector<24x28xf32>
    %cst_18 = arith.constant dense<0.000000e+00> : vector<24x240xf32>
    %25 = tpu.matmul %24, %23, %cst_18 {dimension_numbers = #tpu.dot_dimension_numbers<[1], [0], [0], [1], [0, 0, 1, 1], [], []>} : vector<24x28xf32>, vector<28x240xf32>, vector<24x240xf32> -> vector<24x240xf32>
    %26 = arith.addf %20, %25 : vector<24x240xf32>
    %c4 = arith.constant 4 : index
    %c0_19 = arith.constant 0 : index
    %c0_20 = arith.constant 0 : index
    %c0_21 = arith.constant 0 : index
    %27 = vector.load %arg2[%c4, %c0_19, %c0_20, %c0_21] : memref<5x2x28x240xbf16, #tpu.memory_space<vmem>>, vector<1x1x28x240xbf16>
    %28 = vector.shape_cast %27 : vector<1x1x28x240xbf16> to vector<28x240xbf16>
    %29 = arith.extf %28 : vector<28x240xbf16> to vector<28x240xf32>
    %30 = vector.extract_strided_slice %1 {offsets = [4, 0], sizes = [24, 28], strides = [1, 1]} : vector<28x28xf32> to vector<24x28xf32>
    %cst_22 = arith.constant dense<0.000000e+00> : vector<24x240xf32>
    %31 = tpu.matmul %30, %29, %cst_22 {dimension_numbers = #tpu.dot_dimension_numbers<[1], [0], [0], [1], [0, 0, 1, 1], [], []>} : vector<24x28xf32>, vector<28x240xf32>, vector<24x240xf32> -> vector<24x240xf32>
    %32 = arith.addf %26, %31 : vector<24x240xf32>
    %cst_23 = arith.constant 0.000000e+00 : f32
    %33 = vector.broadcast %cst_23 : f32 to vector<24x240xf32>
    %c0_24 = arith.constant 0 : index
    %c1_25 = arith.constant 1 : index
    %c0_26 = arith.constant 0 : index
    %c0_27 = arith.constant 0 : index
    %34 = vector.load %arg2[%c0_24, %c1_25, %c0_26, %c0_27] : memref<5x2x28x240xbf16, #tpu.memory_space<vmem>>, vector<1x1x28x240xbf16>
    %35 = vector.shape_cast %34 : vector<1x1x28x240xbf16> to vector<28x240xbf16>
    %36 = arith.extf %35 : vector<28x240xbf16> to vector<28x240xf32>
    %37 = vector.extract_strided_slice %1 {offsets = [0, 0], sizes = [24, 28], strides = [1, 1]} : vector<28x28xf32> to vector<24x28xf32>
    %cst_28 = arith.constant dense<0.000000e+00> : vector<24x240xf32>
    %38 = tpu.matmul %37, %36, %cst_28 {dimension_numbers = #tpu.dot_dimension_numbers<[1], [0], [0], [1], [0, 0, 1, 1], [], []>} : vector<24x28xf32>, vector<28x240xf32>, vector<24x240xf32> -> vector<24x240xf32>
    %39 = arith.addf %33, %38 : vector<24x240xf32>
    %c1_29 = arith.constant 1 : index
    %c1_30 = arith.constant 1 : index
    %c0_31 = arith.constant 0 : index
    %c0_32 = arith.constant 0 : index
    %40 = vector.load %arg2[%c1_29, %c1_30, %c0_31, %c0_32] : memref<5x2x28x240xbf16, #tpu.memory_space<vmem>>, vector<1x1x28x240xbf16>
    %41 = vector.shape_cast %40 : vector<1x1x28x240xbf16> to vector<28x240xbf16>
    %42 = arith.extf %41 : vector<28x240xbf16> to vector<28x240xf32>
    %43 = vector.extract_strided_slice %1 {offsets = [1, 0], sizes = [24, 28], strides = [1, 1]} : vector<28x28xf32> to vector<24x28xf32>
    %cst_33 = arith.constant dense<0.000000e+00> : vector<24x240xf32>
    %44 = tpu.matmul %43, %42, %cst_33 {dimension_numbers = #tpu.dot_dimension_numbers<[1], [0], [0], [1], [0, 0, 1, 1], [], []>} : vector<24x28xf32>, vector<28x240xf32>, vector<24x240xf32> -> vector<24x240xf32>
    %45 = arith.addf %39, %44 : vector<24x240xf32>
    %c2_34 = arith.constant 2 : index
    %c1_35 = arith.constant 1 : index
    %c0_36 = arith.constant 0 : index
    %c0_37 = arith.constant 0 : index
    %46 = vector.load %arg2[%c2_34, %c1_35, %c0_36, %c0_37] : memref<5x2x28x240xbf16, #tpu.memory_space<vmem>>, vector<1x1x28x240xbf16>
    %47 = vector.shape_cast %46 : vector<1x1x28x240xbf16> to vector<28x240xbf16>
    %48 = arith.extf %47 : vector<28x240xbf16> to vector<28x240xf32>
    %49 = vector.extract_strided_slice %1 {offsets = [2, 0], sizes = [24, 28], strides = [1, 1]} : vector<28x28xf32> to vector<24x28xf32>
    %cst_38 = arith.constant dense<0.000000e+00> : vector<24x240xf32>
    %50 = tpu.matmul %49, %48, %cst_38 {dimension_numbers = #tpu.dot_dimension_numbers<[1], [0], [0], [1], [0, 0, 1, 1], [], []>} : vector<24x28xf32>, vector<28x240xf32>, vector<24x240xf32> -> vector<24x240xf32>
    %51 = arith.addf %45, %50 : vector<24x240xf32>
    %c3_39 = arith.constant 3 : index
    %c1_40 = arith.constant 1 : index
    %c0_41 = arith.constant 0 : index
    %c0_42 = arith.constant 0 : index
    %52 = vector.load %arg2[%c3_39, %c1_40, %c0_41, %c0_42] : memref<5x2x28x240xbf16, #tpu.memory_space<vmem>>, vector<1x1x28x240xbf16>
    %53 = vector.shape_cast %52 : vector<1x1x28x240xbf16> to vector<28x240xbf16>
    %54 = arith.extf %53 : vector<28x240xbf16> to vector<28x240xf32>
    %55 = vector.extract_strided_slice %1 {offsets = [3, 0], sizes = [24, 28], strides = [1, 1]} : vector<28x28xf32> to vector<24x28xf32>
    %cst_43 = arith.constant dense<0.000000e+00> : vector<24x240xf32>
    %56 = tpu.matmul %55, %54, %cst_43 {dimension_numbers = #tpu.dot_dimension_numbers<[1], [0], [0], [1], [0, 0, 1, 1], [], []>} : vector<24x28xf32>, vector<28x240xf32>, vector<24x240xf32> -> vector<24x240xf32>
    %57 = arith.addf %51, %56 : vector<24x240xf32>
    %c4_44 = arith.constant 4 : index
    %c1_45 = arith.constant 1 : index
    %c0_46 = arith.constant 0 : index
    %c0_47 = arith.constant 0 : index
    %58 = vector.load %arg2[%c4_44, %c1_45, %c0_46, %c0_47] : memref<5x2x28x240xbf16, #tpu.memory_space<vmem>>, vector<1x1x28x240xbf16>
    %59 = vector.shape_cast %58 : vector<1x1x28x240xbf16> to vector<28x240xbf16>
    %60 = arith.extf %59 : vector<28x240xbf16> to vector<28x240xf32>
    %61 = vector.extract_strided_slice %1 {offsets = [4, 0], sizes = [24, 28], strides = [1, 1]} : vector<28x28xf32> to vector<24x28xf32>
    %cst_48 = arith.constant dense<0.000000e+00> : vector<24x240xf32>
    %62 = tpu.matmul %61, %60, %cst_48 {dimension_numbers = #tpu.dot_dimension_numbers<[1], [0], [0], [1], [0, 0, 1, 1], [], []>} : vector<24x28xf32>, vector<28x240xf32>, vector<24x240xf32> -> vector<24x240xf32>
    %63 = arith.addf %57, %62 : vector<24x240xf32>
    %64 = arith.maximumf %32, %63 : vector<24x240xf32>
    %c0_49 = arith.constant 0 : index
    %c0_50 = arith.constant 0 : index
    %c0_51 = arith.constant 0 : index
    %65 = vector.load %arg4[%c0_49, %c0_50, %c0_51] : memref<2x12x24xf32, #tpu.memory_space<vmem>>, vector<1x12x24xf32>
    %66 = vector.shape_cast %65 : vector<1x12x24xf32> to vector<12x24xf32>
    %cst_52 = arith.constant dense<0.000000e+00> : vector<12x240xf32>
    %67 = tpu.matmul %66, %64, %cst_52 {dimension_numbers = #tpu.dot_dimension_numbers<[1], [0], [0], [1], [0, 0, 1, 1], [], []>} : vector<12x24xf32>, vector<24x240xf32>, vector<12x240xf32> -> vector<12x240xf32>
    %c1_53 = arith.constant 1 : index
    %c0_54 = arith.constant 0 : index
    %c0_55 = arith.constant 0 : index
    %68 = vector.load %arg4[%c1_53, %c0_54, %c0_55] : memref<2x12x24xf32, #tpu.memory_space<vmem>>, vector<1x12x24xf32>
    %69 = vector.shape_cast %68 : vector<1x12x24xf32> to vector<12x24xf32>
    %cst_56 = arith.constant dense<0.000000e+00> : vector<12x240xf32>
    %70 = tpu.matmul %69, %64, %cst_56 {dimension_numbers = #tpu.dot_dimension_numbers<[1], [0], [0], [1], [0, 0, 1, 1], [], []>} : vector<12x24xf32>, vector<24x240xf32>, vector<12x240xf32> -> vector<12x240xf32>
    %71 = arith.maximumf %67, %70 : vector<12x240xf32>
    %c0_57 = arith.constant 0 : index
    %c0_58 = arith.constant 0 : index
    %72 = vector.load %arg3[%c0_57, %c0_58] : memref<1x240xf32, #tpu.memory_space<vmem>>, vector<1x240xf32>
    %73 = vector.broadcast %72 : vector<1x240xf32> to vector<12x240xf32>
    %74 = arith.addf %71, %73 : vector<12x240xf32>
    %cst_59 = arith.constant 0.000000e+00 : f32
    %75 = vector.broadcast %cst_59 : f32 to vector<12x240xf32>
    %76 = arith.maximumf %74, %75 : vector<12x240xf32>
    %cst_60 = arith.constant 0.000000e+00 : f32
    %77 = vector.broadcast %cst_60 : f32 to vector<8x200xf32>
    %c0_61 = arith.constant 0 : index
    %c0_62 = arith.constant 0 : index
    %c0_63 = arith.constant 0 : index
    %c0_64 = arith.constant 0 : index
    %78 = vector.load %arg5[%c0_61, %c0_62, %c0_63, %c0_64] : memref<5x2x240x200xbf16, #tpu.memory_space<vmem>>, vector<1x1x240x200xbf16>
    %79 = vector.shape_cast %78 : vector<1x1x240x200xbf16> to vector<240x200xbf16>
    %80 = arith.extf %79 : vector<240x200xbf16> to vector<240x200xf32>
    %81 = vector.extract_strided_slice %76 {offsets = [0, 0], sizes = [8, 240], strides = [1, 1]} : vector<12x240xf32> to vector<8x240xf32>
    %cst_65 = arith.constant dense<0.000000e+00> : vector<8x200xf32>
    %82 = tpu.matmul %81, %80, %cst_65 {dimension_numbers = #tpu.dot_dimension_numbers<[1], [0], [0], [1], [0, 0, 1, 1], [], []>} : vector<8x240xf32>, vector<240x200xf32>, vector<8x200xf32> -> vector<8x200xf32>
    %83 = arith.addf %77, %82 : vector<8x200xf32>
    %c1_66 = arith.constant 1 : index
    %c0_67 = arith.constant 0 : index
    %c0_68 = arith.constant 0 : index
    %c0_69 = arith.constant 0 : index
    %84 = vector.load %arg5[%c1_66, %c0_67, %c0_68, %c0_69] : memref<5x2x240x200xbf16, #tpu.memory_space<vmem>>, vector<1x1x240x200xbf16>
    %85 = vector.shape_cast %84 : vector<1x1x240x200xbf16> to vector<240x200xbf16>
    %86 = arith.extf %85 : vector<240x200xbf16> to vector<240x200xf32>
    %87 = vector.extract_strided_slice %76 {offsets = [1, 0], sizes = [8, 240], strides = [1, 1]} : vector<12x240xf32> to vector<8x240xf32>
    %cst_70 = arith.constant dense<0.000000e+00> : vector<8x200xf32>
    %88 = tpu.matmul %87, %86, %cst_70 {dimension_numbers = #tpu.dot_dimension_numbers<[1], [0], [0], [1], [0, 0, 1, 1], [], []>} : vector<8x240xf32>, vector<240x200xf32>, vector<8x200xf32> -> vector<8x200xf32>
    %89 = arith.addf %83, %88 : vector<8x200xf32>
    %c2_71 = arith.constant 2 : index
    %c0_72 = arith.constant 0 : index
    %c0_73 = arith.constant 0 : index
    %c0_74 = arith.constant 0 : index
    %90 = vector.load %arg5[%c2_71, %c0_72, %c0_73, %c0_74] : memref<5x2x240x200xbf16, #tpu.memory_space<vmem>>, vector<1x1x240x200xbf16>
    %91 = vector.shape_cast %90 : vector<1x1x240x200xbf16> to vector<240x200xbf16>
    %92 = arith.extf %91 : vector<240x200xbf16> to vector<240x200xf32>
    %93 = vector.extract_strided_slice %76 {offsets = [2, 0], sizes = [8, 240], strides = [1, 1]} : vector<12x240xf32> to vector<8x240xf32>
    %cst_75 = arith.constant dense<0.000000e+00> : vector<8x200xf32>
    %94 = tpu.matmul %93, %92, %cst_75 {dimension_numbers = #tpu.dot_dimension_numbers<[1], [0], [0], [1], [0, 0, 1, 1], [], []>} : vector<8x240xf32>, vector<240x200xf32>, vector<8x200xf32> -> vector<8x200xf32>
    %95 = arith.addf %89, %94 : vector<8x200xf32>
    %c3_76 = arith.constant 3 : index
    %c0_77 = arith.constant 0 : index
    %c0_78 = arith.constant 0 : index
    %c0_79 = arith.constant 0 : index
    %96 = vector.load %arg5[%c3_76, %c0_77, %c0_78, %c0_79] : memref<5x2x240x200xbf16, #tpu.memory_space<vmem>>, vector<1x1x240x200xbf16>
    %97 = vector.shape_cast %96 : vector<1x1x240x200xbf16> to vector<240x200xbf16>
    %98 = arith.extf %97 : vector<240x200xbf16> to vector<240x200xf32>
    %99 = vector.extract_strided_slice %76 {offsets = [3, 0], sizes = [8, 240], strides = [1, 1]} : vector<12x240xf32> to vector<8x240xf32>
    %cst_80 = arith.constant dense<0.000000e+00> : vector<8x200xf32>
    %100 = tpu.matmul %99, %98, %cst_80 {dimension_numbers = #tpu.dot_dimension_numbers<[1], [0], [0], [1], [0, 0, 1, 1], [], []>} : vector<8x240xf32>, vector<240x200xf32>, vector<8x200xf32> -> vector<8x200xf32>
    %101 = arith.addf %95, %100 : vector<8x200xf32>
    %c4_81 = arith.constant 4 : index
    %c0_82 = arith.constant 0 : index
    %c0_83 = arith.constant 0 : index
    %c0_84 = arith.constant 0 : index
    %102 = vector.load %arg5[%c4_81, %c0_82, %c0_83, %c0_84] : memref<5x2x240x200xbf16, #tpu.memory_space<vmem>>, vector<1x1x240x200xbf16>
    %103 = vector.shape_cast %102 : vector<1x1x240x200xbf16> to vector<240x200xbf16>
    %104 = arith.extf %103 : vector<240x200xbf16> to vector<240x200xf32>
    %105 = vector.extract_strided_slice %76 {offsets = [4, 0], sizes = [8, 240], strides = [1, 1]} : vector<12x240xf32> to vector<8x240xf32>
    %cst_85 = arith.constant dense<0.000000e+00> : vector<8x200xf32>
    %106 = tpu.matmul %105, %104, %cst_85 {dimension_numbers = #tpu.dot_dimension_numbers<[1], [0], [0], [1], [0, 0, 1, 1], [], []>} : vector<8x240xf32>, vector<240x200xf32>, vector<8x200xf32> -> vector<8x200xf32>
    %107 = arith.addf %101, %106 : vector<8x200xf32>
    %cst_86 = arith.constant 0.000000e+00 : f32
    %108 = vector.broadcast %cst_86 : f32 to vector<8x200xf32>
    %c0_87 = arith.constant 0 : index
    %c1_88 = arith.constant 1 : index
    %c0_89 = arith.constant 0 : index
    %c0_90 = arith.constant 0 : index
    %109 = vector.load %arg5[%c0_87, %c1_88, %c0_89, %c0_90] : memref<5x2x240x200xbf16, #tpu.memory_space<vmem>>, vector<1x1x240x200xbf16>
    %110 = vector.shape_cast %109 : vector<1x1x240x200xbf16> to vector<240x200xbf16>
    %111 = arith.extf %110 : vector<240x200xbf16> to vector<240x200xf32>
    %112 = vector.extract_strided_slice %76 {offsets = [0, 0], sizes = [8, 240], strides = [1, 1]} : vector<12x240xf32> to vector<8x240xf32>
    %cst_91 = arith.constant dense<0.000000e+00> : vector<8x200xf32>
    %113 = tpu.matmul %112, %111, %cst_91 {dimension_numbers = #tpu.dot_dimension_numbers<[1], [0], [0], [1], [0, 0, 1, 1], [], []>} : vector<8x240xf32>, vector<240x200xf32>, vector<8x200xf32> -> vector<8x200xf32>
    %114 = arith.addf %108, %113 : vector<8x200xf32>
    %c1_92 = arith.constant 1 : index
    %c1_93 = arith.constant 1 : index
    %c0_94 = arith.constant 0 : index
    %c0_95 = arith.constant 0 : index
    %115 = vector.load %arg5[%c1_92, %c1_93, %c0_94, %c0_95] : memref<5x2x240x200xbf16, #tpu.memory_space<vmem>>, vector<1x1x240x200xbf16>
    %116 = vector.shape_cast %115 : vector<1x1x240x200xbf16> to vector<240x200xbf16>
    %117 = arith.extf %116 : vector<240x200xbf16> to vector<240x200xf32>
    %118 = vector.extract_strided_slice %76 {offsets = [1, 0], sizes = [8, 240], strides = [1, 1]} : vector<12x240xf32> to vector<8x240xf32>
    %cst_96 = arith.constant dense<0.000000e+00> : vector<8x200xf32>
    %119 = tpu.matmul %118, %117, %cst_96 {dimension_numbers = #tpu.dot_dimension_numbers<[1], [0], [0], [1], [0, 0, 1, 1], [], []>} : vector<8x240xf32>, vector<240x200xf32>, vector<8x200xf32> -> vector<8x200xf32>
    %120 = arith.addf %114, %119 : vector<8x200xf32>
    %c2_97 = arith.constant 2 : index
    %c1_98 = arith.constant 1 : index
    %c0_99 = arith.constant 0 : index
    %c0_100 = arith.constant 0 : index
    %121 = vector.load %arg5[%c2_97, %c1_98, %c0_99, %c0_100] : memref<5x2x240x200xbf16, #tpu.memory_space<vmem>>, vector<1x1x240x200xbf16>
    %122 = vector.shape_cast %121 : vector<1x1x240x200xbf16> to vector<240x200xbf16>
    %123 = arith.extf %122 : vector<240x200xbf16> to vector<240x200xf32>
    %124 = vector.extract_strided_slice %76 {offsets = [2, 0], sizes = [8, 240], strides = [1, 1]} : vector<12x240xf32> to vector<8x240xf32>
    %cst_101 = arith.constant dense<0.000000e+00> : vector<8x200xf32>
    %125 = tpu.matmul %124, %123, %cst_101 {dimension_numbers = #tpu.dot_dimension_numbers<[1], [0], [0], [1], [0, 0, 1, 1], [], []>} : vector<8x240xf32>, vector<240x200xf32>, vector<8x200xf32> -> vector<8x200xf32>
    %126 = arith.addf %120, %125 : vector<8x200xf32>
    %c3_102 = arith.constant 3 : index
    %c1_103 = arith.constant 1 : index
    %c0_104 = arith.constant 0 : index
    %c0_105 = arith.constant 0 : index
    %127 = vector.load %arg5[%c3_102, %c1_103, %c0_104, %c0_105] : memref<5x2x240x200xbf16, #tpu.memory_space<vmem>>, vector<1x1x240x200xbf16>
    %128 = vector.shape_cast %127 : vector<1x1x240x200xbf16> to vector<240x200xbf16>
    %129 = arith.extf %128 : vector<240x200xbf16> to vector<240x200xf32>
    %130 = vector.extract_strided_slice %76 {offsets = [3, 0], sizes = [8, 240], strides = [1, 1]} : vector<12x240xf32> to vector<8x240xf32>
    %cst_106 = arith.constant dense<0.000000e+00> : vector<8x200xf32>
    %131 = tpu.matmul %130, %129, %cst_106 {dimension_numbers = #tpu.dot_dimension_numbers<[1], [0], [0], [1], [0, 0, 1, 1], [], []>} : vector<8x240xf32>, vector<240x200xf32>, vector<8x200xf32> -> vector<8x200xf32>
    %132 = arith.addf %126, %131 : vector<8x200xf32>
    %c4_107 = arith.constant 4 : index
    %c1_108 = arith.constant 1 : index
    %c0_109 = arith.constant 0 : index
    %c0_110 = arith.constant 0 : index
    %133 = vector.load %arg5[%c4_107, %c1_108, %c0_109, %c0_110] : memref<5x2x240x200xbf16, #tpu.memory_space<vmem>>, vector<1x1x240x200xbf16>
    %134 = vector.shape_cast %133 : vector<1x1x240x200xbf16> to vector<240x200xbf16>
    %135 = arith.extf %134 : vector<240x200xbf16> to vector<240x200xf32>
    %136 = vector.extract_strided_slice %76 {offsets = [4, 0], sizes = [8, 240], strides = [1, 1]} : vector<12x240xf32> to vector<8x240xf32>
    %cst_111 = arith.constant dense<0.000000e+00> : vector<8x200xf32>
    %137 = tpu.matmul %136, %135, %cst_111 {dimension_numbers = #tpu.dot_dimension_numbers<[1], [0], [0], [1], [0, 0, 1, 1], [], []>} : vector<8x240xf32>, vector<240x200xf32>, vector<8x200xf32> -> vector<8x200xf32>
    %138 = arith.addf %132, %137 : vector<8x200xf32>
    %139 = arith.maximumf %107, %138 : vector<8x200xf32>
    %c0_112 = arith.constant 0 : index
    %c0_113 = arith.constant 0 : index
    %c0_114 = arith.constant 0 : index
    %140 = vector.load %arg7[%c0_112, %c0_113, %c0_114] : memref<2x4x8xf32, #tpu.memory_space<vmem>>, vector<1x4x8xf32>
    %141 = vector.shape_cast %140 : vector<1x4x8xf32> to vector<4x8xf32>
    %cst_115 = arith.constant dense<0.000000e+00> : vector<4x200xf32>
    %142 = tpu.matmul %141, %139, %cst_115 {dimension_numbers = #tpu.dot_dimension_numbers<[1], [0], [0], [1], [0, 0, 1, 1], [], []>} : vector<4x8xf32>, vector<8x200xf32>, vector<4x200xf32> -> vector<4x200xf32>
    %c1_116 = arith.constant 1 : index
    %c0_117 = arith.constant 0 : index
    %c0_118 = arith.constant 0 : index
    %143 = vector.load %arg7[%c1_116, %c0_117, %c0_118] : memref<2x4x8xf32, #tpu.memory_space<vmem>>, vector<1x4x8xf32>
    %144 = vector.shape_cast %143 : vector<1x4x8xf32> to vector<4x8xf32>
    %cst_119 = arith.constant dense<0.000000e+00> : vector<4x200xf32>
    %145 = tpu.matmul %144, %139, %cst_119 {dimension_numbers = #tpu.dot_dimension_numbers<[1], [0], [0], [1], [0, 0, 1, 1], [], []>} : vector<4x8xf32>, vector<8x200xf32>, vector<4x200xf32> -> vector<4x200xf32>
    %146 = arith.maximumf %142, %145 : vector<4x200xf32>
    %c0_120 = arith.constant 0 : index
    %c0_121 = arith.constant 0 : index
    %147 = vector.load %arg6[%c0_120, %c0_121] : memref<1x200xf32, #tpu.memory_space<vmem>>, vector<1x200xf32>
    %148 = vector.broadcast %147 : vector<1x200xf32> to vector<4x200xf32>
    %149 = arith.addf %146, %148 : vector<4x200xf32>
    %cst_122 = arith.constant 0.000000e+00 : f32
    %150 = vector.broadcast %cst_122 : f32 to vector<4x200xf32>
    %151 = arith.maximumf %149, %150 : vector<4x200xf32>
    %c0_123 = arith.constant 0 : index
    %c0_124 = arith.constant 0 : index
    %152 = vector.load %arg9[%c0_123, %c0_124] : memref<1x512xf32, #tpu.memory_space<vmem>>, vector<1x512xf32>
    %153 = vector.extract_strided_slice %151 {offsets = [0, 0], sizes = [1, 200], strides = [1, 1]} : vector<4x200xf32> to vector<1x200xf32>
    %c0_125 = arith.constant 0 : index
    %c0_126 = arith.constant 0 : index
    %c0_127 = arith.constant 0 : index
    %154 = vector.load %arg8[%c0_125, %c0_126, %c0_127] : memref<4x200x512xbf16, #tpu.memory_space<vmem>>, vector<1x200x512xbf16>
    %155 = vector.shape_cast %154 : vector<1x200x512xbf16> to vector<200x512xbf16>
    %156 = arith.extf %155 : vector<200x512xbf16> to vector<200x512xf32>
    %cst_128 = arith.constant dense<0.000000e+00> : vector<1x512xf32>
    %157 = tpu.matmul %153, %156, %cst_128 {dimension_numbers = #tpu.dot_dimension_numbers<[1], [0], [0], [1], [0, 0, 1, 1], [], []>} : vector<1x200xf32>, vector<200x512xf32>, vector<1x512xf32> -> vector<1x512xf32>
    %158 = arith.addf %152, %157 : vector<1x512xf32>
    %159 = vector.extract_strided_slice %151 {offsets = [1, 0], sizes = [1, 200], strides = [1, 1]} : vector<4x200xf32> to vector<1x200xf32>
    %c1_129 = arith.constant 1 : index
    %c0_130 = arith.constant 0 : index
    %c0_131 = arith.constant 0 : index
    %160 = vector.load %arg8[%c1_129, %c0_130, %c0_131] : memref<4x200x512xbf16, #tpu.memory_space<vmem>>, vector<1x200x512xbf16>
    %161 = vector.shape_cast %160 : vector<1x200x512xbf16> to vector<200x512xbf16>
    %162 = arith.extf %161 : vector<200x512xbf16> to vector<200x512xf32>
    %cst_132 = arith.constant dense<0.000000e+00> : vector<1x512xf32>
    %163 = tpu.matmul %159, %162, %cst_132 {dimension_numbers = #tpu.dot_dimension_numbers<[1], [0], [0], [1], [0, 0, 1, 1], [], []>} : vector<1x200xf32>, vector<200x512xf32>, vector<1x512xf32> -> vector<1x512xf32>
    %164 = arith.addf %158, %163 : vector<1x512xf32>
    %165 = vector.extract_strided_slice %151 {offsets = [2, 0], sizes = [1, 200], strides = [1, 1]} : vector<4x200xf32> to vector<1x200xf32>
    %c2_133 = arith.constant 2 : index
    %c0_134 = arith.constant 0 : index
    %c0_135 = arith.constant 0 : index
    %166 = vector.load %arg8[%c2_133, %c0_134, %c0_135] : memref<4x200x512xbf16, #tpu.memory_space<vmem>>, vector<1x200x512xbf16>
    %167 = vector.shape_cast %166 : vector<1x200x512xbf16> to vector<200x512xbf16>
    %168 = arith.extf %167 : vector<200x512xbf16> to vector<200x512xf32>
    %cst_136 = arith.constant dense<0.000000e+00> : vector<1x512xf32>
    %169 = tpu.matmul %165, %168, %cst_136 {dimension_numbers = #tpu.dot_dimension_numbers<[1], [0], [0], [1], [0, 0, 1, 1], [], []>} : vector<1x200xf32>, vector<200x512xf32>, vector<1x512xf32> -> vector<1x512xf32>
    %170 = arith.addf %164, %169 : vector<1x512xf32>
    %171 = vector.extract_strided_slice %151 {offsets = [3, 0], sizes = [1, 200], strides = [1, 1]} : vector<4x200xf32> to vector<1x200xf32>
    %c3_137 = arith.constant 3 : index
    %c0_138 = arith.constant 0 : index
    %c0_139 = arith.constant 0 : index
    %172 = vector.load %arg8[%c3_137, %c0_138, %c0_139] : memref<4x200x512xbf16, #tpu.memory_space<vmem>>, vector<1x200x512xbf16>
    %173 = vector.shape_cast %172 : vector<1x200x512xbf16> to vector<200x512xbf16>
    %174 = arith.extf %173 : vector<200x512xbf16> to vector<200x512xf32>
    %cst_140 = arith.constant dense<0.000000e+00> : vector<1x512xf32>
    %175 = tpu.matmul %171, %174, %cst_140 {dimension_numbers = #tpu.dot_dimension_numbers<[1], [0], [0], [1], [0, 0, 1, 1], [], []>} : vector<1x200xf32>, vector<200x512xf32>, vector<1x512xf32> -> vector<1x512xf32>
    %176 = arith.addf %170, %175 : vector<1x512xf32>
    %cst_141 = arith.constant 0.000000e+00 : f32
    %177 = vector.broadcast %cst_141 : f32 to vector<1x512xf32>
    %178 = arith.maximumf %176, %177 : vector<1x512xf32>
    %c0_142 = arith.constant 0 : index
    %c0_143 = arith.constant 0 : index
    %179 = vector.load %arg10[%c0_142, %c0_143] : memref<512x128xbf16, #tpu.memory_space<vmem>>, vector<512x128xbf16>
    %180 = arith.extf %179 : vector<512x128xbf16> to vector<512x128xf32>
    %cst_144 = arith.constant dense<0.000000e+00> : vector<1x128xf32>
    %181 = tpu.matmul %178, %180, %cst_144 {dimension_numbers = #tpu.dot_dimension_numbers<[1], [0], [0], [1], [0, 0, 1, 1], [], []>} : vector<1x512xf32>, vector<512x128xf32>, vector<1x128xf32> -> vector<1x128xf32>
    %c0_145 = arith.constant 0 : index
    %c0_146 = arith.constant 0 : index
    %182 = vector.load %arg11[%c0_145, %c0_146] : memref<1x128xf32, #tpu.memory_space<vmem>>, vector<1x128xf32>
    %183 = arith.addf %181, %182 : vector<1x128xf32>
    %184 = tpu.iota {dimensions = array<i32: 1>} : vector<1x128xi32>
    %c10_i32 = arith.constant 10 : i32
    %185 = vector.broadcast %c10_i32 : i32 to vector<1x128xi32>
    %186 = arith.cmpi slt, %184, %185 : vector<1x128xi32>
    %cst_147 = arith.constant -1.000000e+30 : f32
    %187 = vector.broadcast %cst_147 : f32 to vector<1x128xf32>
    %188 = arith.select %186, %183, %187 : vector<1x128xi1>, vector<1x128xf32>
    %cst_148 = arith.constant dense<0xFF800000> : vector<1xf32>
    %189 = vector.multi_reduction <maximumf>, %188, %cst_148 [1] : vector<1x128xf32> to vector<1xf32>
    %190 = vector.shape_cast %189 : vector<1xf32> to vector<1x1xf32>
    %191 = vector.broadcast %190 : vector<1x1xf32> to vector<1x128xf32>
    %192 = arith.subf %188, %191 : vector<1x128xf32>
    %193 = math.exp %192 : vector<1x128xf32>
    %cst_149 = arith.constant dense<0.000000e+00> : vector<1xf32>
    %194 = vector.multi_reduction <add>, %193, %cst_149 [1] : vector<1x128xf32> to vector<1xf32>
    %195 = vector.shape_cast %194 : vector<1xf32> to vector<1x1xf32>
    %196 = math.log %195 : vector<1x1xf32>
    %197 = vector.broadcast %196 : vector<1x1xf32> to vector<1x128xf32>
    %198 = arith.subf %192, %197 : vector<1x128xf32>
    %c0_150 = arith.constant 0 : index
    %c0_151 = arith.constant 0 : index
    %c0_152 = arith.constant 0 : index
    %199 = vector.load %arg12[%c0_150, %c0_151, %c0_152] : memref<1x1x128xf32, #tpu.memory_space<vmem>>, vector<1x1x128xf32>
    %200 = vector.shape_cast %199 : vector<1x1x128xf32> to vector<1x128xf32>
    %201 = vector.shape_cast %198 : vector<1x128xf32> to vector<1x1x128xf32>
    tpu.vector_store %arg12[%c0_150, %c0_151, %c0_152], %201 {strides = array<i32>} : memref<1x1x128xf32, #tpu.memory_space<vmem>>, vector<1x1x128xf32>,
    return
  }
  func.func @transform_0(%arg0: i32) -> (i32, i32, i32) {
    %c0_i32 = arith.constant 0 : i32
    %c0_i32_0 = arith.constant 0 : i32
    %c0_i32_1 = arith.constant 0 : i32
    return %arg0, %c0_i32, %c0_i32_0 : i32, i32, i32
  }
  func.func @transform_1(%arg0: i32) -> (i32, i32, i32, i32) {
    %c0_i32 = arith.constant 0 : i32
    %c0_i32_0 = arith.constant 0 : i32
    %c0_i32_1 = arith.constant 0 : i32
    %c0_i32_2 = arith.constant 0 : i32
    %c0_i32_3 = arith.constant 0 : i32
    return %c0_i32, %c0_i32_0, %c0_i32_1, %c0_i32_2 : i32, i32, i32, i32
  }
  func.func @transform_2(%arg0: i32) -> (i32, i32) {
    %c0_i32 = arith.constant 0 : i32
    %c0_i32_0 = arith.constant 0 : i32
    %c0_i32_1 = arith.constant 0 : i32
    return %c0_i32, %c0_i32_0 : i32, i32
  }
  func.func @transform_3(%arg0: i32) -> (i32, i32, i32) {
    %c0_i32 = arith.constant 0 : i32
    %c0_i32_0 = arith.constant 0 : i32
    %c0_i32_1 = arith.constant 0 : i32
    %c0_i32_2 = arith.constant 0 : i32
    return %c0_i32, %c0_i32_0, %c0_i32_1 : i32, i32, i32
  }
  func.func @transform_4(%arg0: i32) -> (i32, i32, i32, i32) {
    %c0_i32 = arith.constant 0 : i32
    %c0_i32_0 = arith.constant 0 : i32
    %c0_i32_1 = arith.constant 0 : i32
    %c0_i32_2 = arith.constant 0 : i32
    %c0_i32_3 = arith.constant 0 : i32
    return %c0_i32, %c0_i32_0, %c0_i32_1, %c0_i32_2 : i32, i32, i32, i32
  }
  func.func @transform_5(%arg0: i32) -> (i32, i32) {
    %c0_i32 = arith.constant 0 : i32
    %c0_i32_0 = arith.constant 0 : i32
    %c0_i32_1 = arith.constant 0 : i32
    return %c0_i32, %c0_i32_0 : i32, i32
  }
  func.func @transform_6(%arg0: i32) -> (i32, i32, i32) {
    %c0_i32 = arith.constant 0 : i32
    %c0_i32_0 = arith.constant 0 : i32
    %c0_i32_1 = arith.constant 0 : i32
    %c0_i32_2 = arith.constant 0 : i32
    return %c0_i32, %c0_i32_0, %c0_i32_1 : i32, i32, i32
  }
  func.func @transform_7(%arg0: i32) -> (i32, i32, i32) {
    %c0_i32 = arith.constant 0 : i32
    %c0_i32_0 = arith.constant 0 : i32
    %c0_i32_1 = arith.constant 0 : i32
    %c0_i32_2 = arith.constant 0 : i32
    return %c0_i32, %c0_i32_0, %c0_i32_1 : i32, i32, i32
  }
  func.func @transform_8(%arg0: i32) -> (i32, i32) {
    %c0_i32 = arith.constant 0 : i32
    %c0_i32_0 = arith.constant 0 : i32
    %c0_i32_1 = arith.constant 0 : i32
    return %c0_i32, %c0_i32_0 : i32, i32
  }
  func.func @transform_9(%arg0: i32) -> (i32, i32) {
    %c0_i32 = arith.constant 0 : i32
    %c0_i32_0 = arith.constant 0 : i32
    %c0_i32_1 = arith.constant 0 : i32
    return %c0_i32, %c0_i32_0 : i32, i32
  }
  func.func @transform_10(%arg0: i32) -> (i32, i32) {
    %c0_i32 = arith.constant 0 : i32
    %c0_i32_0 = arith.constant 0 : i32
    %c0_i32_1 = arith.constant 0 : i32
    return %c0_i32, %c0_i32_0 : i32, i32
  }
  func.func @transform_11(%arg0: i32) -> (i32, i32, i32) {
    %c0_i32 = arith.constant 0 : i32
    %c0_i32_0 = arith.constant 0 : i32
    %c0_i32_1 = arith.constant 0 : i32
    return %arg0, %c0_i32, %c0_i32_0 : i32, i32, i32
  }
}

</mosaic_0001>

<bundles_post_ra>
// kernel: net_forward.1
= control target key start
LH: loop header
LB: loop body
LE: loop exit
PB: predicated region body
PF: predicated region fallthrough
CT: control target
= control target key end

     0   :  { %s8383_s0 = inlined_call_operand.vmem [shape: f32[2,28,28], index: 0, kind: input, shape index: {}]   ;;  %s8384_s1 = inlined_call_operand.vmem [shape: bf16[5,2,28,240], index: 1, kind: input, shape index: {}]   ;;  %s8385_s2 = inlined_call_operand.vmem [shape: f32[1,240], index: 2, kind: input, shape index: {}]   ;;  %s8386_s3 = inlined_call_operand.vmem [shape: f32[2,12,24], index: 3, kind: input, shape index: {}]   ;;  %s8387_s4 = inlined_call_operand.vmem [shape: bf16[5,2,240,200], index: 4, kind: input, shape index: {}]   ;;  %s8388_s5 = inlined_call_operand.vmem [shape: f32[1,200], index: 5, kind: input, shape index: {}]   ;;  %s8389_s6 = inlined_call_operand.vmem [shape: f32[2,4,8], index: 6, kind: input, shape index: {}]   ;;  %s8390_s7 = inlined_call_operand.vmem [shape: bf16[4,200,512], index: 7, kind: input, shape index: {}]   ;;  %s8391_s8 = inlined_call_operand.vmem [shape: f32[1,512], index: 8, kind: input, shape index: {}]   ;;  %s8392_s9 = inlined_call_operand.vmem [shape: bf16[512,128], index: 9, kind: input, shape index: {}]   ;;  %s8393_s10 = inlined_call_operand.vmem [shape: f32[1,128], index: 10, kind: input, shape index: {}]   ;;  %s8394_s11 = inlined_call_operand.hbm [shape: f32[2,1,128], index: 11, kind: output, shape index: {}]  }
   0x1   :  { %8397 = sst [smem:[#allocation10_spill]] %s8383_s0 }
   0x2   :  { %8398 = sst [smem:[#allocation11_spill]] %s8384_s1 }
   0x3   :  { %16 = vsyncpa [#allocation3], 0 }
   0x4   :  { %18 = vsyncpa [#allocation3 + $0x1], 0  ;;  %s6189_s17 = smov 0   ;;  %s6191_s18 = smov 0  }
   0x5   :  { %s6193_s19 = smov 0   ;;  %s6195_s20 = smov 0  }
   0x6 LB: > { %s6210_s21 = sadd.s32 4294967295, %s6124_s20   ;;  %s5247_s22 = sadd.s32 4294967294, %s6124_s20   ;;  %s6124_s20 = sphi %s6195_s20, %s8417_s20   ;;  %s6120_s19 = sphi %s6193_s19, %s8416_s19   ;;  %s6116_s18 = sphi %s6191_s18, %s8415_s18   ;;  %s6112_s17 = sphi %s6189_s17, %s8414_s17  }
   0x7   : > { %s6214_s23 = sadd.s32 1, %s6124_s20   ;;  %s267_s24 = sadd.s32 1, %s6120_s19 }
   0x8   : > { %s264_s25 = ssub.s32 %s6124_s20, %s6214_s23  ;;  %p277_p0 = scmp.ne.s32.totalorder %s6120_s19, %s6116_s18 }
   0x9   : > { %p265_p1 = scmp.eq.s32.totalorder %s264_s25, 0  ;;  %p278_p2 = scmp.eq.s32.totalorder %s6210_s21, 1 }
   0xa   : > { %p283_p3 = scmp.ne.s32.totalorder %s6116_s18, %s6112_s17  ;;  %p284_p4 = scmp.eq.s32.totalorder %s5247_s22, 1 }
   0xb   : > { %s6225_s26 = scalar_select %p265_p1, %s6120_s19, %s267_s24  }
   0xc   : > { %p6227_p5 = por %p278_p2, %p277_p0  ;;  %p6231_p6 = por %p284_p4, %p283_p3 }
   0xd   : > { %p5250_p7 = scmp.ge.s32.totalorder %s6124_s20, 1  ;;  %p340_p8 = scmp.lt.s32.totalorder %s6124_s20, 3 }
   0xf   : > { %p341_p9 = pnand %p5250_p7, %p340_p8 }
  0x11   : > { %344 = sbr.rel (%p341_p9) target bundleno = 2065 (0x811), region = 64 }
  0x16   : > { %s8401_s1 = sld [smem:[#allocation11_spill]]  ;;  %vm432_vm0 = vcmask 1043456   ;;  %p379_p10 = scmp.lt.s32.totalorder %s6210_s21, 1  ;;  %vm417_vm1 = vcmask 1046528   ;;  %vm425_vm2 = vcmask 228352   ;;  %v8395_v32 = vmov 0.0  }
  0x17   : > { %s8402_s0 = sld [smem:[#allocation10_spill]]  ;;  %503 = vmatprep.mubr.f32.mxu0 %v8395_v32  ;;  %598 = vmatprep.mubr.f32.mxu1 %v8395_v32  ;;  %vm630_vm3 = vcmask 1045504   ;;  %vm752_vm4 = vcmask 1044480   ;;  %vm1518_vm5 = vcmask 195584   ;;  %vm1904_vm6 = vcmask 916480   ;;  %s377_s25 = sand.u32 1, %s6116_s18  }
  0x18   : > { %s380_s16 = scalar_select %p379_p10, %s6210_s21, 1  ;;  %vm3389_vm7 = vcmask 64512   ;;  %vm3709_vm8 = vcmask 588800   ;;  %vm5165_vm10 = vcmask 1040384  }
  0x19   : > { %s378_s30 = scalar_lea.vmem [#allocation2], %s377_s25  ;;  %s6128_s24 = smov [#allocation2]  }
  0x1a   : > { %s5789_s22 = sshll.u32 %s380_s16, 5  ;;  %s5192_s12 = sshll.u32 %s378_s30, 4  ;;  %s5193_s12 = int_to_ptr.vmem [resolvable:$true] %s5192_s12 }
  0x1b   : > { %s5180_s16 = scalar_lea.sflag [#allocation3], %s377_s25 }
  0x1c   : > { %v5256_v0 = vld [vmem:[%s8401_s1 + $0x58] sm:$0x33]  ;;  %v5255_v2 = vld [vmem:[%s8401_s1 + $0x50] sm:$0xff]  ;;  %v5254_v8 = vld [vmem:[%s8401_s1 + $0x48] sm:$0xff] }
  0x1d   : > { %v391_v1 = vld [vmem:[%s8401_s1 + $0x18] sm:$0x33]  ;;  %v411_v3 = vunpack.c.l.bf16 %v5256_v0  ;;  %v412_v4 = vunpack.c.h.bf16 %v5256_v0  ;;  %v390_v7 = vld [vmem:[%s8401_s1 + $0x10] sm:$0xff]  ;;  %v389_v9 = vld [vmem:[%s8401_s1 + $0x8] sm:$0xff]  ;;  %v410_v10 = vunpack.c.h.bf16 %v5255_v2  ;;  %v409_v12 = vunpack.c.l.bf16 %v5255_v2  ;;  %s383_s29 = scalar_lea.vmem %s8402_s0, %s5789_s22  ;;  %s6064_s22 = scalar_lea.vmem %s5193_s12, 16 }
  0x1e   : > { %v398_v5 = vunpack.c.l.bf16 %v391_v1  ;;  %v399_v6 = vunpack.c.h.bf16 %v391_v1  ;;  %v397_v11 = vunpack.c.h.bf16 %v390_v7  ;;  %v396_v13 = vunpack.c.l.bf16 %v390_v7  ;;  %v5253_v14 = vld [vmem:[%s8401_s1 + $0x40] sm:$0xff]  ;;  %v5270_v23 = vld [vmem:[%s8401_s1 + $0x98] sm:$0x33]  ;;  %v6278_v27 = vld [vmem:[%s383_s29 + $0x8] sm:$0xff]  ;;  %p6065_p11 = scmp.ne.s32.totalorder %s5193_s12, %s6064_s22  ;;  %s6068_s0 = sshll.u32 %s6128_s24, 4  ;;  %s6069_s0 = int_to_ptr.vmem [resolvable:$false] %s6068_s0 }
  0x1f   : > { %v388_v15 = vld [vmem:[%s8401_s1] sm:$0xff]  ;;  %5257 = vmatprep.subr.msk.mxu0 %vm432_vm0, %v412_v4  ;;  %v408_v16 = vunpack.c.h.bf16 %v5254_v8  ;;  %v395_v17 = vunpack.c.h.bf16 %v389_v9  ;;  %v407_v18 = vunpack.c.l.bf16 %v5254_v8  ;;  %v394_v19 = vunpack.c.l.bf16 %v389_v9  ;;  %v5279_v24 = vld [vmem:[%s8401_s1 + $0xd8] sm:$0x33]  ;;  %v6280_v28 = vld [vmem:[%s383_s29 + $0x10] sm:$0xff]  ;;  %p6071_p0 = scmp.lt.s32.totalorder %s5193_s12, %s6069_s0 }
  0x20   : > { %5262 = vmatprep.subr.msk.mxu1 %vm432_vm0, %v399_v6  ;;  %5258 = vmatpush1.msk.msra.mxu0 %vm432_vm0, %v411_v3  ;;  %v406_v20 = vunpack.c.h.bf16 %v5253_v14  ;;  %v393_v21 = vunpack.c.h.bf16 %v388_v15  ;;  %v405_v22 = vunpack.c.l.bf16 %v5253_v14  ;;  %v392_v25 = vunpack.c.l.bf16 %v388_v15  ;;  %v6276_v26 = vld [vmem:[%s383_s29] sm:$0xff]  ;;  %v5269_v36 = vld [vmem:[%s8401_s1 + $0x90] sm:$0xff]  ;;  %v6295_v38 = vld [vmem:[%s383_s29 + $0x18] sm:$0xf]  ;;  %s5786_s29 = sshll.u32 %s6210_s21, 4  ;;  %p6066_p12 = pnand %p6065_p11, %p6227_p5 }
  0x21   : > { %5263 = vmatpush1.msk.msra.mxu1 %vm432_vm0, %v398_v5  ;;  %465 = vmatprep.subr.mxu0 %v410_v10  ;;  %v418_v29 = vrot.slane %v6276_v26, 1  ;;  %v419_v30 = vrot.slane %v6278_v27, 1  ;;  %v421_v31 = vrot.slane %v6280_v28, 1  ;;  %v629_v34 = vunpack.c.h.bf16 %v5270_v23  ;;  %v5278_v37 = vld [vmem:[%s8401_s1 + $0xd0] sm:$0xff]  ;;  %v5268_v45 = vld [vmem:[%s8401_s1 + $0x88] sm:$0xff]  ;;  %v5267_v49 = vld [vmem:[%s8401_s1 + $0x80] sm:$0xff]  ;;  %s5190_s15 = scalar_lea.hbm %s8394_s11, %s5786_s29 }
  0x22   : > { %560 = vmatprep.subr.mxu1 %v397_v11  ;;  %466 = vmatpush1.msra.mxu0 %v409_v12  ;;  %v751_v35 = vunpack.c.h.bf16 %v5279_v24  ;;  %v628_v39 = vunpack.c.l.bf16 %v5270_v23  ;;  %v750_v40 = vunpack.c.l.bf16 %v5279_v24  ;;  %v627_v42 = vunpack.c.h.bf16 %v5269_v36  ;;  %v5277_v46 = vld [vmem:[%s8401_s1 + $0xc8] sm:$0xff]  ;;  %v5276_v50 = vld [vmem:[%s8401_s1 + $0xc0] sm:$0xff]  ;;  %v5288_v0 = vld [vmem:[%s8401_s1 + $0x118] sm:$0x33]  ;;  %p6067_p13 = pneg %p6066_p12  ;;  %s6070_s21 = scalar_lea.vmem %s6069_s0, 32 }
  0x23   : > { %561 = vmatpush1.msra.mxu1 %v396_v13  ;;  %467 = vmatprep.subr.mxu0 %v408_v16  ;;  %v6287_v33 = vsel %vm417_vm1, %v418_v29, %v419_v30  ;;  %v6305_v41 = vsel %vm417_vm1, %v419_v30, %v421_v31  ;;  %v749_v43 = vunpack.c.h.bf16 %v5278_v37  ;;  %v423_v44 = vrot.slane %v6295_v38, 1  ;;  %v5301_v1 = vld [vmem:[%s8401_s1 + $0x78] sm:$0x33]  ;;  %v5287_v8 = vld [vmem:[%s8401_s1 + $0x110] sm:$0xff]  ;;  %v5298_v23 = vld [vmem:[%s8401_s1 + $0x60] sm:$0xff]  ;;  %p6072_p1 = scmp.lt.s32.totalorder %s6070_s21, %s6064_s22 }
  0x24   : > { %562 = vmatprep.subr.mxu1 %v395_v17  ;;  %468 = vmatpush1.msra.mxu0 %v407_v18  ;;  %v626_v47 = vunpack.c.l.bf16 %v5269_v36  ;;  %v748_v48 = vunpack.c.l.bf16 %v5278_v37  ;;  %v625_v52 = vunpack.c.h.bf16 %v5268_v45  ;;  %v747_v53 = vunpack.c.h.bf16 %v5277_v46  ;;  %v5300_v9 = vld [vmem:[%s8401_s1 + $0x70] sm:$0xff]  ;;  %v5286_v18 = vld [vmem:[%s8401_s1 + $0x108] sm:$0xff] }
  0x25   : > { %563 = vmatpush1.msra.mxu1 %v394_v19  ;;  %469 = vmatprep.subr.mxu0 %v406_v20  ;;  %v6329_v51 = vsel %vm417_vm1, %v421_v31, %v423_v44  ;;  %v624_v54 = vunpack.c.l.bf16 %v5268_v45  ;;  %v746_v55 = vunpack.c.l.bf16 %v5277_v46  ;;  %v623_v56 = vunpack.c.h.bf16 %v5267_v49  ;;  %v5299_v19 = vld [vmem:[%s8401_s1 + $0x68] sm:$0xff]  ;;  %v5315_v44 = vld [vmem:[%s8401_s1 + $0xb8] sm:$0x33]  ;;  %p6073_p2 = por %p6072_p1, %p6071_p0 }
  0x26   : > { %564 = vmatprep.subr.mxu1 %v393_v21  ;;  %470 = vmatpush1.msra.mxu0 %v405_v22  ;;  %v745_v57 = vunpack.c.h.bf16 %v5276_v50  ;;  %v631_v58 = vrot.slane %v6276_v26, 2  ;;  %v632_v59 = vrot.slane %v6278_v27, 2  ;;  %v753_v60 = vrot.slane %v6276_v26, 3  ;;  %v5285_v22 = vld [vmem:[%s8401_s1 + $0x100] sm:$0xff] }
  0x27   : > { %565 = vmatpush1.msra.mxu1 %v392_v25  ;;  %5259 = vmatmul.mubr.msk.f32.vlgmr.msra.gmra.mxu0 %vm425_vm2, %v6287_v33  ;;  %v754_v61 = vrot.slane %v6278_v27, 3  ;;  %v622_v62 = vunpack.c.l.bf16 %v5267_v49  ;;  %v744_v63 = vunpack.c.l.bf16 %v5276_v50  ;;  %v634_v2 = vrot.slane %v6280_v28, 2  ;;  %v5296_v49 = vld [vmem:[%s8401_s1 + $0x30] sm:$0xff]  ;;  %p6074_p3 = pnand %p6073_p2, %p6067_p13 }
  0x28   : > { %5264 = vmatmul.mubr.msk.f32.vlgmr.msra.gmra.mxu1 %vm425_vm2, %v6276_v26  ;;  %509 = vmatprep.mubr.f32.mxu0 %v8395_v32  ;;  %v756_v3 = vrot.slane %v6280_v28, 3  ;;  %v6350_v4 = vsel %vm630_vm3, %v631_v58, %v632_v59  ;;  %v873_v6 = vunpack.c.h.bf16 %v5288_v0  ;;  %v1007_v7 = vunpack.c.h.bf16 %v5301_v1  ;;  %v5314_v50 = vld [vmem:[%s8401_s1 + $0xb0] sm:$0xff]  ;;  %v5295_v58 = vld [vmem:[%s8401_s1 + $0x28] sm:$0xff] }
  0x29   : > { %604 = vmatprep.mubr.f32.mxu1 %v8395_v32  ;;  %5271 = vmatprep.subr.msk.mxu0 %vm432_vm0, %v629_v34  ;;  %v6353_v5 = vsel %vm752_vm4, %v753_v60, %v754_v61  ;;  %v872_v10 = vunpack.c.l.bf16 %v5288_v0  ;;  %v1006_v11 = vunpack.c.l.bf16 %v5301_v1  ;;  %v6368_v12 = vsel %vm630_vm3, %v632_v59, %v634_v2 }
  0x2a   : > { %5280 = vmatprep.subr.msk.mxu1 %vm432_vm0, %v751_v35  ;;  %5272 = vmatpush1.msk.msra.mxu0 %vm432_vm0, %v628_v39  ;;  %v6371_v13 = vsel %vm752_vm4, %v754_v61, %v756_v3  ;;  %v871_v14 = vunpack.c.h.bf16 %v5287_v8  ;;  %v1005_v15 = vunpack.c.h.bf16 %v5300_v9  ;;  %v636_v16 = vrot.slane %v6295_v38, 2  ;;  %v5312_v61 = vld [vmem:[%s8401_s1 + $0xa0] sm:$0xff] }
  0x2b   : > { %5281 = vmatpush1.msk.msra.mxu1 %vm432_vm0, %v750_v40  ;;  %5260 = vmatmul.mubr.msk.f32.gmra.mxu0 %vm425_vm2, %v6305_v41  ;;  %v758_v17 = vrot.slane %v6295_v38, 3  ;;  %v870_v20 = vunpack.c.l.bf16 %v5287_v8  ;;  %v1004_v21 = vunpack.c.l.bf16 %v5300_v9  ;;  %v869_v29 = vunpack.c.h.bf16 %v5286_v18  ;;  %v5324_v8 = vld [vmem:[%s8401_s1 + $0xf8] sm:$0x33] }
  0x2c   : > { %5265 = vmatmul.mubr.msk.f32.gmra.mxu1 %vm425_vm2, %v6278_v27  ;;  %676 = vmatprep.subr.mxu0 %v627_v42  ;;  %v6398_v24 = vsel %vm630_vm3, %v634_v2, %v636_v16  ;;  %v1003_v30 = vunpack.c.h.bf16 %v5299_v19  ;;  %v868_v31 = vunpack.c.l.bf16 %v5286_v18  ;;  %v1002_v34 = vunpack.c.l.bf16 %v5299_v19  ;;  %v5333_v9 = vld [vmem:[%s8401_s1 + $0x138] sm:$0x33]  ;;  %v5322_v19 = vld [vmem:[%s8401_s1 + $0xe8] sm:$0xff] }
  0x2d   : > { %798 = vmatprep.subr.mxu1 %v749_v43  ;;  %515 = vmatprep.mubr.f32.mxu0 %v8395_v32  ;;  %v6401_v25 = vsel %vm752_vm4, %v756_v3, %v758_v17  ;;  %v867_v35 = vunpack.c.h.bf16 %v5285_v22  ;;  %v1001_v36 = vunpack.c.h.bf16 %v5298_v23  ;;  %v874_v37 = vrot.slane %v6276_v26, 4  ;;  %v5297_v43 = vld [vmem:[%s8401_s1 + $0x38] sm:$0x33] }
  0x2e   : > { %610 = vmatprep.mubr.f32.mxu1 %v8395_v32  ;;  %677 = vmatpush1.msra.mxu0 %v626_v47  ;;  %v875_v39 = vrot.slane %v6278_v27, 4  ;;  %v866_v40 = vunpack.c.l.bf16 %v5285_v22  ;;  %v1000_v42 = vunpack.c.l.bf16 %v5298_v23  ;;  %v877_v46 = vrot.slane %v6280_v28, 4  ;;  %v5330_v22 = vld [vmem:[%s8401_s1 + $0x120] sm:$0xff] }
  0x2f   : > { %799 = vmatpush1.msra.mxu1 %v748_v48  ;;  %5261 = vmatmul.mubr.msk.f32.gmra.mxu0 %vm425_vm2, %v6329_v51  ;;  %v994_v47 = vunpack.c.h.bf16 %v5297_v43  ;;  %v1198_v48 = vunpack.c.h.bf16 %v5315_v44  ;;  %v991_v59 = vunpack.c.l.bf16 %v5296_v49  ;;  %v1195_v60 = vunpack.c.l.bf16 %v5314_v50 }
  0x30   : > { %5266 = vmatmul.mubr.msk.f32.gmra.mxu1 %vm425_vm2, %v6280_v28  ;;  %678 = vmatprep.subr.mxu0 %v625_v52  ;;  %v6418_v45 = vsel %vm432_vm0, %v874_v37, %v875_v39  ;;  %v993_v52 = vunpack.c.l.bf16 %v5297_v43  ;;  %v1192_v3 = vunpack.c.h.bf16 %v5312_v61  ;;  %v1413_v16 = vunpack.c.l.bf16 %v5333_v9 }
  0x31   : > { %800 = vmatprep.subr.mxu1 %v747_v53  ;;  %679 = vmatpush1.msra.mxu0 %v624_v54  ;;  %v1197_v53 = vunpack.c.l.bf16 %v5315_v44  ;;  %v6436_v54 = vsel %vm432_vm0, %v875_v39, %v877_v46  ;;  %v1302_v23 = vunpack.c.h.bf16 %v5322_v19 }
  0x32   : > { %801 = vmatpush1.msra.mxu1 %v746_v55  ;;  %680 = vmatprep.subr.mxu0 %v623_v56  ;;  %v992_v55 = vunpack.c.h.bf16 %v5296_v49  ;;  %v1196_v56 = vunpack.c.h.bf16 %v5314_v50 }
  0x33   : > { %802 = vmatprep.subr.mxu1 %v745_v57  ;;  %681 = vmatpush1.msra.mxu0 %v622_v62  ;;  %v879_v57 = vrot.slane %v6295_v38, 4  ;;  %v5294_v38 = vld [vmem:[%s8401_s1 + $0x20] sm:$0xff] }
  0x34   : > { %714 = vmatprep.mubr.f32.mxu0 %v8395_v32  ;;  %803 = vmatpush1.msra.mxu1 %v744_v63  ;;  %v990_v63 = vunpack.c.h.bf16 %v5295_v58  ;;  %v988_v2 = vunpack.c.h.bf16 %v5294_v38 }
  0x35   : > { %836 = vmatprep.mubr.f32.mxu1 %v8395_v32  ;;  %5273 = vmatmul.mubr.msk.f32.vlgmr.msra.gmra.mxu0 %vm425_vm2, %v6350_v4  ;;  %v6460_v62 = vsel %vm432_vm0, %v877_v46, %v879_v57 }
  0x36   : > { %5282 = vmatmul.mubr.msk.f32.vlgmr.msra.gmra.mxu1 %vm425_vm2, %v6353_v5  ;;  %720 = vmatprep.mubr.f32.mxu0 %v8395_v32 }
  0x37   : > { %842 = vmatprep.mubr.f32.mxu1 %v8395_v32  ;;  %5289 = vmatprep.subr.msk.mxu0 %vm432_vm0, %v873_v6  ;;  %v987_v6 = vunpack.c.l.bf16 %v5294_v38 }
  0x38   : > { %5302 = vmatprep.subr.msk.mxu1 %vm432_vm0, %v1007_v7  ;;  %5290 = vmatpush1.msk.msra.mxu0 %vm432_vm0, %v872_v10  ;;  %v1191_v7 = vunpack.c.l.bf16 %v5312_v61  ;;  %v1414_v10 = vunpack.c.h.bf16 %v5333_v9 }
  0x39   : > { %5303 = vmatpush1.msk.msra.mxu1 %vm432_vm0, %v1006_v11  ;;  %5274 = vmatmul.mubr.msk.f32.gmra.mxu0 %vm425_vm2, %v6368_v12  ;;  %v5323_v11 = vld [vmem:[%s8401_s1 + $0xf0] sm:$0xff] }
  0x3a   : > { %5283 = vmatmul.mubr.msk.f32.gmra.mxu1 %vm425_vm2, %v6371_v13  ;;  %919 = vmatprep.subr.mxu0 %v871_v14  ;;  %v5332_v14 = vld [vmem:[%s8401_s1 + $0x130] sm:$0xff]  ;;  %v1304_v17 = vunpack.c.h.bf16 %v5323_v11 }
  0x3b   : > { %1040 = vmatprep.subr.mxu1 %v1005_v15  ;;  %726 = vmatprep.mubr.f32.mxu0 %v8395_v32  ;;  %v1305_v15 = vunpack.c.l.bf16 %v5324_v8  ;;  %v1412_v18 = vunpack.c.h.bf16 %v5332_v14 }
  0x3c   : > { %848 = vmatprep.mubr.f32.mxu1 %v8395_v32  ;;  %920 = vmatpush1.msra.mxu0 %v870_v20  ;;  %v1411_v20 = vunpack.c.l.bf16 %v5332_v14 }
  0x3d   : > { %1041 = vmatpush1.msra.mxu1 %v1004_v21  ;;  %5275 = vmatmul.mubr.msk.f32.gmra.mxu0 %vm425_vm2, %v6398_v24  ;;  %v5321_v21 = vld [vmem:[%s8401_s1 + $0xe0] sm:$0xff] }
  0x3e   : > { %5284 = vmatmul.mubr.msk.f32.gmra.mxu1 %vm425_vm2, %v6401_v25  ;;  %921 = vmatprep.subr.mxu0 %v869_v29 }
  0x3f   : > { %1042 = vmatprep.subr.mxu1 %v1003_v30  ;;  %922 = vmatpush1.msra.mxu0 %v868_v31  ;;  %v1408_v31 = vunpack.c.h.bf16 %v5330_v22 }
  0x40   : > { %1043 = vmatpush1.msra.mxu1 %v1002_v34  ;;  %923 = vmatprep.subr.mxu0 %v867_v35  ;;  %v1299_v34 = vunpack.c.l.bf16 %v5321_v21  ;;  %v1407_v35 = vunpack.c.l.bf16 %v5330_v22 }
  0x41   : > { %1044 = vmatprep.subr.mxu1 %v1001_v36  ;;  %924 = vmatpush1.msra.mxu0 %v866_v40 }
  0x42   : > { %957 = vmatprep.mubr.f32.mxu0 %v8395_v32  ;;  %1045 = vmatpush1.msra.mxu1 %v1000_v42 }
  0x43   : > { %1078 = vmatprep.mubr.f32.mxu1 %v8395_v32  ;;  %5291 = vmatmul.mubr.msk.f32.vlgmr.msra.gmra.mxu0 %vm425_vm2, %v6418_v45 }
  0x44   : > { %5304 = vmatmul.mubr.msk.f32.vlgmr.msra.gmra.mxu1 %vm425_vm2, %v6287_v33  ;;  %963 = vmatprep.mubr.f32.mxu0 %v8395_v32  ;;  %v5313_v33 = vld [vmem:[%s8401_s1 + $0xa8] sm:$0xff] }
  0x45   : > { %1084 = vmatprep.mubr.f32.mxu1 %v8395_v32  ;;  %5307 = vmatprep.subr.msk.mxu0 %vm432_vm0, %v994_v47  ;;  %v1194_v0 = vunpack.c.h.bf16 %v5313_v33  ;;  %v1193_v1 = vunpack.c.l.bf16 %v5313_v33 }
  0x46   : > { %5316 = vmatprep.subr.msk.mxu1 %vm432_vm0, %v1198_v48  ;;  %5308 = vmatpush1.msk.msra.mxu0 %vm432_vm0, %v993_v52 }
  0x47   : > { %5317 = vmatpush1.msk.msra.mxu1 %vm432_vm0, %v1197_v53  ;;  %5292 = vmatmul.mubr.msk.f32.gmra.mxu0 %vm425_vm2, %v6436_v54 }
  0x48   : > { %5305 = vmatmul.mubr.msk.f32.gmra.mxu1 %vm425_vm2, %v6305_v41  ;;  %1129 = vmatprep.subr.mxu0 %v992_v55  ;;  %v989_v41 = vunpack.c.l.bf16 %v5295_v58 }
  0x49   : > { %1231 = vmatprep.subr.mxu1 %v1196_v56  ;;  %969 = vmatprep.mubr.f32.mxu0 %v8395_v32 }
  0x4a   : > { %1090 = vmatprep.mubr.f32.mxu1 %v8395_v32  ;;  %1130 = vmatpush1.msra.mxu0 %v991_v59 }
  0x4b   : > { %1232 = vmatpush1.msra.mxu1 %v1195_v60  ;;  %5293 = vmatmul.mubr.msk.f32.gmra.mxu0 %vm425_vm2, %v6460_v62 }
  0x4c   : > { %5306 = vmatmul.mubr.msk.f32.gmra.mxu1 %vm425_vm2, %v6329_v51  ;;  %1131 = vmatprep.subr.mxu0 %v990_v63  ;;  %v1306_v51 = vunpack.c.h.bf16 %v5324_v8 }
  0x4d   : > { %1233 = vmatprep.subr.mxu1 %v1194_v0  ;;  %1132 = vmatpush1.msra.mxu0 %v989_v41 }
  0x4e   : > { %1234 = vmatpush1.msra.mxu1 %v1193_v1  ;;  %1133 = vmatprep.subr.mxu0 %v988_v2 }
  0x4f   : > { %1235 = vmatprep.subr.mxu1 %v1192_v3  ;;  %1134 = vmatpush1.msra.mxu0 %v987_v6 }
  0x50   : > { %1167 = vmatprep.mubr.f32.mxu0 %v8395_v32  ;;  %1236 = vmatpush1.msra.mxu1 %v1191_v7 }
  0x51   : > { %1269 = vmatprep.mubr.f32.mxu1 %v8395_v32  ;;  %5309 = vmatmul.mubr.msk.f32.vlgmr.msra.gmra.mxu0 %vm425_vm2, %v6276_v26  ;;  %v5331_v26 = vld [vmem:[%s8401_s1 + $0x128] sm:$0xff] }
  0x52   : > { %5318 = vmatmul.mubr.msk.f32.vlgmr.msra.gmra.mxu1 %vm425_vm2, %v6350_v4  ;;  %1173 = vmatprep.mubr.f32.mxu0 %v8395_v32  ;;  %v1303_v4 = vunpack.c.l.bf16 %v5323_v11  ;;  %v1410_v29 = vunpack.c.h.bf16 %v5331_v26  ;;  %v1409_v30 = vunpack.c.l.bf16 %v5331_v26 }
  0x53   : > { %1275 = vmatprep.mubr.f32.mxu1 %v8395_v32  ;;  %5325 = vmatprep.subr.msk.mxu0 %vm432_vm0, %v1306_v51 }
  0x54   : > { %5334 = vmatprep.subr.msk.mxu1 %vm432_vm0, %v1414_v10  ;;  %5326 = vmatpush1.msk.msra.mxu0 %vm432_vm0, %v1305_v15 }
  0x55   : > { %5335 = vmatpush1.msk.msra.mxu1 %vm432_vm0, %v1413_v16  ;;  %5310 = vmatmul.mubr.msk.f32.gmra.mxu0 %vm425_vm2, %v6278_v27  ;;  %v1301_v27 = vunpack.c.l.bf16 %v5322_v19 }
  0x56   : > { %5319 = vmatmul.mubr.msk.f32.gmra.mxu1 %vm425_vm2, %v6368_v12  ;;  %1339 = vmatprep.subr.mxu0 %v1304_v17  ;;  %v1300_v12 = vunpack.c.h.bf16 %v5321_v21 }
  0x57   : > { %1447 = vmatprep.subr.mxu1 %v1412_v18  ;;  %1179 = vmatprep.mubr.f32.mxu0 %v8395_v32 }
  0x58   : > { %1281 = vmatprep.mubr.f32.mxu1 %v8395_v32  ;;  %1340 = vmatpush1.msra.mxu0 %v1303_v4 }
  0x59   : > { %1448 = vmatpush1.msra.mxu1 %v1411_v20  ;;  %5311 = vmatmul.mubr.msk.f32.gmra.mxu0 %vm425_vm2, %v6280_v28 }
  0x5a   : > { %5320 = vmatmul.mubr.msk.f32.gmra.mxu1 %vm425_vm2, %v6398_v24  ;;  %1341 = vmatprep.subr.mxu0 %v1302_v23 }
  0x5b   : > { %1449 = vmatprep.subr.mxu1 %v1410_v29  ;;  %1342 = vmatpush1.msra.mxu0 %v1301_v27 }
  0x5c   : > { %1450 = vmatpush1.msra.mxu1 %v1409_v30  ;;  %1343 = vmatprep.subr.mxu0 %v1300_v12 }
  0x5d   : > { %1451 = vmatprep.subr.mxu1 %v1408_v31  ;;  %1344 = vmatpush1.msra.mxu0 %v1299_v34 }
  0x5e   : > { %1377 = vmatprep.mubr.f32.mxu0 %v8395_v32  ;;  %1452 = vmatpush1.msra.mxu1 %v1407_v35 }
  0x5f   : > { %1485 = vmatprep.mubr.f32.mxu1 %v8395_v32  ;;  %5327 = vmatmul.mubr.msk.f32.vlgmr.msra.gmra.mxu0 %vm425_vm2, %v6353_v5 }
  0x60   : > { %5336 = vmatmul.mubr.msk.f32.vlgmr.msra.gmra.mxu1 %vm425_vm2, %v6418_v45  ;;  %1383 = vmatprep.mubr.f32.mxu0 %v8395_v32 }
  0x61   : > { %1491 = vmatprep.mubr.f32.mxu1 %v8395_v32 }
  0x63   : > { %5328 = vmatmul.mubr.msk.f32.gmra.mxu0 %vm425_vm2, %v6371_v13 }
  0x64   : > { %5337 = vmatmul.mubr.msk.f32.gmra.mxu1 %vm425_vm2, %v6436_v54  ;;  %1389 = vmatprep.mubr.f32.mxu0 %v8395_v32 }
  0x65   : > { %1497 = vmatprep.mubr.f32.mxu1 %v8395_v32 }
  0x67   : > { %5329 = vmatmul.mubr.msk.f32.gmra.mxu0 %vm425_vm2, %v6401_v25 }
  0x68   : > { %5338 = vmatmul.mubr.msk.f32.gmra.mxu1 %vm425_vm2, %v6460_v62  ;;  %1589 = vmatprep.mubr.f32.mxu0 %v8395_v32 }
  0x69   : > { %1675 = vmatprep.mubr.f32.mxu1 %v8395_v32 }
  0xe7   : > { %v6534_v28 = vpop.f32.mrf.mxu0 }
  0xe8   : > { %v6536_v5 = vpop.f32.mrf.mxu1 }
  0xe9   : > { %v6538_v13 = vpop.f32.mrf.mxu0 }
  0xea   : > { %v602_v24 = vpop.f32.mrf.mxu1 }
  0xeb   : > { %v6540_v36 = vpop.f32.mrf.mxu0 }
  0xec   : > { %v6542_v37 = vpop.f32.mrf.mxu1 }
  0xed   : > { %v513_v39 = vpop.f32.mrf.mxu0 }
  0xee   : > { %v608_v25 = vpop.f32.mrf.mxu1 }
  0xef   : > { %v517_v40 = vpop.f32.mrf.mxu0  ;;  %v609_v31 = vadd.f32 %v608_v25, %v513_v39 }
  0xf0   : > { %v612_v42 = vpop.f32.mrf.mxu1 }
  0xf1   : > { %v519_v43 = vpop.f32.mrf.mxu0  ;;  %v613_v34 = vadd.f32 %v612_v42, %v517_v40  ;;  %v601_v40 = vadd.f32 %v6536_v5, %v6534_v28 }
  0xf2   : > { %v614_v44 = vpop.f32.mrf.mxu1 }
  0xf3   : > { %v615_v27 = vadd.f32 %v614_v44, %v519_v43 }
  0xf5   : > { %v6544_v45 = vpop.f32.mrf.mxu0 }
  0xf6   : > { %v6546_v46 = vpop.f32.mrf.mxu1 }
  0xf7   : > { %8403 = vst [vmem:[#allocation5_spill] sm:$0xff] %v6546_v46  ;;  %v6548_v47 = vpop.f32.mrf.mxu0 }
  0xf8   : > { %v6550_v48 = vpop.f32.mrf.mxu1 }
  0xf9   : > { %v6552_v49 = vpop.f32.mrf.mxu0 }
  0xfa   : > { %v6554_v50 = vpop.f32.mrf.mxu1 }
  0xfb   : > { %v724_v52 = vpop.f32.mrf.mxu0 }
  0xfc   : > { %v6556_v53 = vpop.f32.mrf.mxu1 }
  0xfd   : > { %v728_v54 = vpop.f32.mrf.mxu0 }
  0xfe   : > { %v6558_v55 = vpop.f32.mrf.mxu1 }
  0xff   : > { %v730_v56 = vpop.f32.mrf.mxu0 }
 0x100   : > { %v852_v57 = vpop.f32.mrf.mxu1 }
 0x103   : > { %v6560_v58 = vpop.f32.mrf.mxu0 }
 0x104   : > { %8404 = vst [vmem:[#allocation6_spill] sm:$0xff] %v6560_v58  ;;  %v1080_v33 = vpop.f32.mrf.mxu1 }
 0x105   : > { %v6562_v59 = vpop.f32.mrf.mxu0 }
 0x106   : > { %8405 = vst [vmem:[#allocation7_spill] sm:$0xff] %v6562_v59  ;;  %v1082_v60 = vpop.f32.mrf.mxu1  ;;  %v603_v59 = vadd.f32 %v602_v24, %v6538_v13 }
 0x107   : > { %v6564_v38 = vpop.f32.mrf.mxu0 }
 0x108   : > { %8406 = vst [vmem:[#allocation8_spill] sm:$0xff] %v6564_v38  ;;  %v1086_v61 = vpop.f32.mrf.mxu1  ;;  %v738_v38 = vadd.f32 %v730_v56, %v615_v27 }
 0x109   : > { %v6566_v62 = vpop.f32.mrf.mxu0 }
 0x10a   : > { %8407 = vst [vmem:[#allocation9_spill] sm:$0xff] %v6566_v62  ;;  %v1088_v63 = vpop.f32.mrf.mxu1 }
 0x10b   : > { %v6568_v0 = vpop.f32.mrf.mxu0 }
 0x10c   : > { %v1092_v41 = vpop.f32.mrf.mxu1 }
 0x10d   : > { %v973_v1 = vpop.f32.mrf.mxu0 }
 0x10e   : > { %v1094_v2 = vpop.f32.mrf.mxu1 }
 0x111   : > { %v1169_v3 = vpop.f32.mrf.mxu0 }
 0x112   : > { %v1271_v6 = vpop.f32.mrf.mxu1  ;;  %v1170_v35 = vadd.f32 %v1169_v3, %v1080_v33  ;;  %v734_v33 = vadd.f32 %v6548_v47, %v603_v59  ;;  %v8408_v59 = vld [vmem:[#allocation9_spill] sm:$0xff] }
 0x113   : > { %v1171_v7 = vpop.f32.mrf.mxu0 }
 0x114   : > { %v1273_v8 = vpop.f32.mrf.mxu1  ;;  %v1172_v30 = vadd.f32 %v1171_v7, %v1082_v60  ;;  %v1288_v24 = vadd.f32 %v1271_v6, %v1170_v35  ;;  %v1517_v35 = vld [vmem:[%s8386_s3 + $0x8] sm:$0xf] }
 0x115   : > { %v1175_v9 = vpop.f32.mrf.mxu0 }
 0x116   : > { %v1277_v51 = vpop.f32.mrf.mxu1  ;;  %v1176_v22 = vadd.f32 %v1175_v9, %v1086_v61  ;;  %v737_v61 = vadd.f32 %v728_v54, %v613_v34  ;;  %v1289_v44 = vadd.f32 %v1273_v8, %v1172_v30  ;;  %v733_v54 = vadd.f32 %v6544_v45, %v601_v40  ;;  %v1723_v40 = vld [vmem:[%s8387_s4 + $0x58] sm:$0xff] }
 0x117   : > { %v1177_v10 = vpop.f32.mrf.mxu0  ;;  %v8413_v34 = vmov 0.0  }
 0x118   : > { %v1279_v11 = vpop.f32.mrf.mxu1  ;;  %v1178_v20 = vadd.f32 %v1177_v10, %v1088_v63  ;;  %v607_v63 = vadd.f32 %v6542_v37, %v6540_v36  ;;  %v1290_v9 = vadd.f32 %v1277_v51, %v1176_v22  ;;  %v860_v36 = vadd.f32 %v852_v57, %v738_v38  ;;  %v1726_v22 = vld [vmem:[%s8387_s4 + $0x70] sm:$0xff] }
 0x119   : > { %v1181_v14 = vpop.f32.mrf.mxu0  ;;  %v856_v57 = vadd.f32 %v6550_v48, %v734_v33  ;;  %v1727_v48 = vld [vmem:[%s8387_s4 + $0x78] sm:$0xff] }
 0x11a   : > { %v1283_v15 = vpop.f32.mrf.mxu1  ;;  %v1182_v21 = vadd.f32 %v1181_v14, %v1092_v41  ;;  %v1291_v46 = vadd.f32 %v1279_v11, %v1178_v20  ;;  %v736_v41 = vadd.f32 %v724_v52, %v609_v31  ;;  %v735_v13 = vadd.f32 %v6552_v49, %v607_v63  ;;  %v8410_v11 = vld [vmem:[#allocation8_spill] sm:$0xff]  ;;  %v5341_v20 = vld [vmem:[%s8386_s3 + $0x10] sm:$0xff]  ;;  %v5358_v31 = vld [vmem:[%s8387_s4 + $0x248] sm:$0xff] }
 0x11b   : > { %v1183_v16 = vpop.f32.mrf.mxu0  ;;  %v981_v28 = vadd.f32 %v973_v1, %v860_v36  ;;  %v8411_v1 = vld [vmem:[#allocation7_spill] sm:$0xff]  ;;  %v1772_v27 = vunpack.c.l.bf16 %v1727_v48 }
 0x11c   : > { %v1285_v17 = vpop.f32.mrf.mxu1  ;;  %v1184_v12 = vadd.f32 %v1183_v16, %v1094_v2  ;;  %v1292_v62 = vadd.f32 %v1283_v15, %v1182_v21  ;;  %v859_v2 = vadd.f32 %v6558_v55, %v737_v61  ;;  %v857_v6 = vadd.f32 %v6554_v50, %v735_v13  ;;  %v8409_v55 = vld [vmem:[#allocation5_spill] sm:$0xff]  ;;  %v8412_v50 = vld [vmem:[#allocation6_spill] sm:$0xff]  ;;  %v5342_v63 = vld [vmem:[%s8386_s3 + $0x18] sm:$0xf] }
 0x11d   : > { %v855_v51 = vadd.f32 %v8409_v55, %v733_v54  ;;  %v1773_v21 = vunpack.c.h.bf16 %v1727_v48  ;;  %v1859_v13 = vunpack.c.l.bf16 %v5358_v31  ;;  %v1722_v36 = vld [vmem:[%s8387_s4 + $0x50] sm:$0xff]  ;;  %v1765_v54 = vunpack.c.h.bf16 %v1723_v40  ;;  %v5352_v55 = vld [vmem:[%s8387_s4 + $0x218] sm:$0xff]  ;;  %v5350_v48 = vld [vmem:[%s8387_s4 + $0x208] sm:$0xff] }
 0x11e   : > { %v1293_v60 = vadd.f32 %v1285_v17, %v1184_v12  ;;  %v980_v7 = vadd.f32 %v6568_v0, %v859_v2  ;;  %v978_v14 = vadd.f32 %v8410_v11, %v857_v6  ;;  %v1725_v12 = vld [vmem:[%s8387_s4 + $0x68] sm:$0xff]  ;;  %v1720_v6 = vld [vmem:[%s8387_s4 + $0x40] sm:$0xff] }
 0x11f   : > { %v1379_v18 = vpop.f32.mrf.mxu0  ;;  %v976_v0 = vadd.f32 %v8412_v50, %v855_v51  ;;  %v1759_v51 = vunpack.c.h.bf16 %v1720_v6 }
 0x120   : > { %v1487_v19 = vpop.f32.mrf.mxu1  ;;  %v1396_v3 = vadd.f32 %v1379_v18, %v1288_v24  ;;  %v5360_v18 = vld [vmem:[%s8387_s4 + $0x258] sm:$0xff] }
 0x121   : > { %v1381_v26 = vpop.f32.mrf.mxu0  ;;  %v1863_v30 = vunpack.c.l.bf16 %v5360_v18  ;;  %v5356_v24 = vld [vmem:[%s8387_s4 + $0x238] sm:$0xff] }
 0x122   : > { %v1489_v4 = vpop.f32.mrf.mxu1  ;;  %v1397_v37 = vadd.f32 %v1381_v26, %v1289_v44  ;;  %v1504_v15 = vadd.f32 %v1487_v19, %v1396_v3  ;;  %v5357_v44 = vld [vmem:[%s8387_s4 + $0x240] sm:$0xff]  ;;  %v1856_v2 = vunpack.c.h.bf16 %v5356_v24  ;;  %v1764_v3 = vunpack.c.l.bf16 %v1723_v40 }
 0x123   : > { %v1385_v23 = vpop.f32.mrf.mxu0 }
 0x124   : > { %v1493_v29 = vpop.f32.mrf.mxu1  ;;  %v1398_v42 = vadd.f32 %v1385_v23, %v1290_v9  ;;  %v1505_v45 = vadd.f32 %v1489_v4, %v1397_v37  ;;  %v1510_v26 = vmax.f32 %v976_v0, %v1504_v15  ;;  %v1516_v4 = vld [vmem:[%s8386_s3] sm:$0xff]  ;;  %v1864_v23 = vunpack.c.h.bf16 %v5360_v18  ;;  %v1718_v15 = vld [vmem:[%s8387_s4 + $0x30] sm:$0xff]  ;;  %v1717_v0 = vld [vmem:[%s8387_s4 + $0x28] sm:$0xff] }
 0x125   : > { %v1387_v32 = vpop.f32.mrf.mxu0  ;;  %v1770_v9 = vunpack.c.l.bf16 %v1726_v22  ;;  %v1857_v37 = vunpack.c.l.bf16 %v5357_v44  ;;  %v1755_v18 = vunpack.c.h.bf16 %v1718_v15 }
 0x126   : > { %v1495_v58 = vpop.f32.mrf.mxu1  ;;  %v1399_v39 = vadd.f32 %v1387_v32, %v1291_v46  ;;  %v1506_v47 = vadd.f32 %v1493_v29, %v1398_v42  ;;  %v5359_v29 = vld [vmem:[%s8387_s4 + $0x250] sm:$0xff] }
 0x127   : > { %v1391_v10 = vpop.f32.mrf.mxu0  ;;  %v1862_v61 = vunpack.c.h.bf16 %v5359_v29 }
 0x128   : > { %v1499_v43 = vpop.f32.mrf.mxu1  ;;  %v1400_v25 = vadd.f32 %v1391_v10, %v1292_v62  ;;  %v858_v62 = vadd.f32 %v6556_v53, %v736_v41  ;;  %v1507_v5 = vadd.f32 %v1495_v58, %v1399_v39  ;;  %v977_v58 = vadd.f32 %v8411_v1, %v856_v57  ;;  %v1724_v10 = vld [vmem:[%s8387_s4 + $0x60] sm:$0xff]  ;;  %v5351_v1 = vld [vmem:[%s8387_s4 + $0x210] sm:$0xff] }
 0x129   : > { %v1393_v56 = vpop.f32.mrf.mxu0  ;;  %v1512_v17 = vmax.f32 %v978_v14, %v1506_v47  ;;  %v1771_v41 = vunpack.c.h.bf16 %v1726_v22  ;;  %v1860_v39 = vunpack.c.h.bf16 %v5358_v31  ;;  %v1767_v42 = vunpack.c.h.bf16 %v1724_v10  ;;  %v5353_v47 = vld [vmem:[%s8387_s4 + $0x220] sm:$0xff] }
 0x12a   : > { %v1401_v52 = vadd.f32 %v1393_v56, %v1293_v60  ;;  %v1508_v32 = vadd.f32 %v1499_v43, %v1400_v25  ;;  %v1501_v46 = vpop.f32.mrf.mxu1  ;;  %v979_v38 = vadd.f32 %v8408_v59, %v858_v62  ;;  %v1511_v19 = vmax.f32 %v977_v58, %v1505_v45  ;;  %v5354_v62 = vld [vmem:[%s8387_s4 + $0x228] sm:$0xff]  ;;  %v1719_v45 = vld [vmem:[%s8387_s4 + $0x38] sm:$0xff] }
 0x12b   : > { %v1861_v43 = vunpack.c.l.bf16 %v5359_v29  ;;  %v1769_v60 = vunpack.c.h.bf16 %v1725_v12  ;;  %v1768_v25 = vunpack.c.l.bf16 %v1725_v12  ;;  %v1858_v56 = vunpack.c.h.bf16 %v5357_v44  ;;  %v5348_v12 = vld [vmem:[%s8387_s4 + $0x1f8] sm:$0xff] }
 0x12c   : > { %v1509_v49 = vadd.f32 %v1501_v46, %v1401_v52  ;;  %v1514_v53 = vmax.f32 %v980_v7, %v1508_v32  ;;  %v1513_v16 = vmax.f32 %v979_v38, %v1507_v5  ;;  %v1766_v33 = vunpack.c.l.bf16 %v1724_v10  ;;  %v5355_v52 = vld [vmem:[%s8387_s4 + $0x230] sm:$0xff]  ;;  %v1721_v32 = vld [vmem:[%s8387_s4 + $0x48] sm:$0xff] }
 0x12d   : > { %v1855_v46 = vunpack.c.l.bf16 %v5356_v24  ;;  %v1854_v5 = vunpack.c.h.bf16 %v5355_v52  ;;  %v1853_v7 = vunpack.c.l.bf16 %v5355_v52  ;;  %v1761_v57 = vunpack.c.h.bf16 %v1721_v32 }
 0x12e   : > { %v1515_v8 = vmax.f32 %v981_v28, %v1509_v49  ;;  %v1763_v28 = vunpack.c.h.bf16 %v1722_v36  ;;  %v1762_v49 = vunpack.c.l.bf16 %v1722_v36  ;;  %v1852_v59 = vunpack.c.h.bf16 %v5354_v62 }
 0x12f   : > { %v1760_v38 = vunpack.c.l.bf16 %v1721_v32  ;;  %v1850_v11 = vunpack.c.h.bf16 %v5353_v47  ;;  %v1758_v14 = vunpack.c.l.bf16 %v1720_v6  ;;  %v1757_v58 = vunpack.c.h.bf16 %v1719_v45 }
 0x130   : > { %1551 = vmatprep.subr.mxu0 %v1515_v8  ;;  %1637 = vmatprep.subr.mxu1 %v1515_v8  ;;  %v1851_v8 = vunpack.c.l.bf16 %v5354_v62  ;;  %v1756_v50 = vunpack.c.l.bf16 %v1719_v45  ;;  %v1753_v22 = vunpack.c.h.bf16 %v1717_v0  ;;  %v1752_v29 = vunpack.c.l.bf16 %v1717_v0 }
 0x131   : > { %1552 = vmatpush1.msra.mxu0 %v1514_v53  ;;  %1638 = vmatpush1.msra.mxu1 %v1514_v53  ;;  %v1849_v53 = vunpack.c.l.bf16 %v5353_v47 }
 0x132   : > { %1553 = vmatprep.subr.mxu0 %v1513_v16  ;;  %1639 = vmatprep.subr.mxu1 %v1513_v16  ;;  %v1848_v16 = vunpack.c.h.bf16 %v5352_v55 }
 0x133   : > { %1554 = vmatpush1.msra.mxu0 %v1512_v17  ;;  %1640 = vmatpush1.msra.mxu1 %v1512_v17  ;;  %v1847_v17 = vunpack.c.l.bf16 %v5352_v55 }
 0x134   : > { %1555 = vmatprep.subr.mxu0 %v1511_v19  ;;  %1641 = vmatprep.subr.mxu1 %v1511_v19  ;;  %v1846_v19 = vunpack.c.h.bf16 %v5351_v1 }
 0x135   : > { %1556 = vmatpush1.msra.mxu0 %v1510_v26  ;;  %1642 = vmatpush1.msra.mxu1 %v1510_v26  ;;  %v1754_v26 = vunpack.c.l.bf16 %v1718_v15 }
 0x136   : > { %5339 = vmatmul.mubr.msk.f32.vlgmr.msra.gmra.mxu0 %vm1518_vm5, %v1516_v4  ;;  %5343 = vmatmul.mubr.msk.f32.vlgmr.msra.gmra.mxu1 %vm1518_vm5, %v5341_v20  ;;  %v1716_v4 = vld [vmem:[%s8387_s4 + $0x20] sm:$0xff]  ;;  %v1845_v20 = vunpack.c.l.bf16 %v5351_v1 }
 0x137   : > { %1595 = vmatprep.mubr.f32.mxu0 %v8413_v34  ;;  %1681 = vmatprep.mubr.f32.mxu1 %v8413_v34  ;;  %v1751_v31 = vunpack.c.h.bf16 %v1716_v4 }
 0x138   : > { %1980 = vmatprep.subr.mxu1 %v1773_v21  ;;  %1907 = vmatprep.subr.mxu0 %v1864_v23  ;;  %v5349_v21 = vld [vmem:[%s8387_s4 + $0x200] sm:$0xff]  ;;  %v1844_v23 = vunpack.c.h.bf16 %v5350_v48 }
 0x139   : > { %1981 = vmatpush1.msra.mxu1 %v1772_v27  ;;  %1908 = vmatpush1.msra.mxu0 %v1863_v30  ;;  %v1715_v27 = vld [vmem:[%s8387_s4 + $0x18] sm:$0xff]  ;;  %v1843_v30 = vunpack.c.l.bf16 %v5350_v48 }
 0x13a   : > { %5340 = vmatmul.mubr.msk.f32.gmra.mxu0 %vm1518_vm5, %v1517_v35  ;;  %5344 = vmatmul.mubr.msk.f32.gmra.mxu1 %vm1518_vm5, %v5342_v63  ;;  %v1842_v35 = vunpack.c.h.bf16 %v5349_v21  ;;  %v1750_v63 = vunpack.c.l.bf16 %v1716_v4  ;;  %v1749_v10 = vunpack.c.h.bf16 %v1715_v27  ;;  %v1748_v44 = vunpack.c.l.bf16 %v1715_v27 }
 0x13b   : > { %1982 = vmatprep.subr.mxu1 %v1771_v41  ;;  %1909 = vmatprep.subr.mxu0 %v1862_v61  ;;  %v1714_v41 = vld [vmem:[%s8387_s4 + $0x10] sm:$0xff]  ;;  %v1841_v61 = vunpack.c.l.bf16 %v5349_v21 }
 0x13c   : > { %1983 = vmatpush1.msra.mxu1 %v1770_v9  ;;  %1910 = vmatpush1.msra.mxu0 %v1861_v43  ;;  %v5347_v9 = vld [vmem:[%s8387_s4 + $0x1f0] sm:$0xff]  ;;  %v1840_v43 = vunpack.c.h.bf16 %v5348_v12  ;;  %v1747_v40 = vunpack.c.h.bf16 %v1714_v41  ;;  %v1746_v24 = vunpack.c.l.bf16 %v1714_v41  ;;  %v1733_v41 = vld [vmem:[%s8387_s4 + $0xa8] sm:$0xff] }
 0x13d   : > { %1984 = vmatprep.subr.mxu1 %v1769_v60  ;;  %1911 = vmatprep.subr.mxu0 %v1860_v39  ;;  %v1713_v60 = vld [vmem:[%s8387_s4 + $0x8] sm:$0xff]  ;;  %v1839_v39 = vunpack.c.l.bf16 %v5348_v12  ;;  %v1734_v12 = vld [vmem:[%s8387_s4 + $0xb0] sm:$0xff] }
 0x13e   : > { %1985 = vmatpush1.msra.mxu1 %v1768_v25  ;;  %1912 = vmatpush1.msra.mxu0 %v1859_v13  ;;  %v5346_v25 = vld [vmem:[%s8387_s4 + $0x1e8] sm:$0xff]  ;;  %v1838_v13 = vunpack.c.h.bf16 %v5347_v9  ;;  %v1745_v36 = vunpack.c.h.bf16 %v1713_v60  ;;  %v1744_v52 = vunpack.c.l.bf16 %v1713_v60 }
 0x13f   : > { %1986 = vmatprep.subr.mxu1 %v1767_v42  ;;  %1913 = vmatprep.subr.mxu0 %v1858_v56  ;;  %v1712_v42 = vld [vmem:[%s8387_s4] sm:$0xff]  ;;  %v1837_v56 = vunpack.c.l.bf16 %v5347_v9  ;;  %v1786_v9 = vunpack.c.l.bf16 %v1734_v12 }
 0x140   : > { %1987 = vmatpush1.msra.mxu1 %v1766_v33  ;;  %1914 = vmatpush1.msra.mxu0 %v1857_v37  ;;  %v5345_v33 = vld [vmem:[%s8387_s4 + $0x1e0] sm:$0xff]  ;;  %v1836_v37 = vunpack.c.h.bf16 %v5346_v25  ;;  %v1743_v32 = vunpack.c.h.bf16 %v1712_v42  ;;  %v1742_v62 = vunpack.c.l.bf16 %v1712_v42 }
 0x141   : > { %1988 = vmatprep.subr.mxu1 %v1765_v54  ;;  %1915 = vmatprep.subr.mxu0 %v1856_v2  ;;  %v1741_v54 = vld [vmem:[%s8387_s4 + $0xe8] sm:$0xff]  ;;  %v1835_v2 = vunpack.c.l.bf16 %v5346_v25  ;;  %v5368_v25 = vld [vmem:[%s8387_s4 + $0x298] sm:$0xff] }
 0x142   : > { %1989 = vmatpush1.msra.mxu1 %v1764_v3  ;;  %1916 = vmatpush1.msra.mxu0 %v1855_v46  ;;  %v5374_v3 = vld [vmem:[%s8387_s4 + $0x2c8] sm:$0xff]  ;;  %v1834_v46 = vunpack.c.h.bf16 %v5345_v33  ;;  %v1801_v6 = vunpack.c.h.bf16 %v1741_v54  ;;  %v1800_v47 = vunpack.c.l.bf16 %v1741_v54 }
 0x143   : > { %1990 = vmatprep.subr.mxu1 %v1763_v28  ;;  %1917 = vmatprep.subr.mxu0 %v1854_v5  ;;  %v1740_v28 = vld [vmem:[%s8387_s4 + $0xe0] sm:$0xff]  ;;  %v1833_v5 = vunpack.c.l.bf16 %v5345_v33 }
 0x144   : > { %1991 = vmatpush1.msra.mxu1 %v1762_v49  ;;  %1918 = vmatpush1.msra.mxu0 %v1853_v7  ;;  %v5373_v49 = vld [vmem:[%s8387_s4 + $0x2c0] sm:$0xff]  ;;  %v1892_v7 = vunpack.c.h.bf16 %v5374_v3  ;;  %v1799_v45 = vunpack.c.h.bf16 %v1740_v28  ;;  %v1798_v55 = vunpack.c.l.bf16 %v1740_v28 }
 0x145   : > { %1992 = vmatprep.subr.mxu1 %v1761_v57  ;;  %1919 = vmatprep.subr.mxu0 %v1852_v59  ;;  %v1739_v57 = vld [vmem:[%s8387_s4 + $0xd8] sm:$0xff]  ;;  %v1891_v59 = vunpack.c.l.bf16 %v5374_v3 }
 0x146   : > { %1993 = vmatpush1.msra.mxu1 %v1760_v38  ;;  %1920 = vmatpush1.msra.mxu0 %v1851_v8  ;;  %v5372_v38 = vld [vmem:[%s8387_s4 + $0x2b8] sm:$0xff]  ;;  %v1890_v8 = vunpack.c.h.bf16 %v5373_v49  ;;  %v1797_v15 = vunpack.c.h.bf16 %v1739_v57  ;;  %v1796_v1 = vunpack.c.l.bf16 %v1739_v57 }
 0x147   : > { %1994 = vmatprep.subr.mxu1 %v1759_v51  ;;  %1921 = vmatprep.subr.mxu0 %v1850_v11  ;;  %v1738_v51 = vld [vmem:[%s8387_s4 + $0xd0] sm:$0xff]  ;;  %v1889_v11 = vunpack.c.l.bf16 %v5373_v49 }
 0x148   : > { %1995 = vmatpush1.msra.mxu1 %v1758_v14  ;;  %1922 = vmatpush1.msra.mxu0 %v1849_v53  ;;  %v5371_v14 = vld [vmem:[%s8387_s4 + $0x2b0] sm:$0xff]  ;;  %v1888_v53 = vunpack.c.h.bf16 %v5372_v38  ;;  %v1795_v0 = vunpack.c.h.bf16 %v1738_v51  ;;  %v1794_v48 = vunpack.c.l.bf16 %v1738_v51 }
 0x149   : > { %1996 = vmatprep.subr.mxu1 %v1757_v58  ;;  %1923 = vmatprep.subr.mxu0 %v1848_v16  ;;  %v1737_v58 = vld [vmem:[%s8387_s4 + $0xc8] sm:$0xff]  ;;  %v1887_v16 = vunpack.c.l.bf16 %v5372_v38 }
 0x14a   : > { %1997 = vmatpush1.msra.mxu1 %v1756_v50  ;;  %1924 = vmatpush1.msra.mxu0 %v1847_v17  ;;  %v5370_v50 = vld [vmem:[%s8387_s4 + $0x2a8] sm:$0xff]  ;;  %v1886_v17 = vunpack.c.h.bf16 %v5371_v14  ;;  %v1793_v4 = vunpack.c.h.bf16 %v1737_v58  ;;  %v1792_v21 = vunpack.c.l.bf16 %v1737_v58 }
 0x14b   : > { %1998 = vmatprep.subr.mxu1 %v1755_v18  ;;  %1925 = vmatprep.subr.mxu0 %v1846_v19  ;;  %v1736_v18 = vld [vmem:[%s8387_s4 + $0xc0] sm:$0xff]  ;;  %v1885_v19 = vunpack.c.l.bf16 %v5371_v14 }
 0x14c   : > { %1999 = vmatpush1.msra.mxu1 %v1754_v26  ;;  %1926 = vmatpush1.msra.mxu0 %v1845_v20  ;;  %v5369_v26 = vld [vmem:[%s8387_s4 + $0x2a0] sm:$0xff]  ;;  %v1884_v20 = vunpack.c.h.bf16 %v5370_v50 }
 0x14d   : > { %2000 = vmatprep.subr.mxu1 %v1753_v22  ;;  %1927 = vmatprep.subr.mxu0 %v1844_v23  ;;  %v1735_v22 = vld [vmem:[%s8387_s4 + $0xb8] sm:$0xff]  ;;  %v1883_v23 = vunpack.c.l.bf16 %v5370_v50  ;;  %v1882_v27 = vunpack.c.h.bf16 %v5369_v26 }
 0x14e   : > { %2001 = vmatpush1.msra.mxu1 %v1752_v29  ;;  %1928 = vmatpush1.msra.mxu0 %v1843_v30  ;;  %v1791_v29 = vunpack.c.h.bf16 %v1736_v18  ;;  %v1790_v30 = vunpack.c.l.bf16 %v1736_v18  ;;  %v1694_v18 = vlaneseq }
 0x14f   : > { %2002 = vmatprep.subr.mxu1 %v1751_v31  ;;  %1929 = vmatprep.subr.mxu0 %v1842_v35  ;;  %v1881_v31 = vunpack.c.l.bf16 %v5369_v26  ;;  %v1789_v35 = vunpack.c.h.bf16 %v1735_v22 }
 0x150   : > { %2003 = vmatpush1.msra.mxu1 %v1750_v63  ;;  %1930 = vmatpush1.msra.mxu0 %v1841_v61  ;;  %v1788_v63 = vunpack.c.l.bf16 %v1735_v22  ;;  %v1787_v61 = vunpack.c.h.bf16 %v1734_v12 }
 0x151   : > { %2004 = vmatprep.subr.mxu1 %v1749_v10  ;;  %1931 = vmatprep.subr.mxu0 %v1840_v43  ;;  %v1732_v10 = vld [vmem:[%s8387_s4 + $0xa0] sm:$0xff]  ;;  %v1785_v43 = vunpack.c.h.bf16 %v1733_v41 }
 0x152   : > { %2005 = vmatpush1.msra.mxu1 %v1748_v44  ;;  %1932 = vmatpush1.msra.mxu0 %v1839_v39  ;;  %v1784_v44 = vunpack.c.l.bf16 %v1733_v41  ;;  %v1783_v60 = vunpack.c.h.bf16 %v1732_v10  ;;  %v1782_v39 = vunpack.c.l.bf16 %v1732_v10  ;;  %v5422_v10 = vld [vmem:[%s8387_s4 + $0x610] sm:$0xff] }
 0x153   : > { %2006 = vmatprep.subr.mxu1 %v1747_v40  ;;  %1933 = vmatprep.subr.mxu0 %v1838_v13  ;;  %v1880_v40 = vunpack.c.h.bf16 %v5368_v25  ;;  %v1731_v13 = vld [vmem:[%s8387_s4 + $0x98] sm:$0xff] }
 0x154   : > { %2007 = vmatpush1.msra.mxu1 %v1746_v24  ;;  %1934 = vmatpush1.msra.mxu0 %v1837_v56  ;;  %v1879_v24 = vunpack.c.l.bf16 %v5368_v25  ;;  %v1781_v42 = vunpack.c.h.bf16 %v1731_v13  ;;  %v5367_v56 = vld [vmem:[%s8387_s4 + $0x290] sm:$0xff]  ;;  %v1780_v33 = vunpack.c.l.bf16 %v1731_v13  ;;  %v5421_v13 = vld [vmem:[%s8387_s4 + $0x608] sm:$0xff] }
 0x155   : > { %2008 = vmatprep.subr.mxu1 %v1745_v36  ;;  %1935 = vmatprep.subr.mxu0 %v1836_v37  ;;  %v1878_v36 = vunpack.c.h.bf16 %v5367_v56  ;;  %v1730_v37 = vld [vmem:[%s8387_s4 + $0x90] sm:$0xff] }
 0x156   : > { %2009 = vmatpush1.msra.mxu1 %v1744_v52  ;;  %1936 = vmatpush1.msra.mxu0 %v1835_v2  ;;  %v1877_v52 = vunpack.c.l.bf16 %v5367_v56  ;;  %v1779_v54 = vunpack.c.h.bf16 %v1730_v37  ;;  %v5366_v2 = vld [vmem:[%s8387_s4 + $0x288] sm:$0xff]  ;;  %v1778_v3 = vunpack.c.l.bf16 %v1730_v37  ;;  %v5420_v37 = vld [vmem:[%s8387_s4 + $0x600] sm:$0xff] }
 0x157   : > { %2010 = vmatprep.subr.mxu1 %v1743_v32  ;;  %1937 = vmatprep.subr.mxu0 %v1834_v46  ;;  %v1876_v32 = vunpack.c.h.bf16 %v5366_v2  ;;  %v1729_v46 = vld [vmem:[%s8387_s4 + $0x88] sm:$0xff] }
 0x158   : > { %2011 = vmatpush1.msra.mxu1 %v1742_v62  ;;  %1938 = vmatpush1.msra.mxu0 %v1833_v5  ;;  %v1875_v62 = vunpack.c.l.bf16 %v5366_v2  ;;  %v1777_v28 = vunpack.c.h.bf16 %v1729_v46  ;;  %v5365_v5 = vld [vmem:[%s8387_s4 + $0x280] sm:$0xff]  ;;  %v1776_v49 = vunpack.c.l.bf16 %v1729_v46  ;;  %v2281_v2 = vunpack.c.l.bf16 %v5421_v13 }
 0x159   : > { %2016 = vmatprep.subr.mxu1 %v1801_v6  ;;  %1943 = vmatprep.subr.mxu0 %v1892_v7  ;;  %v1874_v6 = vunpack.c.h.bf16 %v5365_v5  ;;  %v1728_v7 = vld [vmem:[%s8387_s4 + $0x80] sm:$0xff]  ;;  %v2280_v46 = vunpack.c.h.bf16 %v5420_v37 }
 0x15a   : > { %2017 = vmatpush2.msra.mxu1 %v1800_v47  ;;  %1944 = vmatpush2.msra.mxu0 %v1891_v59  ;;  %v1873_v47 = vunpack.c.l.bf16 %v5365_v5  ;;  %v1775_v57 = vunpack.c.h.bf16 %v1728_v7  ;;  %v5364_v59 = vld [vmem:[%s8387_s4 + $0x278] sm:$0xff]  ;;  %v1774_v38 = vunpack.c.l.bf16 %v1728_v7  ;;  %v5391_v7 = vld [vmem:[%s8387_s4 + $0x430] sm:$0xff] }
 0x15b   : > { %2018 = vmatprep.subr.mxu1 %v1799_v45  ;;  %1945 = vmatprep.subr.mxu0 %v1890_v8  ;;  %v1872_v45 = vunpack.c.h.bf16 %v5364_v59  ;;  %v6780_v8 = vld [vmem:[%s8387_s4 + $0x618] sm:$0xff] }
 0x15c   : > { %2019 = vmatpush2.msra.mxu1 %v1798_v55  ;;  %1946 = vmatpush2.msra.mxu0 %v1889_v11  ;;  %v1871_v55 = vunpack.c.l.bf16 %v5364_v59  ;;  %v2286_v51 = vunpack.c.h.bf16 %v6780_v8  ;;  %v5363_v11 = vld [vmem:[%s8387_s4 + $0x270] sm:$0xff] }
 0x15d   : > { %2020 = vmatprep.subr.mxu1 %v1797_v15  ;;  %1947 = vmatprep.subr.mxu0 %v1888_v53  ;;  %v1870_v14 = vunpack.c.h.bf16 %v5363_v11  ;;  %v1869_v15 = vunpack.c.l.bf16 %v5363_v11  ;;  %v5362_v53 = vld [vmem:[%s8387_s4 + $0x268] sm:$0xff]  ;;  %v5418_v59 = vld [vmem:[%s8387_s4 + $0x5f0] sm:$0xff] }
 0x15e   : > { %2021 = vmatpush2.msra.mxu1 %v1796_v1  ;;  %1948 = vmatpush2.msra.mxu0 %v1887_v16  ;;  %v1868_v1 = vunpack.c.h.bf16 %v5362_v53  ;;  %v1867_v58 = vunpack.c.l.bf16 %v5362_v53  ;;  %v5361_v16 = vld [vmem:[%s8387_s4 + $0x260] sm:$0xff]  ;;  %v5417_v53 = vld [vmem:[%s8387_s4 + $0x5e8] sm:$0xff] }
 0x15f   : > { %2022 = vmatprep.subr.mxu1 %v1795_v0  ;;  %1949 = vmatprep.subr.mxu0 %v1886_v17  ;;  %v1866_v50 = vunpack.c.h.bf16 %v5361_v16  ;;  %v1865_v0 = vunpack.c.l.bf16 %v5361_v16  ;;  %v6795_v17 = vld [vmem:[%s8387_s4 + $0x438] sm:$0xff]  ;;  %v2276_v16 = vunpack.c.h.bf16 %v5418_v59 }
 0x160   : > { %2023 = vmatpush2.msra.mxu1 %v1794_v48  ;;  %1950 = vmatpush2.msra.mxu0 %v1885_v19  ;;  %v2113_v48 = vunpack.c.h.bf16 %v6795_v17  ;;  %v6799_v19 = vshrl.u32 %v1694_v18, 7 }
 0x161   : > { %2024 = vmatprep.subr.mxu1 %v1793_v4  ;;  %1951 = vmatprep.subr.mxu0 %v1884_v20  ;;  %v1692_v4 = vld [vmem:[%s8385_s2] sm:$0x3] }
 0x162   : > { %2025 = vmatpush2.msra.mxu1 %v1792_v21  ;;  %1952 = vmatpush2.msra.mxu0 %v1883_v23  ;;  %v6802_v26 = vsub.s32 0, %v6799_v19  ;;  %v6808_v20 = vsub.s32 1, %v6799_v19 }
 0x163   : > { %2026 = vmatprep.subr.mxu1 %v1791_v29  ;;  %1953 = vmatprep.subr.mxu0 %v1882_v27 }
 0x164   : > { %2027 = vmatpush2.msra.mxu1 %v1790_v30  ;;  %1954 = vmatpush2.msra.mxu0 %v1881_v31  ;;  %v1697_v23 = vrot.slane %v1692_v4, %v6802_v26  ;;  %v1701_v27 = vrot.slane %v1692_v4, %v6808_v20  ;;  %v5416_v4 = vld [vmem:[%s8387_s4 + $0x5e0] sm:$0xff] }
 0x165   : > { %2028 = vmatprep.subr.mxu1 %v1789_v35  ;;  %1955 = vmatprep.subr.mxu0 %v1880_v40  ;;  %v2285_v40 = vunpack.c.l.bf16 %v6780_v8 }
 0x166   : > { %2029 = vmatpush2.msra.mxu1 %v1788_v63  ;;  %1956 = vmatpush2.msra.mxu0 %v1879_v24 }
 0x167   : > { %2030 = vmatprep.subr.mxu1 %v1787_v61  ;;  %1957 = vmatprep.subr.mxu0 %v1878_v36  ;;  %v2283_v36 = vunpack.c.l.bf16 %v5422_v10 }
 0x168   : > { %2031 = vmatpush2.msra.mxu1 %v1786_v9  ;;  %1958 = vmatpush2.msra.mxu0 %v1877_v52  ;;  %v2282_v52 = vunpack.c.h.bf16 %v5421_v13 }
 0x169   : > { %2032 = vmatprep.subr.mxu1 %v1785_v43  ;;  %1959 = vmatprep.subr.mxu0 %v1876_v32  ;;  %v2279_v32 = vunpack.c.l.bf16 %v5420_v37  ;;  %v5412_v37 = vld [vmem:[%s8387_s4 + $0x5c0] sm:$0xff] }
 0x16a   : > { %2033 = vmatpush2.msra.mxu1 %v1784_v44  ;;  %1960 = vmatpush2.msra.mxu0 %v1875_v62 }
 0x16b   : > { %2034 = vmatprep.subr.mxu1 %v1783_v60  ;;  %1961 = vmatprep.subr.mxu0 %v1874_v6 }
 0x16c   : > { %2035 = vmatpush2.msra.mxu1 %v1782_v39  ;;  %1962 = vmatpush2.msra.mxu0 %v1873_v47 }
 0x16d   : > { %2036 = vmatprep.subr.mxu1 %v1781_v42  ;;  %1963 = vmatprep.subr.mxu0 %v1872_v45  ;;  %v2284_v42 = vunpack.c.h.bf16 %v5422_v10  ;;  %v2112_v45 = vunpack.c.l.bf16 %v6795_v17  ;;  %v2275_v17 = vunpack.c.l.bf16 %v5418_v59 }
 0x16e   : > { %2037 = vmatpush2.msra.mxu1 %v1780_v33  ;;  %1964 = vmatpush2.msra.mxu0 %v1871_v55 }
 0x16f   : > { %2038 = vmatprep.subr.mxu1 %v1779_v54  ;;  %1965 = vmatprep.subr.mxu0 %v1870_v14  ;;  %v2111_v14 = vunpack.c.h.bf16 %v5391_v7 }
 0x170   : > { %2039 = vmatpush2.msra.mxu1 %v1778_v3  ;;  %1966 = vmatpush2.msra.mxu0 %v1869_v15  ;;  %v5419_v3 = vld [vmem:[%s8387_s4 + $0x5f8] sm:$0xff] }
 0x171   : > { %2040 = vmatprep.subr.mxu1 %v1777_v28  ;;  %1967 = vmatprep.subr.mxu0 %v1868_v1  ;;  %v2278_v47 = vunpack.c.h.bf16 %v5419_v3  ;;  %v2277_v11 = vunpack.c.l.bf16 %v5419_v3  ;;  %v5384_v3 = vld [vmem:[%s8387_s4 + $0x3f8] sm:$0xff] }
 0x172   : > { %2041 = vmatpush2.msra.mxu1 %v1776_v49  ;;  %1968 = vmatpush2.msra.mxu0 %v1867_v58  ;;  %v2110_v58 = vunpack.c.l.bf16 %v5391_v7  ;;  %v2097_v7 = vunpack.c.h.bf16 %v5384_v3 }
 0x173   : > { %2042 = vmatprep.subr.mxu1 %v1775_v57  ;;  %1969 = vmatprep.subr.mxu0 %v1866_v50  ;;  %v5389_v50 = vld [vmem:[%s8387_s4 + $0x420] sm:$0xff] }
 0x174   : > { %2043 = vmatpush2.msra.mxu1 %v1774_v38  ;;  %1970 = vmatpush2.msra.mxu0 %v1865_v0 }
 0x175   : > { %2324 = vmatprep.subr.mxu1 %v2286_v51  ;;  %2151 = vmatprep.subr.mxu0 %v2113_v48  ;;  %v5390_v51 = vld [vmem:[%s8387_s4 + $0x428] sm:$0xff] }
 0x176   : > { %v2109_v48 = vunpack.c.h.bf16 %v5390_v51 }
 0x1f6   : > { %v1591_v21 = vpop.f32.mrf.mxu0  ;;  %v1677_v22 = vpop.f32.mrf.mxu1 }
 0x1f7   : > { %v1688_v29 = vmax.f32 %v1591_v21, %v1677_v22  ;;  %v2108_v21 = vunpack.c.l.bf16 %v5390_v51  ;;  %v2274_v22 = vunpack.c.h.bf16 %v5417_v53 }
 0x1f8   : > { %v1593_v30 = vpop.f32.mrf.mxu0  ;;  %v1679_v12 = vpop.f32.mrf.mxu1 }
 0x1f9   : > { %v1689_v31 = vmax.f32 %v1593_v30, %v1679_v12  ;;  %v1704_v35 = vadd.f32 %v1697_v23, %v1688_v29  ;;  %v2273_v29 = vunpack.c.l.bf16 %v5417_v53  ;;  %v5415_v30 = vld [vmem:[%s8387_s4 + $0x5d8] sm:$0xff]  ;;  %v2106_v12 = vunpack.c.l.bf16 %v5389_v50  ;;  %v5381_v53 = vld [vmem:[%s8387_s4 + $0x3e0] sm:$0xff] }
 0x1fa   : > { %v1597_v63 = vpop.f32.mrf.mxu0  ;;  %v1683_v41 = vpop.f32.mrf.mxu1  ;;  %v2270_v10 = vunpack.c.h.bf16 %v5415_v30 }
 0x1fb   : > { %v1705_v61 = vadd.f32 %v1701_v27, %v1689_v31  ;;  %v1690_v9 = vmax.f32 %v1597_v63, %v1683_v41  ;;  %v6821_v24 = vmax.f32 %v1704_v35, 0.0  ;;  %v2272_v31 = vunpack.c.h.bf16 %v5416_v4  ;;  %v5387_v35 = vld [vmem:[%s8387_s4 + $0x410] sm:$0xff] }
 0x1fc   : > { %v1599_v43 = vpop.f32.mrf.mxu0  ;;  %v1685_v44 = vpop.f32.mrf.mxu1  ;;  %v2271_v63 = vunpack.c.l.bf16 %v5416_v4  ;;  %v5380_v4 = vld [vmem:[%s8387_s4 + $0x3d8] sm:$0xff] }
 0x1fd   : > { %v6815_v60 = vmax.f32 %v1705_v61, 0.0  ;;  %v1706_v39 = vadd.f32 %v1697_v23, %v1690_v9  ;;  %v1691_v25 = vmax.f32 %v1599_v43, %v1685_v44  ;;  %v1897_v55 = vrot.slane %v6821_v24, 1  ;;  %v5388_v23 = vld [vmem:[%s8387_s4 + $0x418] sm:$0xff]  ;;  %v5414_v61 = vld [vmem:[%s8387_s4 + $0x5d0] sm:$0xff]  ;;  %v5386_v43 = vld [vmem:[%s8387_s4 + $0x408] sm:$0xff] }
 0x1fe   : > { %v2105_v41 = vunpack.c.h.bf16 %v5388_v23  ;;  %v2104_v9 = vunpack.c.l.bf16 %v5388_v23  ;;  %v2269_v44 = vunpack.c.l.bf16 %v5415_v30  ;;  %v2268_v13 = vunpack.c.h.bf16 %v5414_v61  ;;  %v5437_v23 = vld [vmem:[%s8387_s4 + $0x688] sm:$0xff]  ;;  %v5379_v30 = vld [vmem:[%s8387_s4 + $0x3d0] sm:$0xff] }
 0x1ff   : > { %v6823_v56 = vmax.f32 %v1706_v39, 0.0  ;;  %v1707_v33 = vadd.f32 %v1701_v27, %v1691_v25  ;;  %5376 = vmatprep.mubr.msk.f32.mxu1 %vm1904_vm6, %v6815_v60  ;;  %v1900_v62 = vrot.slane %v6815_v60, 1  ;;  %v2318_v5 = vrot.slane %v6815_v60, 3  ;;  %v5413_v25 = vld [vmem:[%s8387_s4 + $0x5c8] sm:$0xff] }
 0x200   : > { %2045 = vmatmul.mubr.f32.vlgmr.msra.gmra.mxu1 %v6821_v24  ;;  %v2145_v15 = vrot.slane %v6815_v60, 2  ;;  %v2107_v27 = vunpack.c.h.bf16 %v5389_v50  ;;  %v2103_v39 = vunpack.c.h.bf16 %v5387_v35  ;;  %v5408_v50 = vld [vmem:[%s8387_s4 + $0x5a0] sm:$0xff] }
 0x201   : > { %v6831_v54 = vmax.f32 %v1707_v33, 0.0  ;;  %2325 = vmatpush1.msra.mxu1 %v2285_v40  ;;  %v1898_v6 = vrot.slane %v6823_v56, 1  ;;  %v2102_v40 = vunpack.c.l.bf16 %v5387_v35  ;;  %v2267_v33 = vunpack.c.l.bf16 %v5414_v61  ;;  %v5436_v35 = vld [vmem:[%s8387_s4 + $0x680] sm:$0xff]  ;;  %v5378_v61 = vld [vmem:[%s8387_s4 + $0x3c8] sm:$0xff] }
 0x202   : > { %2326 = vmatprep.subr.mxu1 %v2284_v42  ;;  %v5385_v42 = vld [vmem:[%s8387_s4 + $0x400] sm:$0xff] }
 0x203   : > { %2327 = vmatpush1.msra.mxu1 %v2283_v36  ;;  %v1901_v28 = vrot.slane %v6831_v54, 1  ;;  %v2319_v49 = vrot.slane %v6831_v54, 3  ;;  %v2146_v57 = vrot.slane %v6831_v54, 2  ;;  %v6868_v1 = vsel %vm417_vm1, %v1897_v55, %v1898_v6 }
 0x204   : > { %2328 = vmatprep.subr.mxu1 %v2282_v52  ;;  %v2101_v36 = vunpack.c.h.bf16 %v5386_v43  ;;  %v2100_v52 = vunpack.c.l.bf16 %v5386_v43  ;;  %v2263_v6 = vunpack.c.l.bf16 %v5412_v37  ;;  %v5435_v43 = vld [vmem:[%s8387_s4 + $0x678] sm:$0xff] }
 0x205   : > { %2329 = vmatpush1.msra.mxu1 %v2281_v2  ;;  %v6849_v38 = vsel %vm417_vm1, %v1900_v62, %v1901_v28  ;;  %v6853_v8 = vsel %vm752_vm4, %v2318_v5, %v2319_v49  ;;  %v6875_v0 = vsel %vm630_vm3, %v2145_v15, %v2146_v57  ;;  %v2266_v2 = vunpack.c.h.bf16 %v5413_v25  ;;  %v5411_v62 = vld [vmem:[%s8387_s4 + $0x5b8] sm:$0xff]  ;;  %v5383_v49 = vld [vmem:[%s8387_s4 + $0x3f0] sm:$0xff] }
 0x206   : > { %2330 = vmatprep.subr.mxu1 %v2280_v46  ;;  %5375 = vmatprep.mubr.msk.f32.mxu0 %vm1904_vm6, %v6849_v38  ;;  %v2099_v46 = vunpack.c.h.bf16 %v5385_v42  ;;  %v2098_v28 = vunpack.c.l.bf16 %v5385_v42  ;;  %v2264_v5 = vunpack.c.h.bf16 %v5412_v37  ;;  %v2096_v57 = vunpack.c.l.bf16 %v5384_v3  ;;  %v5434_v42 = vld [vmem:[%s8387_s4 + $0x670] sm:$0xff]  ;;  %v5406_v37 = vld [vmem:[%s8387_s4 + $0x4a8] sm:$0xff] }
 0x207   : > { %2331 = vmatpush1.msra.mxu1 %v2279_v32  ;;  %5438 = vmatprep.mubr.msk.f32.mxu1 %vm1904_vm6, %v6853_v8  ;;  %v2265_v32 = vunpack.c.l.bf16 %v5413_v25  ;;  %v2262_v59 = vunpack.c.h.bf16 %v5411_v62  ;;  %v2261_v55 = vunpack.c.l.bf16 %v5411_v62  ;;  %v2095_v51 = vunpack.c.h.bf16 %v5383_v49  ;;  %v5377_v25 = vld [vmem:[%s8387_s4 + $0x3c0] sm:$0xff]  ;;  %v5433_v3 = vld [vmem:[%s8387_s4 + $0x668] sm:$0xff] }
 0x208   : > { %1972 = vmatmul.mubr.f32.vlgmr.msra.gmra.mxu0 %v6868_v1  ;;  %2332 = vmatprep.subr.mxu1 %v2278_v47  ;;  %v5410_v47 = vld [vmem:[%s8387_s4 + $0x5b0] sm:$0xff]  ;;  %v5405_v62 = vld [vmem:[%s8387_s4 + $0x4a0] sm:$0xff] }
 0x209   : > { %2152 = vmatpush1.msra.mxu0 %v2112_v45  ;;  %5407 = vmatprep.mubr.msk.f32.mxu0 %vm1904_vm6, %v6875_v0  ;;  %v5382_v45 = vld [vmem:[%s8387_s4 + $0x3e8] sm:$0xff]  ;;  %v2260_v15 = vunpack.c.h.bf16 %v5410_v47 }
 0x20a   : > { %2153 = vmatprep.subr.mxu0 %v2111_v14  ;;  %2333 = vmatpush1.msra.mxu1 %v2277_v11  ;;  %v5409_v11 = vld [vmem:[%s8387_s4 + $0x5a8] sm:$0xff]  ;;  %v2094_v14 = vunpack.c.l.bf16 %v5383_v49  ;;  %v5432_v49 = vld [vmem:[%s8387_s4 + $0x660] sm:$0xff] }
 0x20b   : > { %2154 = vmatpush1.msra.mxu0 %v2110_v58  ;;  %2334 = vmatprep.subr.mxu1 %v2276_v16  ;;  %v2259_v58 = vunpack.c.l.bf16 %v5410_v47  ;;  %v2093_v16 = vunpack.c.h.bf16 %v5382_v45  ;;  %v5404_v47 = vld [vmem:[%s8387_s4 + $0x498] sm:$0xff] }
 0x20c   : > { %2155 = vmatprep.subr.mxu0 %v2109_v48  ;;  %2335 = vmatpush1.msra.mxu1 %v2275_v17  ;;  %v2092_v17 = vunpack.c.l.bf16 %v5382_v45  ;;  %v2258_v48 = vunpack.c.h.bf16 %v5409_v11  ;;  %v5431_v45 = vld [vmem:[%s8387_s4 + $0x658] sm:$0xff] }
 0x20d   : > { %2156 = vmatpush1.msra.mxu0 %v2108_v21  ;;  %2336 = vmatprep.subr.mxu1 %v2274_v22  ;;  %v2257_v21 = vunpack.c.l.bf16 %v5409_v11  ;;  %v2091_v22 = vunpack.c.h.bf16 %v5381_v53  ;;  %v5403_v11 = vld [vmem:[%s8387_s4 + $0x490] sm:$0xff] }
 0x20e   : > { %2157 = vmatprep.subr.mxu0 %v2107_v27  ;;  %2337 = vmatpush1.msra.mxu1 %v2273_v29  ;;  %v2090_v29 = vunpack.c.l.bf16 %v5381_v53  ;;  %v2256_v27 = vunpack.c.h.bf16 %v5408_v50  ;;  %v5430_v53 = vld [vmem:[%s8387_s4 + $0x650] sm:$0xff] }
 0x20f   : > { %2158 = vmatpush1.msra.mxu0 %v2106_v12  ;;  %2338 = vmatprep.subr.mxu1 %v2272_v31  ;;  %v2255_v12 = vunpack.c.l.bf16 %v5408_v50  ;;  %v2089_v31 = vunpack.c.h.bf16 %v5380_v4  ;;  %v5402_v50 = vld [vmem:[%s8387_s4 + $0x488] sm:$0xff] }
 0x210   : > { %2159 = vmatprep.subr.mxu0 %v2105_v41  ;;  %2339 = vmatpush1.msra.mxu1 %v2271_v63  ;;  %v2088_v63 = vunpack.c.l.bf16 %v5380_v4  ;;  %v2314_v41 = vunpack.c.h.bf16 %v5437_v23  ;;  %v5429_v4 = vld [vmem:[%s8387_s4 + $0x648] sm:$0xff] }
 0x211   : > { %2160 = vmatpush1.msra.mxu0 %v2104_v9  ;;  %2340 = vmatprep.subr.mxu1 %v2270_v10  ;;  %v2313_v9 = vunpack.c.l.bf16 %v5437_v23  ;;  %v2087_v10 = vunpack.c.h.bf16 %v5379_v30  ;;  %v5401_v23 = vld [vmem:[%s8387_s4 + $0x480] sm:$0xff] }
 0x212   : > { %2161 = vmatprep.subr.mxu0 %v2103_v39  ;;  %2341 = vmatpush1.msra.mxu1 %v2269_v44  ;;  %v2086_v44 = vunpack.c.l.bf16 %v5379_v30  ;;  %v2312_v39 = vunpack.c.h.bf16 %v5436_v35  ;;  %v5428_v30 = vld [vmem:[%s8387_s4 + $0x640] sm:$0xff] }
 0x213   : > { %2162 = vmatpush1.msra.mxu0 %v2102_v40  ;;  %2342 = vmatprep.subr.mxu1 %v2268_v13  ;;  %v2311_v40 = vunpack.c.l.bf16 %v5436_v35  ;;  %v2085_v13 = vunpack.c.h.bf16 %v5378_v61  ;;  %v5400_v35 = vld [vmem:[%s8387_s4 + $0x478] sm:$0xff] }
 0x214   : > { %2163 = vmatprep.subr.mxu0 %v2101_v36  ;;  %2343 = vmatpush1.msra.mxu1 %v2267_v33  ;;  %v2084_v33 = vunpack.c.l.bf16 %v5378_v61  ;;  %v2310_v36 = vunpack.c.h.bf16 %v5435_v43  ;;  %v5427_v61 = vld [vmem:[%s8387_s4 + $0x638] sm:$0xff] }
 0x215   : > { %2164 = vmatpush1.msra.mxu0 %v2100_v52  ;;  %2344 = vmatprep.subr.mxu1 %v2266_v2  ;;  %v2309_v52 = vunpack.c.l.bf16 %v5435_v43  ;;  %v2083_v2 = vunpack.c.h.bf16 %v5377_v25  ;;  %v5399_v43 = vld [vmem:[%s8387_s4 + $0x470] sm:$0xff] }
 0x216   : > { %2165 = vmatprep.subr.mxu0 %v2099_v46  ;;  %2345 = vmatpush1.msra.mxu1 %v2265_v32  ;;  %v2082_v32 = vunpack.c.l.bf16 %v5377_v25  ;;  %v2308_v46 = vunpack.c.h.bf16 %v5434_v42  ;;  %v5426_v25 = vld [vmem:[%s8387_s4 + $0x630] sm:$0xff] }
 0x217   : > { %2166 = vmatpush1.msra.mxu0 %v2098_v28  ;;  %2346 = vmatprep.subr.mxu1 %v2264_v5  ;;  %v2307_v28 = vunpack.c.l.bf16 %v5434_v42  ;;  %v2141_v5 = vunpack.c.h.bf16 %v5406_v37  ;;  %v5398_v42 = vld [vmem:[%s8387_s4 + $0x468] sm:$0xff] }
 0x218   : > { %2167 = vmatprep.subr.mxu0 %v2097_v7  ;;  %2347 = vmatpush1.msra.mxu1 %v2263_v6  ;;  %v2140_v6 = vunpack.c.l.bf16 %v5406_v37  ;;  %v2306_v7 = vunpack.c.h.bf16 %v5433_v3  ;;  %v5425_v37 = vld [vmem:[%s8387_s4 + $0x628] sm:$0xff] }
 0x219   : > { %2168 = vmatpush1.msra.mxu0 %v2096_v57  ;;  %2348 = vmatprep.subr.mxu1 %v2262_v59  ;;  %v2305_v57 = vunpack.c.l.bf16 %v5433_v3  ;;  %v2139_v59 = vunpack.c.h.bf16 %v5405_v62  ;;  %v5397_v3 = vld [vmem:[%s8387_s4 + $0x460] sm:$0xff] }
 0x21a   : > { %2169 = vmatprep.subr.mxu0 %v2095_v51  ;;  %2349 = vmatpush1.msra.mxu1 %v2261_v55  ;;  %v2138_v55 = vunpack.c.l.bf16 %v5405_v62  ;;  %v2304_v51 = vunpack.c.h.bf16 %v5432_v49  ;;  %v5424_v62 = vld [vmem:[%s8387_s4 + $0x620] sm:$0xff] }
 0x21b   : > { %2170 = vmatpush1.msra.mxu0 %v2094_v14  ;;  %2350 = vmatprep.subr.mxu1 %v2260_v15  ;;  %v2303_v14 = vunpack.c.l.bf16 %v5432_v49  ;;  %v2137_v15 = vunpack.c.h.bf16 %v5404_v47  ;;  %v5396_v49 = vld [vmem:[%s8387_s4 + $0x458] sm:$0xff] }
 0x21c   : > { %2171 = vmatprep.subr.mxu0 %v2093_v16  ;;  %2351 = vmatpush1.msra.mxu1 %v2259_v58  ;;  %v2136_v58 = vunpack.c.l.bf16 %v5404_v47  ;;  %v2302_v16 = vunpack.c.h.bf16 %v5431_v45  ;;  %v2122_v47 = vunpack.c.l.bf16 %v5397_v3 }
 0x21d   : > { %2172 = vmatpush1.msra.mxu0 %v2092_v17  ;;  %2352 = vmatprep.subr.mxu1 %v2258_v48  ;;  %v2301_v17 = vunpack.c.l.bf16 %v5431_v45  ;;  %v2135_v48 = vunpack.c.h.bf16 %v5403_v11  ;;  %v5395_v45 = vld [vmem:[%s8387_s4 + $0x450] sm:$0xff] }
 0x21e   : > { %2173 = vmatprep.subr.mxu0 %v2091_v22  ;;  %2353 = vmatpush1.msra.mxu1 %v2257_v21  ;;  %v2134_v21 = vunpack.c.l.bf16 %v5403_v11  ;;  %v2300_v22 = vunpack.c.h.bf16 %v5430_v53  ;;  %v2316_v11 = vrot.slane %v6823_v56, 3 }
 0x21f   : > { %2174 = vmatpush1.msra.mxu0 %v2090_v29  ;;  %2354 = vmatprep.subr.mxu1 %v2256_v27  ;;  %v2299_v29 = vunpack.c.l.bf16 %v5430_v53  ;;  %v2133_v27 = vunpack.c.h.bf16 %v5402_v50  ;;  %v2315_v53 = vrot.slane %v6821_v24, 3 }
 0x220   : > { %2175 = vmatprep.subr.mxu0 %v2089_v31  ;;  %2355 = vmatpush1.msra.mxu1 %v2255_v12  ;;  %v2132_v12 = vunpack.c.l.bf16 %v5402_v50  ;;  %v2298_v31 = vunpack.c.h.bf16 %v5429_v4  ;;  %v5394_v50 = vld [vmem:[%s8387_s4 + $0x448] sm:$0xff] }
 0x221   : > { %2176 = vmatpush1.msra.mxu0 %v2088_v63  ;;  %2360 = vmatprep.subr.mxu1 %v2314_v41  ;;  %v2297_v63 = vunpack.c.l.bf16 %v5429_v4  ;;  %v2131_v41 = vunpack.c.h.bf16 %v5401_v23  ;;  %v7035_v4 = vsel %vm752_vm4, %v2315_v53, %v2316_v11 }
 0x222   : > { %2177 = vmatprep.subr.mxu0 %v2087_v10  ;;  %2361 = vmatpush2.msra.mxu1 %v2313_v9  ;;  %v2130_v9 = vunpack.c.l.bf16 %v5401_v23  ;;  %v2296_v10 = vunpack.c.h.bf16 %v5428_v30  ;;  %v5393_v23 = vld [vmem:[%s8387_s4 + $0x440] sm:$0xff] }
 0x223   : > { %2178 = vmatpush1.msra.mxu0 %v2086_v44  ;;  %2362 = vmatprep.subr.mxu1 %v2312_v39  ;;  %v2295_v44 = vunpack.c.l.bf16 %v5428_v30  ;;  %v2129_v39 = vunpack.c.h.bf16 %v5400_v35  ;;  %v5512_v30 = vld [vmem:[%s8387_s4 + $0x330] sm:$0xff] }
 0x224   : > { %2179 = vmatprep.subr.mxu0 %v2085_v13  ;;  %2363 = vmatpush2.msra.mxu1 %v2311_v40  ;;  %v2128_v40 = vunpack.c.l.bf16 %v5400_v35  ;;  %v2294_v13 = vunpack.c.h.bf16 %v5427_v61  ;;  %v5454_v35 = vld [vmem:[%s8387_s4 + $0x7f8] sm:$0xff] }
 0x225   : > { %2180 = vmatpush1.msra.mxu0 %v2084_v33  ;;  %2364 = vmatprep.subr.mxu1 %v2310_v36  ;;  %v2293_v33 = vunpack.c.l.bf16 %v5427_v61  ;;  %v2127_v36 = vunpack.c.h.bf16 %v5399_v43  ;;  %v2114_v61 = vunpack.c.l.bf16 %v5393_v23 }
 0x226   : > { %2181 = vmatprep.subr.mxu0 %v2083_v2  ;;  %2365 = vmatpush2.msra.mxu1 %v2309_v52  ;;  %v2126_v52 = vunpack.c.l.bf16 %v5399_v43  ;;  %v2292_v2 = vunpack.c.h.bf16 %v5426_v25  ;;  %v5511_v43 = vld [vmem:[%s8387_s4 + $0x328] sm:$0xff] }
 0x227   : > { %2182 = vmatpush1.msra.mxu0 %v2082_v32  ;;  %2366 = vmatprep.subr.mxu1 %v2308_v46  ;;  %v2291_v32 = vunpack.c.l.bf16 %v5426_v25  ;;  %v2125_v46 = vunpack.c.h.bf16 %v5398_v42  ;;  %v2142_v25 = vrot.slane %v6821_v24, 2 }
 0x228   : > { %2187 = vmatprep.subr.mxu0 %v2141_v5  ;;  %2367 = vmatpush2.msra.mxu1 %v2307_v28  ;;  %v2124_v28 = vunpack.c.l.bf16 %v5398_v42  ;;  %v2290_v5 = vunpack.c.h.bf16 %v5425_v37  ;;  %v5510_v42 = vld [vmem:[%s8387_s4 + $0x320] sm:$0xff] }
 0x229   : > { %2188 = vmatpush2.msra.mxu0 %v2140_v6  ;;  %2368 = vmatprep.subr.mxu1 %v2306_v7  ;;  %v2289_v6 = vunpack.c.l.bf16 %v5425_v37  ;;  %v2123_v7 = vunpack.c.h.bf16 %v5397_v3  ;;  %v5509_v3 = vld [vmem:[%s8387_s4 + $0x318] sm:$0xff] }
 0x22a   : > { %2189 = vmatprep.subr.mxu0 %v2139_v59  ;;  %2369 = vmatpush2.msra.mxu1 %v2305_v57  ;;  %v2288_v57 = vunpack.c.h.bf16 %v5424_v62  ;;  %v5515_v59 = vld [vmem:[%s8387_s4 + $0x348] sm:$0xff] }
 0x22b   : > { %2190 = vmatpush2.msra.mxu0 %v2138_v55  ;;  %2370 = vmatprep.subr.mxu1 %v2304_v51  ;;  %v2287_v55 = vunpack.c.l.bf16 %v5424_v62  ;;  %v2121_v51 = vunpack.c.h.bf16 %v5396_v49  ;;  %v5451_v62 = vld [vmem:[%s8387_s4 + $0x7e0] sm:$0xff] }
 0x22c   : > { %2191 = vmatprep.subr.mxu0 %v2137_v15  ;;  %2371 = vmatpush2.msra.mxu1 %v2303_v14  ;;  %v2120_v14 = vunpack.c.l.bf16 %v5396_v49  ;;  %v5514_v15 = vld [vmem:[%s8387_s4 + $0x340] sm:$0xff] }
 0x22d   : > { %2192 = vmatpush2.msra.mxu0 %v2136_v58  ;;  %2372 = vmatprep.subr.mxu1 %v2302_v16  ;;  %v2723_v58 = vunpack.c.h.bf16 %v5515_v59  ;;  %v2119_v16 = vunpack.c.h.bf16 %v5395_v45 }
 0x22e   : > { %2193 = vmatprep.subr.mxu0 %v2135_v48  ;;  %2373 = vmatpush2.msra.mxu1 %v2301_v17  ;;  %v2722_v17 = vunpack.c.l.bf16 %v5515_v59  ;;  %v5513_v48 = vld [vmem:[%s8387_s4 + $0x338] sm:$0xff]  ;;  %v2710_v59 = vunpack.c.l.bf16 %v5509_v3 }
 0x22f   : > { %2194 = vmatpush2.msra.mxu0 %v2134_v21  ;;  %2374 = vmatprep.subr.mxu1 %v2300_v22  ;;  %v2118_v21 = vunpack.c.l.bf16 %v5395_v45  ;;  %v2721_v22 = vunpack.c.h.bf16 %v5514_v15  ;;  %v2453_v45 = vunpack.c.h.bf16 %v5451_v62 }
 0x230   : > { %2195 = vmatprep.subr.mxu0 %v2133_v27  ;;  %2375 = vmatpush2.msra.mxu1 %v2299_v29  ;;  %v2720_v29 = vunpack.c.l.bf16 %v5514_v15  ;;  %v2117_v27 = vunpack.c.h.bf16 %v5394_v50 }
 0x231   : > { %2196 = vmatpush2.msra.mxu0 %v2132_v12  ;;  %2376 = vmatprep.subr.mxu1 %v2298_v31  ;;  %v2116_v12 = vunpack.c.l.bf16 %v5394_v50  ;;  %v2719_v31 = vunpack.c.h.bf16 %v5513_v48 }
 0x232   : > { %2197 = vmatprep.subr.mxu0 %v2131_v41  ;;  %2377 = vmatpush2.msra.mxu1 %v2297_v63  ;;  %v2718_v63 = vunpack.c.l.bf16 %v5513_v48  ;;  %v2115_v41 = vunpack.c.h.bf16 %v5393_v23 }
 0x233   : > { %2198 = vmatpush2.msra.mxu0 %v2130_v9  ;;  %2378 = vmatprep.subr.mxu1 %v2296_v10  ;;  %v2717_v9 = vunpack.c.h.bf16 %v5512_v30  ;;  %v2143_v10 = vrot.slane %v6823_v56, 2 }
 0x234   : > { %2199 = vmatprep.subr.mxu0 %v2129_v39  ;;  %2379 = vmatpush2.msra.mxu1 %v2295_v44  ;;  %v2459_v44 = vunpack.c.h.bf16 %v5454_v35  ;;  %v5453_v39 = vld [vmem:[%s8387_s4 + $0x7f0] sm:$0xff] }
 0x235   : > { %2200 = vmatpush2.msra.mxu0 %v2128_v40  ;;  %2380 = vmatprep.subr.mxu1 %v2294_v13  ;;  %v2458_v40 = vunpack.c.l.bf16 %v5454_v35  ;;  %v2492_v13 = vrot.slane %v6831_v54, 4  ;;  %v7065_v37 = vsel %vm630_vm3, %v2142_v25, %v2143_v10  ;;  %v2457_v54 = vunpack.c.h.bf16 %v5453_v39  ;;  %v5503_v10 = vld [vmem:[%s8387_s4 + $0x2e8] sm:$0xff] }
 0x236   : > { %2201 = vmatprep.subr.mxu0 %v2127_v36  ;;  %2381 = vmatpush2.msra.mxu1 %v2293_v33  ;;  %v2715_v33 = vunpack.c.h.bf16 %v5511_v43  ;;  %v5452_v36 = vld [vmem:[%s8387_s4 + $0x7e8] sm:$0xff] }
 0x237   : > { %2202 = vmatpush2.msra.mxu0 %v2126_v52  ;;  %2382 = vmatprep.subr.mxu1 %v2292_v2  ;;  %v2491_v52 = vrot.slane %v6815_v60, 4  ;;  %v2714_v2 = vunpack.c.l.bf16 %v5511_v43  ;;  %v2455_v49 = vunpack.c.h.bf16 %v5452_v36 }
 0x238   : > { %2203 = vmatprep.subr.mxu0 %v2125_v46  ;;  %2383 = vmatpush2.msra.mxu1 %v2291_v32  ;;  %v2456_v32 = vunpack.c.l.bf16 %v5453_v39  ;;  %v2713_v46 = vunpack.c.h.bf16 %v5510_v42  ;;  %v5445_v39 = vld [vmem:[%s8387_s4 + $0x7b0] sm:$0xff] }
 0x239   : > { %2204 = vmatpush2.msra.mxu0 %v2124_v28  ;;  %2384 = vmatprep.subr.mxu1 %v2290_v5  ;;  %v7076_v28 = vsel %vm432_vm0, %v2491_v52, %v2492_v13  ;;  %v2712_v5 = vunpack.c.l.bf16 %v5510_v42  ;;  %v2699_v42 = vunpack.c.h.bf16 %v5503_v10  ;;  %v2441_v52 = vunpack.c.h.bf16 %v5445_v39 }
 0x23a   : > { %2205 = vmatprep.subr.mxu0 %v2123_v7  ;;  %2385 = vmatpush2.msra.mxu1 %v2289_v6  ;;  %v5508_v6 = vld [vmem:[%s8387_s4 + $0x310] sm:$0xff]  ;;  %v2454_v7 = vunpack.c.l.bf16 %v5452_v36  ;;  %v2698_v36 = vunpack.c.l.bf16 %v5503_v10 }
 0x23b   : > { %2206 = vmatpush2.msra.mxu0 %v2122_v47  ;;  %2386 = vmatprep.subr.mxu1 %v2288_v57  ;;  %v2711_v47 = vunpack.c.h.bf16 %v5509_v3  ;;  %v5450_v57 = vld [vmem:[%s8387_s4 + $0x7d8] sm:$0xff]  ;;  %v2709_v11 = vunpack.c.h.bf16 %v5508_v6  ;;  %v2708_v15 = vunpack.c.l.bf16 %v5508_v6 }
 0x23c   : > { %2207 = vmatprep.subr.mxu0 %v2121_v51  ;;  %2387 = vmatpush2.msra.mxu1 %v2287_v55  ;;  %v5507_v55 = vld [vmem:[%s8387_s4 + $0x308] sm:$0xff]  ;;  %v2452_v51 = vunpack.c.l.bf16 %v5451_v62  ;;  %v2451_v53 = vunpack.c.h.bf16 %v5450_v57 }
 0x23d   : > { %2208 = vmatpush2.msra.mxu0 %v2120_v14  ;;  %2389 = vmatmul.mubr.f32.vlgmr.msra.gmra.mxu1 %v7035_v4  ;;  %v5449_v14 = vld [vmem:[%s8387_s4 + $0x7d0] sm:$0xff]  ;;  %v2707_v50 = vunpack.c.h.bf16 %v5507_v55  ;;  %v2706_v48 = vunpack.c.l.bf16 %v5507_v55 }
 0x23e   : > { %2752 = vmatprep.subr.mxu1 %v2723_v58  ;;  %2209 = vmatprep.subr.mxu0 %v2119_v16  ;;  %v5506_v58 = vld [vmem:[%s8387_s4 + $0x300] sm:$0xff]  ;;  %v2450_v16 = vunpack.c.l.bf16 %v5450_v57  ;;  %v2448_v23 = vunpack.c.l.bf16 %v5449_v14 }
 0x23f   : > { %2753 = vmatpush1.msra.mxu1 %v2722_v17  ;;  %5530 = vmatprep.mubr.msk.f32.mxu1 %vm1904_vm6, %v6849_v38  ;;  %v2716_v38 = vunpack.c.l.bf16 %v5512_v30  ;;  %v5448_v17 = vld [vmem:[%s8387_s4 + $0x7c8] sm:$0xff]  ;;  %v2704_v30 = vunpack.c.l.bf16 %v5506_v58 }
 0x240   : > { %2210 = vmatpush2.msra.mxu0 %v2118_v21  ;;  %2754 = vmatprep.subr.mxu1 %v2721_v22  ;;  %v2449_v21 = vunpack.c.h.bf16 %v5449_v14  ;;  %v5505_v22 = vld [vmem:[%s8387_s4 + $0x2f8] sm:$0xff]  ;;  %v2446_v35 = vunpack.c.l.bf16 %v5448_v17 }
 0x241   : > { %2211 = vmatprep.subr.mxu0 %v2117_v27  ;;  %2755 = vmatpush1.msra.mxu1 %v2720_v29  ;;  %v2705_v29 = vunpack.c.h.bf16 %v5506_v58  ;;  %v5447_v27 = vld [vmem:[%s8387_s4 + $0x7c0] sm:$0xff] }
 0x242   : > { %2212 = vmatpush2.msra.mxu0 %v2116_v12  ;;  %2756 = vmatprep.subr.mxu1 %v2719_v31  ;;  %v2447_v12 = vunpack.c.h.bf16 %v5448_v17  ;;  %v5504_v31 = vld [vmem:[%s8387_s4 + $0x2f0] sm:$0xff]  ;;  %v2444_v43 = vunpack.c.l.bf16 %v5447_v27 }
 0x243   : > { %2213 = vmatprep.subr.mxu0 %v2115_v41  ;;  %2757 = vmatpush1.msra.mxu1 %v2718_v63  ;;  %v2703_v63 = vunpack.c.h.bf16 %v5505_v22  ;;  %v5446_v41 = vld [vmem:[%s8387_s4 + $0x7b8] sm:$0xff] }
 0x244   : > { %2214 = vmatpush2.msra.mxu0 %v2114_v61  ;;  %2758 = vmatprep.subr.mxu1 %v2717_v9  ;;  %v2702_v61 = vunpack.c.l.bf16 %v5505_v22  ;;  %v2445_v9 = vunpack.c.h.bf16 %v5447_v27  ;;  %v2443_v25 = vunpack.c.h.bf16 %v5446_v41  ;;  %v2442_v13 = vunpack.c.l.bf16 %v5446_v41 }
 0x245   : > { %2216 = vmatmul.mubr.f32.vlgmr.msra.gmra.mxu0 %v7065_v37  ;;  %2497 = vmatprep.subr.mxu0 %v2459_v44  ;;  %v2701_v44 = vunpack.c.h.bf16 %v5504_v31 }
 0x246   : > { %2759 = vmatpush1.msra.mxu1 %v2716_v38  ;;  %2498 = vmatpush1.msra.mxu0 %v2458_v40  ;;  %v2700_v38 = vunpack.c.l.bf16 %v5504_v31  ;;  %v5502_v40 = vld [vmem:[%s8387_s4 + $0x2e0] sm:$0xff] }
 0x247   : > { %5469 = vmatprep.mubr.msk.f32.mxu0 %vm1904_vm6, %v7076_v28  ;;  %2760 = vmatprep.subr.mxu1 %v2715_v33  ;;  %v5444_v33 = vld [vmem:[%s8387_s4 + $0x7a8] sm:$0xff]  ;;  %v2697_v3 = vunpack.c.h.bf16 %v5502_v40 }
 0x248   : > { %2499 = vmatprep.subr.mxu0 %v2457_v54  ;;  %2761 = vmatpush1.msra.mxu1 %v2714_v2  ;;  %v5501_v2 = vld [vmem:[%s8387_s4 + $0x2d8] sm:$0xff]  ;;  %v2440_v54 = vunpack.c.l.bf16 %v5445_v39  ;;  %v2439_v62 = vunpack.c.h.bf16 %v5444_v33 }
 0x249   : > { %2500 = vmatpush1.msra.mxu0 %v2456_v32  ;;  %2762 = vmatprep.subr.mxu1 %v2713_v46  ;;  %v5443_v32 = vld [vmem:[%s8387_s4 + $0x7a0] sm:$0xff]  ;;  %v2696_v46 = vunpack.c.l.bf16 %v5502_v40  ;;  %v2695_v6 = vunpack.c.h.bf16 %v5501_v2 }
 0x24a   : > { %2501 = vmatprep.subr.mxu0 %v2455_v49  ;;  %2763 = vmatpush1.msra.mxu1 %v2712_v5  ;;  %v5500_v5 = vld [vmem:[%s8387_s4 + $0x2d0] sm:$0xff]  ;;  %v2438_v49 = vunpack.c.l.bf16 %v5444_v33  ;;  %v2437_v57 = vunpack.c.h.bf16 %v5443_v32 }
 0x24b   : > { %2502 = vmatpush1.msra.mxu0 %v2454_v7  ;;  %2764 = vmatprep.subr.mxu1 %v2711_v47  ;;  %v5442_v7 = vld [vmem:[%s8387_s4 + $0x798] sm:$0xff]  ;;  %v2694_v47 = vunpack.c.l.bf16 %v5501_v2  ;;  %v2693_v55 = vunpack.c.h.bf16 %v5500_v5 }
 0x24c   : > { %2503 = vmatprep.subr.mxu0 %v2453_v45  ;;  %2765 = vmatpush1.msra.mxu1 %v2710_v59  ;;  %v5529_v59 = vld [vmem:[%s8387_s4 + $0x3b8] sm:$0xff]  ;;  %v2436_v45 = vunpack.c.l.bf16 %v5443_v32  ;;  %v2435_v14 = vunpack.c.h.bf16 %v5442_v7 }
 0x24d   : > { %2504 = vmatpush1.msra.mxu0 %v2452_v51  ;;  %2766 = vmatprep.subr.mxu1 %v2709_v11  ;;  %v5441_v51 = vld [vmem:[%s8387_s4 + $0x790] sm:$0xff]  ;;  %v2692_v11 = vunpack.c.l.bf16 %v5500_v5  ;;  %v2751_v58 = vunpack.c.h.bf16 %v5529_v59 }
 0x24e   : > { %2505 = vmatprep.subr.mxu0 %v2451_v53  ;;  %2767 = vmatpush1.msra.mxu1 %v2708_v15  ;;  %v5528_v15 = vld [vmem:[%s8387_s4 + $0x3b0] sm:$0xff]  ;;  %v2434_v53 = vunpack.c.l.bf16 %v5442_v7  ;;  %v2433_v17 = vunpack.c.h.bf16 %v5441_v51 }
 0x24f   : > { %2506 = vmatpush1.msra.mxu0 %v2450_v16  ;;  %2768 = vmatprep.subr.mxu1 %v2707_v50  ;;  %v5440_v16 = vld [vmem:[%s8387_s4 + $0x788] sm:$0xff]  ;;  %v2750_v50 = vunpack.c.l.bf16 %v5529_v59  ;;  %v2749_v22 = vunpack.c.h.bf16 %v5528_v15 }
 0x250   : > { %2507 = vmatprep.subr.mxu0 %v2449_v21  ;;  %2769 = vmatpush1.msra.mxu1 %v2706_v48  ;;  %v5527_v48 = vld [vmem:[%s8387_s4 + $0x3a8] sm:$0xff]  ;;  %v2432_v21 = vunpack.c.l.bf16 %v5441_v51  ;;  %v2431_v27 = vunpack.c.h.bf16 %v5440_v16 }
 0x251   : > { %2508 = vmatpush1.msra.mxu0 %v2448_v23  ;;  %2770 = vmatprep.subr.mxu1 %v2705_v29  ;;  %v5439_v23 = vld [vmem:[%s8387_s4 + $0x780] sm:$0xff]  ;;  %v2748_v29 = vunpack.c.l.bf16 %v5528_v15  ;;  %v2747_v31 = vunpack.c.h.bf16 %v5527_v48 }
 0x252   : > { %2509 = vmatprep.subr.mxu0 %v2447_v12  ;;  %2771 = vmatpush1.msra.mxu1 %v2704_v30  ;;  %v5526_v30 = vld [vmem:[%s8387_s4 + $0x3a0] sm:$0xff]  ;;  %v2430_v12 = vunpack.c.l.bf16 %v5440_v16  ;;  %v2429_v41 = vunpack.c.h.bf16 %v5439_v23 }
 0x253   : > { %2510 = vmatpush1.msra.mxu0 %v2446_v35  ;;  %2772 = vmatprep.subr.mxu1 %v2703_v63  ;;  %v5468_v35 = vld [vmem:[%s8387_s4 + $0x868] sm:$0xff]  ;;  %v2746_v63 = vunpack.c.l.bf16 %v5527_v48  ;;  %v2745_v10 = vunpack.c.h.bf16 %v5526_v30 }
 0x254   : > { %2511 = vmatprep.subr.mxu0 %v2445_v9  ;;  %2773 = vmatpush1.msra.mxu1 %v2702_v61  ;;  %v5525_v61 = vld [vmem:[%s8387_s4 + $0x398] sm:$0xff]  ;;  %v2428_v9 = vunpack.c.l.bf16 %v5439_v23  ;;  %v2487_v39 = vunpack.c.h.bf16 %v5468_v35 }
 0x255   : > { %2512 = vmatpush1.msra.mxu0 %v2444_v43  ;;  %2774 = vmatprep.subr.mxu1 %v2701_v44  ;;  %v5467_v43 = vld [vmem:[%s8387_s4 + $0x860] sm:$0xff]  ;;  %v2744_v44 = vunpack.c.l.bf16 %v5526_v30  ;;  %v2743_v40 = vunpack.c.h.bf16 %v5525_v61 }
 0x256   : > { %2513 = vmatprep.subr.mxu0 %v2443_v25  ;;  %2775 = vmatpush1.msra.mxu1 %v2700_v38  ;;  %v5524_v38 = vld [vmem:[%s8387_s4 + $0x390] sm:$0xff]  ;;  %v2486_v25 = vunpack.c.l.bf16 %v5468_v35  ;;  %v2485_v33 = vunpack.c.h.bf16 %v5467_v43 }
 0x257   : > { %2514 = vmatpush1.msra.mxu0 %v2442_v13  ;;  %2776 = vmatprep.subr.mxu1 %v2699_v42  ;;  %v5466_v13 = vld [vmem:[%s8387_s4 + $0x858] sm:$0xff]  ;;  %v2742_v42 = vunpack.c.l.bf16 %v5525_v61  ;;  %v2741_v2 = vunpack.c.h.bf16 %v5524_v38 }
 0x258   : > { %2515 = vmatprep.subr.mxu0 %v2441_v52  ;;  %2777 = vmatpush1.msra.mxu1 %v2698_v36  ;;  %v5523_v36 = vld [vmem:[%s8387_s4 + $0x388] sm:$0xff]  ;;  %v2484_v52 = vunpack.c.l.bf16 %v5467_v43  ;;  %v2483_v32 = vunpack.c.h.bf16 %v5466_v13 }
 0x259   : > { %2516 = vmatpush1.msra.mxu0 %v2440_v54  ;;  %2778 = vmatprep.subr.mxu1 %v2697_v3  ;;  %v5465_v54 = vld [vmem:[%s8387_s4 + $0x850] sm:$0xff]  ;;  %v2740_v3 = vunpack.c.l.bf16 %v5524_v38  ;;  %v2739_v5 = vunpack.c.h.bf16 %v5523_v36 }
 0x25a   : > { %2517 = vmatprep.subr.mxu0 %v2439_v62  ;;  %2779 = vmatpush1.msra.mxu1 %v2696_v46  ;;  %v5522_v46 = vld [vmem:[%s8387_s4 + $0x380] sm:$0xff]  ;;  %v2482_v62 = vunpack.c.l.bf16 %v5466_v13  ;;  %v2481_v7 = vunpack.c.h.bf16 %v5465_v54 }
 0x25b   : > { %2518 = vmatpush1.msra.mxu0 %v2438_v49  ;;  %2780 = vmatprep.subr.mxu1 %v2695_v6  ;;  %v5464_v49 = vld [vmem:[%s8387_s4 + $0x848] sm:$0xff]  ;;  %v2738_v6 = vunpack.c.l.bf16 %v5523_v36  ;;  %v2737_v59 = vunpack.c.h.bf16 %v5522_v46 }
 0x25c   : > { %2519 = vmatprep.subr.mxu0 %v2437_v57  ;;  %2781 = vmatpush1.msra.mxu1 %v2694_v47  ;;  %v5521_v47 = vld [vmem:[%s8387_s4 + $0x378] sm:$0xff]  ;;  %v2480_v57 = vunpack.c.l.bf16 %v5465_v54  ;;  %v2479_v51 = vunpack.c.h.bf16 %v5464_v49  ;;  %v5547_v36 = vld [vmem:[%s8387_s4 + $0x528] sm:$0xff] }
 0x25d   : > { %2520 = vmatpush1.msra.mxu0 %v2436_v45  ;;  %2782 = vmatprep.subr.mxu1 %v2693_v55  ;;  %v5463_v45 = vld [vmem:[%s8387_s4 + $0x840] sm:$0xff]  ;;  %v2736_v55 = vunpack.c.l.bf16 %v5522_v46  ;;  %v2735_v15 = vunpack.c.h.bf16 %v5521_v47  ;;  %v2956_v46 = vunpack.c.h.bf16 %v5547_v36 }
 0x25e   : > { %2521 = vmatprep.subr.mxu0 %v2435_v14  ;;  %2783 = vmatpush1.msra.mxu1 %v2692_v11  ;;  %v5520_v11 = vld [vmem:[%s8387_s4 + $0x370] sm:$0xff]  ;;  %v2478_v14 = vunpack.c.l.bf16 %v5464_v49  ;;  %v2477_v16 = vunpack.c.h.bf16 %v5463_v45  ;;  %v2955_v49 = vunpack.c.l.bf16 %v5547_v36 }
 0x25f   : > { %2522 = vmatpush1.msra.mxu0 %v2434_v53  ;;  %2788 = vmatprep.subr.mxu1 %v2751_v58  ;;  %v5462_v53 = vld [vmem:[%s8387_s4 + $0x838] sm:$0xff]  ;;  %v2734_v58 = vunpack.c.l.bf16 %v5521_v47  ;;  %v2733_v48 = vunpack.c.h.bf16 %v5520_v11 }
 0x260   : > { %2523 = vmatprep.subr.mxu0 %v2433_v17  ;;  %2789 = vmatpush2.msra.mxu1 %v2750_v50  ;;  %v5519_v50 = vld [vmem:[%s8387_s4 + $0x368] sm:$0xff]  ;;  %v2476_v17 = vunpack.c.l.bf16 %v5463_v45  ;;  %v2475_v23 = vunpack.c.h.bf16 %v5462_v53 }
 0x261   : > { %2524 = vmatpush1.msra.mxu0 %v2432_v21  ;;  %2790 = vmatprep.subr.mxu1 %v2749_v22  ;;  %v5461_v21 = vld [vmem:[%s8387_s4 + $0x830] sm:$0xff]  ;;  %v2732_v22 = vunpack.c.l.bf16 %v5520_v11  ;;  %v2731_v30 = vunpack.c.h.bf16 %v5519_v50 }
 0x262   : > { %2525 = vmatprep.subr.mxu0 %v2431_v27  ;;  %2791 = vmatpush2.msra.mxu1 %v2748_v29  ;;  %v5518_v29 = vld [vmem:[%s8387_s4 + $0x360] sm:$0xff]  ;;  %v2474_v27 = vunpack.c.l.bf16 %v5462_v53  ;;  %v2473_v35 = vunpack.c.h.bf16 %v5461_v21 }
 0x263   : > { %2526 = vmatpush1.msra.mxu0 %v2430_v12  ;;  %2792 = vmatprep.subr.mxu1 %v2747_v31  ;;  %v5460_v12 = vld [vmem:[%s8387_s4 + $0x828] sm:$0xff]  ;;  %v2730_v31 = vunpack.c.l.bf16 %v5519_v50  ;;  %v2729_v61 = vunpack.c.h.bf16 %v5518_v29 }
 0x264   : > { %2527 = vmatprep.subr.mxu0 %v2429_v41  ;;  %2793 = vmatpush2.msra.mxu1 %v2746_v63  ;;  %v5517_v63 = vld [vmem:[%s8387_s4 + $0x358] sm:$0xff]  ;;  %v2472_v41 = vunpack.c.l.bf16 %v5461_v21  ;;  %v2471_v43 = vunpack.c.h.bf16 %v5460_v12  ;;  %v5543_v50 = vld [vmem:[%s8387_s4 + $0x508] sm:$0xff]  ;;  %v2488_v21 = vrot.slane %v6821_v24, 4 }
 0x265   : > { %2528 = vmatpush1.msra.mxu0 %v2428_v9  ;;  %2794 = vmatprep.subr.mxu1 %v2745_v10  ;;  %v5459_v9 = vld [vmem:[%s8387_s4 + $0x820] sm:$0xff]  ;;  %v2728_v10 = vunpack.c.l.bf16 %v5518_v29  ;;  %v2727_v38 = vunpack.c.h.bf16 %v5517_v63  ;;  %v5483_v29 = vld [vmem:[%s8387_s4 + $0x158] sm:$0xff] }
 0x266   : > { %2533 = vmatprep.subr.mxu0 %v2487_v39  ;;  %2795 = vmatpush2.msra.mxu1 %v2744_v44  ;;  %v5516_v44 = vld [vmem:[%s8387_s4 + $0x350] sm:$0xff]  ;;  %v2470_v39 = vunpack.c.l.bf16 %v5460_v12  ;;  %v2469_v13 = vunpack.c.h.bf16 %v5459_v9 }
 0x267   : > { %2534 = vmatpush2.msra.mxu0 %v2486_v25  ;;  %2796 = vmatprep.subr.mxu1 %v2743_v40  ;;  %v5458_v25 = vld [vmem:[%s8387_s4 + $0x818] sm:$0xff]  ;;  %v2726_v40 = vunpack.c.l.bf16 %v5517_v63 }
 0x268   : > { %2535 = vmatprep.subr.mxu0 %v2485_v33  ;;  %2797 = vmatpush2.msra.mxu1 %v2742_v42  ;;  %v2468_v42 = vunpack.c.l.bf16 %v5459_v9  ;;  %v2725_v33 = vunpack.c.h.bf16 %v5516_v44  ;;  %v2467_v54 = vunpack.c.h.bf16 %v5458_v25  ;;  %v2628_v9 = vunpack.c.h.bf16 %v5483_v29 }
 0x269   : > { %2536 = vmatpush2.msra.mxu0 %v2484_v52  ;;  %2798 = vmatprep.subr.mxu1 %v2741_v2  ;;  %v5457_v52 = vld [vmem:[%s8387_s4 + $0x810] sm:$0xff]  ;;  %v2724_v2 = vunpack.c.l.bf16 %v5516_v44 }
 0x26a   : > { %2537 = vmatprep.subr.mxu0 %v2483_v32  ;;  %2799 = vmatpush2.msra.mxu1 %v2740_v3  ;;  %v2466_v3 = vunpack.c.l.bf16 %v5458_v25  ;;  %v5546_v32 = vld [vmem:[%s8387_s4 + $0x520] sm:$0xff] }
 0x26b   : > { %2538 = vmatpush2.msra.mxu0 %v2482_v62  ;;  %2800 = vmatprep.subr.mxu1 %v2739_v5  ;;  %v2465_v62 = vunpack.c.h.bf16 %v5457_v52  ;;  %v5456_v5 = vld [vmem:[%s8387_s4 + $0x808] sm:$0xff]  ;;  %v2954_v47 = vunpack.c.h.bf16 %v5546_v32 }
 0x26c   : > { %2539 = vmatprep.subr.mxu0 %v2481_v7  ;;  %2801 = vmatpush2.msra.mxu1 %v2738_v6  ;;  %v5545_v6 = vld [vmem:[%s8387_s4 + $0x518] sm:$0xff]  ;;  %v2464_v7 = vunpack.c.l.bf16 %v5457_v52  ;;  %v2463_v45 = vunpack.c.h.bf16 %v5456_v5  ;;  %v5538_v52 = vld [vmem:[%s8387_s4 + $0x4e0] sm:$0xff] }
 0x26d   : > { %2540 = vmatpush2.msra.mxu0 %v2480_v57  ;;  %2802 = vmatprep.subr.mxu1 %v2737_v59  ;;  %v5455_v57 = vld [vmem:[%s8387_s4 + $0x800] sm:$0xff]  ;;  %v2953_v59 = vunpack.c.l.bf16 %v5546_v32  ;;  %v2952_v11 = vunpack.c.h.bf16 %v5545_v6 }
 0x26e   : > { %2541 = vmatprep.subr.mxu0 %v2479_v51  ;;  %2803 = vmatpush2.msra.mxu1 %v2736_v55  ;;  %v5544_v55 = vld [vmem:[%s8387_s4 + $0x510] sm:$0xff]  ;;  %v2462_v51 = vunpack.c.l.bf16 %v5456_v5  ;;  %v2460_v53 = vunpack.c.l.bf16 %v5455_v57 }
 0x26f   : > { %2542 = vmatpush2.msra.mxu0 %v2478_v14  ;;  %2804 = vmatprep.subr.mxu1 %v2735_v15  ;;  %v5485_v14 = vld [vmem:[%s8387_s4 + $0x168] sm:$0xff]  ;;  %v2951_v15 = vunpack.c.l.bf16 %v5545_v6  ;;  %v5478_v6 = vld [vmem:[%s8387_s4 + $0x130] sm:$0xff] }
 0x270   : > { %2543 = vmatprep.subr.mxu0 %v2477_v16  ;;  %2805 = vmatpush2.msra.mxu1 %v2734_v58  ;;  %v2950_v58 = vunpack.c.h.bf16 %v5544_v55  ;;  %v2489_v16 = vrot.slane %v6823_v56, 4  ;;  %v5542_v56 = vld [vmem:[%s8387_s4 + $0x500] sm:$0xff] }
 0x271   : > { %2544 = vmatpush2.msra.mxu0 %v2476_v17  ;;  %2806 = vmatprep.subr.mxu1 %v2733_v48  ;;  %v2632_v17 = vunpack.c.h.bf16 %v5485_v14  ;;  %v5484_v48 = vld [vmem:[%s8387_s4 + $0x160] sm:$0xff]  ;;  %v2946_v63 = vunpack.c.h.bf16 %v5542_v56 }
 0x272   : > { %2545 = vmatprep.subr.mxu0 %v2475_v23  ;;  %2807 = vmatpush2.msra.mxu1 %v2732_v22  ;;  %v2631_v22 = vunpack.c.l.bf16 %v5485_v14  ;;  %v2948_v23 = vunpack.c.h.bf16 %v5543_v50  ;;  %v2630_v12 = vunpack.c.h.bf16 %v5484_v48  ;;  %v5535_v14 = vld [vmem:[%s8387_s4 + $0x4c8] sm:$0xff] }
 0x273   : > { %2546 = vmatpush2.msra.mxu0 %v2474_v27  ;;  %2808 = vmatprep.subr.mxu1 %v2731_v30  ;;  %v7260_v27 = vsel %vm432_vm0, %v2488_v21, %v2489_v16  ;;  %v2947_v30 = vunpack.c.l.bf16 %v5543_v50  ;;  %v5534_v50 = vld [vmem:[%s8387_s4 + $0x4c0] sm:$0xff]  ;;  %v2931_v21 = vunpack.c.l.bf16 %v5535_v14 }
 0x274   : > { %2547 = vmatprep.subr.mxu0 %v2473_v35  ;;  %2809 = vmatpush2.msra.mxu1 %v2730_v31  ;;  %v5541_v31 = vld [vmem:[%s8387_s4 + $0x4f8] sm:$0xff]  ;;  %v2629_v35 = vunpack.c.l.bf16 %v5484_v48  ;;  %v2932_v48 = vunpack.c.h.bf16 %v5535_v14 }
 0x275   : > { %2548 = vmatpush2.msra.mxu0 %v2472_v41  ;;  %2810 = vmatprep.subr.mxu1 %v2729_v61  ;;  %v5482_v41 = vld [vmem:[%s8387_s4 + $0x150] sm:$0xff]  ;;  %v2945_v61 = vunpack.c.l.bf16 %v5542_v56  ;;  %v2944_v44 = vunpack.c.h.bf16 %v5541_v31  ;;  %v5533_v56 = vld [vmem:[%s8387_s4 + $0x4b8] sm:$0xff] }
 0x276   : > { %2549 = vmatprep.subr.mxu0 %v2471_v43  ;;  %2811 = vmatpush2.msra.mxu1 %v2728_v10  ;;  %v5540_v10 = vld [vmem:[%s8387_s4 + $0x4f0] sm:$0xff]  ;;  %v2627_v43 = vunpack.c.l.bf16 %v5483_v29  ;;  %v2626_v25 = vunpack.c.h.bf16 %v5482_v41  ;;  %v2930_v29 = vunpack.c.h.bf16 %v5534_v50 }
 0x277   : > { %2550 = vmatpush2.msra.mxu0 %v2470_v39  ;;  %2812 = vmatprep.subr.mxu1 %v2727_v38  ;;  %v5481_v39 = vld [vmem:[%s8387_s4 + $0x148] sm:$0xff]  ;;  %v2943_v38 = vunpack.c.l.bf16 %v5541_v31 }
 0x278   : > { %2551 = vmatprep.subr.mxu0 %v2469_v13  ;;  %2813 = vmatpush2.msra.mxu1 %v2726_v40  ;;  %v5539_v40 = vld [vmem:[%s8387_s4 + $0x4e8] sm:$0xff]  ;;  %v2625_v13 = vunpack.c.l.bf16 %v5482_v41  ;;  %v2624_v36 = vunpack.c.h.bf16 %v5481_v39  ;;  %v2928_v41 = vunpack.c.h.bf16 %v5533_v56 }
 0x279   : > { %2552 = vmatpush2.msra.mxu0 %v2468_v42  ;;  %2814 = vmatprep.subr.mxu1 %v2725_v33  ;;  %v2942_v42 = vunpack.c.h.bf16 %v5540_v10  ;;  %v2941_v33 = vunpack.c.l.bf16 %v5540_v10  ;;  %v2939_v32 = vunpack.c.l.bf16 %v5539_v40 }
 0x27a   : > { %2553 = vmatprep.subr.mxu0 %v2467_v54  ;;  %2815 = vmatpush2.msra.mxu1 %v2724_v2  ;;  %v2623_v2 = vunpack.c.l.bf16 %v5481_v39  ;;  %v2940_v54 = vunpack.c.h.bf16 %v5539_v40 }
 0x27b   : > { %2554 = vmatpush2.msra.mxu0 %v2466_v3  ;;  %2817 = vmatmul.mubr.f32.vlgmr.msra.gmra.mxu1 %v6868_v1  ;;  %v2461_v1 = vunpack.c.h.bf16 %v5455_v57  ;;  %v5479_v3 = vld [vmem:[%s8387_s4 + $0x138] sm:$0xff]  ;;  %v5536_v57 = vld [vmem:[%s8387_s4 + $0x4d0] sm:$0xff] }
 0x27c   : > { %2985 = vmatprep.subr.mxu1 %v2956_v46  ;;  %2555 = vmatprep.subr.mxu0 %v2465_v62  ;;  %v5537_v62 = vld [vmem:[%s8387_s4 + $0x4d8] sm:$0xff] }
 0x27d   : > { %2986 = vmatpush1.msra.mxu1 %v2955_v49  ;;  %5562 = vmatprep.mubr.msk.f32.mxu1 %vm1904_vm6, %v6875_v0  ;;  %v2949_v0 = vunpack.c.l.bf16 %v5544_v55  ;;  %v2938_v49 = vunpack.c.h.bf16 %v5538_v52  ;;  %v5477_v55 = vld [vmem:[%s8387_s4 + $0x128] sm:$0xff] }
 0x27e   : > { %2556 = vmatpush2.msra.mxu0 %v2464_v7  ;;  %2987 = vmatprep.subr.mxu1 %v2954_v47  ;;  %v2937_v7 = vunpack.c.l.bf16 %v5538_v52  ;;  %v2620_v47 = vunpack.c.h.bf16 %v5479_v3  ;;  %v2616_v16 = vunpack.c.h.bf16 %v5477_v55 }
 0x27f   : > { %2557 = vmatprep.subr.mxu0 %v2463_v45  ;;  %2988 = vmatpush1.msra.mxu1 %v2953_v59  ;;  %v2619_v59 = vunpack.c.l.bf16 %v5479_v3  ;;  %v2936_v45 = vunpack.c.h.bf16 %v5537_v62 }
 0x280   : > { %2558 = vmatpush2.msra.mxu0 %v2462_v51  ;;  %2989 = vmatprep.subr.mxu1 %v2952_v11  ;;  %v2935_v51 = vunpack.c.l.bf16 %v5537_v62  ;;  %v2618_v11 = vunpack.c.h.bf16 %v5478_v6 }
 0x281   : > { %2559 = vmatprep.subr.mxu0 %v2461_v1  ;;  %2990 = vmatpush1.msra.mxu1 %v2951_v15  ;;  %v2617_v15 = vunpack.c.l.bf16 %v5478_v6  ;;  %v2934_v1 = vunpack.c.h.bf16 %v5536_v57 }
 0x282   : > { %2560 = vmatpush2.msra.mxu0 %v2460_v53  ;;  %2991 = vmatprep.subr.mxu1 %v2950_v58  ;;  %v5476_v53 = vld [vmem:[%s8387_s4 + $0x120] sm:$0xff]  ;;  %v2933_v58 = vunpack.c.l.bf16 %v5536_v57 }
 0x283   : > { %2562 = vmatmul.mubr.f32.vlgmr.msra.gmra.mxu0 %v7260_v27  ;;  %2823 = vmatprep.subr.mxu0 %v2632_v17  ;;  %v2615_v17 = vunpack.c.l.bf16 %v5477_v55 }
 0x284   : > { %2992 = vmatpush1.msra.mxu1 %v2949_v0  ;;  %2824 = vmatpush1.msra.mxu0 %v2631_v22  ;;  %v5475_v0 = vld [vmem:[%s8387_s4 + $0x118] sm:$0xff]  ;;  %v2614_v22 = vunpack.c.h.bf16 %v5476_v53 }
 0x285   : > { %5531 = vmatprep.mubr.msk.f32.mxu0 %vm1904_vm6, %v6815_v60  ;;  %2993 = vmatprep.subr.mxu1 %v2948_v23  ;;  %v5480_v60 = vld [vmem:[%s8387_s4 + $0x140] sm:$0xff]  ;;  %v2613_v23 = vunpack.c.l.bf16 %v5476_v53  ;;  %v2612_v31 = vunpack.c.h.bf16 %v5475_v0 }
 0x286   : > { %2825 = vmatprep.subr.mxu0 %v2630_v12  ;;  %2994 = vmatpush1.msra.mxu1 %v2947_v30  ;;  %v2622_v46 = vunpack.c.h.bf16 %v5480_v60  ;;  %v2621_v5 = vunpack.c.l.bf16 %v5480_v60  ;;  %v5474_v30 = vld [vmem:[%s8387_s4 + $0x110] sm:$0xff]  ;;  %v2929_v12 = vunpack.c.l.bf16 %v5534_v50 }
 0x287   : > { %2826 = vmatpush1.msra.mxu0 %v2629_v35  ;;  %2995 = vmatprep.subr.mxu1 %v2946_v63  ;;  %v5532_v35 = vld [vmem:[%s8387_s4 + $0x4b0] sm:$0xff]  ;;  %v2611_v63 = vunpack.c.l.bf16 %v5475_v0  ;;  %v2610_v10 = vunpack.c.h.bf16 %v5474_v30 }
 0x288   : > { %2827 = vmatprep.subr.mxu0 %v2628_v9  ;;  %2996 = vmatpush1.msra.mxu1 %v2945_v61  ;;  %v5473_v61 = vld [vmem:[%s8387_s4 + $0x108] sm:$0xff]  ;;  %v2927_v9 = vunpack.c.l.bf16 %v5533_v56  ;;  %v2926_v39 = vunpack.c.h.bf16 %v5532_v35 }
 0x289   : > { %2828 = vmatpush1.msra.mxu0 %v2627_v43  ;;  %2997 = vmatprep.subr.mxu1 %v2944_v44  ;;  %v5561_v43 = vld [vmem:[%s8387_s4 + $0x598] sm:$0xff]  ;;  %v2609_v44 = vunpack.c.l.bf16 %v5474_v30  ;;  %v2608_v40 = vunpack.c.h.bf16 %v5473_v61 }
 0x28a   : > { %2829 = vmatprep.subr.mxu0 %v2626_v25  ;;  %2998 = vmatpush1.msra.mxu1 %v2943_v38  ;;  %v5472_v38 = vld [vmem:[%s8387_s4 + $0x100] sm:$0xff]  ;;  %v2925_v25 = vunpack.c.l.bf16 %v5532_v35  ;;  %v2984_v60 = vunpack.c.h.bf16 %v5561_v43 }
 0x28b   : > { %2830 = vmatpush1.msra.mxu0 %v2625_v13  ;;  %2999 = vmatprep.subr.mxu1 %v2942_v42  ;;  %v5560_v13 = vld [vmem:[%s8387_s4 + $0x590] sm:$0xff]  ;;  %v2607_v42 = vunpack.c.l.bf16 %v5473_v61  ;;  %v2606_v52 = vunpack.c.h.bf16 %v5472_v38 }
 0x28c   : > { %2831 = vmatprep.subr.mxu0 %v2624_v36  ;;  %3000 = vmatpush1.msra.mxu1 %v2941_v33  ;;  %v5471_v33 = vld [vmem:[%s8387_s4 + $0xf8] sm:$0xff]  ;;  %v2983_v36 = vunpack.c.l.bf16 %v5561_v43  ;;  %v2982_v3 = vunpack.c.h.bf16 %v5560_v13 }
 0x28d   : > { %2832 = vmatpush1.msra.mxu0 %v2623_v2  ;;  %3001 = vmatprep.subr.mxu1 %v2940_v54  ;;  %v5559_v2 = vld [vmem:[%s8387_s4 + $0x588] sm:$0xff]  ;;  %v2605_v54 = vunpack.c.l.bf16 %v5472_v38  ;;  %v2604_v62 = vunpack.c.h.bf16 %v5471_v33 }
 0x28e   : > { %2833 = vmatprep.subr.mxu0 %v2622_v46  ;;  %3002 = vmatpush1.msra.mxu1 %v2939_v32  ;;  %v5470_v32 = vld [vmem:[%s8387_s4 + $0xf0] sm:$0xff]  ;;  %v2981_v46 = vunpack.c.l.bf16 %v5560_v13  ;;  %v2980_v6 = vunpack.c.h.bf16 %v5559_v2 }
 0x28f   : > { %2834 = vmatpush1.msra.mxu0 %v2621_v5  ;;  %3003 = vmatprep.subr.mxu1 %v2938_v49  ;;  %v5558_v5 = vld [vmem:[%s8387_s4 + $0x580] sm:$0xff]  ;;  %v2603_v49 = vunpack.c.l.bf16 %v5471_v33  ;;  %v2602_v57 = vunpack.c.h.bf16 %v5470_v32 }
 0x290   : > { %2835 = vmatprep.subr.mxu0 %v2620_v47  ;;  %3004 = vmatpush1.msra.mxu1 %v2937_v7  ;;  %v5499_v7 = vld [vmem:[%s8387_s4 + $0x1d8] sm:$0xff]  ;;  %v2979_v47 = vunpack.c.l.bf16 %v5559_v2  ;;  %v2978_v55 = vunpack.c.h.bf16 %v5558_v5 }
 0x291   : > { %2836 = vmatpush1.msra.mxu0 %v2619_v59  ;;  %3005 = vmatprep.subr.mxu1 %v2936_v45  ;;  %v5557_v59 = vld [vmem:[%s8387_s4 + $0x578] sm:$0xff]  ;;  %v2601_v45 = vunpack.c.l.bf16 %v5470_v32  ;;  %v2660_v14 = vunpack.c.h.bf16 %v5499_v7 }
 0x292   : > { %2837 = vmatprep.subr.mxu0 %v2618_v11  ;;  %3006 = vmatpush1.msra.mxu1 %v2935_v51  ;;  %v5498_v51 = vld [vmem:[%s8387_s4 + $0x1d0] sm:$0xff]  ;;  %v2977_v11 = vunpack.c.l.bf16 %v5558_v5  ;;  %v2976_v53 = vunpack.c.h.bf16 %v5557_v59 }
 0x293   : > { %2838 = vmatpush1.msra.mxu0 %v2617_v15  ;;  %3007 = vmatprep.subr.mxu1 %v2934_v1  ;;  %v5556_v15 = vld [vmem:[%s8387_s4 + $0x570] sm:$0xff]  ;;  %v2659_v1 = vunpack.c.l.bf16 %v5499_v7  ;;  %v2658_v50 = vunpack.c.h.bf16 %v5498_v51 }
 0x294   : > { %2839 = vmatprep.subr.mxu0 %v2616_v16  ;;  %3008 = vmatpush1.msra.mxu1 %v2933_v58  ;;  %v5497_v58 = vld [vmem:[%s8387_s4 + $0x1c8] sm:$0xff]  ;;  %v2975_v16 = vunpack.c.l.bf16 %v5557_v59  ;;  %v2974_v0 = vunpack.c.h.bf16 %v5556_v15 }
 0x295   : > { %2840 = vmatpush1.msra.mxu0 %v2615_v17  ;;  %3009 = vmatprep.subr.mxu1 %v2932_v48  ;;  %v5555_v17 = vld [vmem:[%s8387_s4 + $0x568] sm:$0xff]  ;;  %v2657_v48 = vunpack.c.l.bf16 %v5498_v51  ;;  %v2656_v56 = vunpack.c.h.bf16 %v5497_v58 }
 0x296   : > { %2841 = vmatprep.subr.mxu0 %v2614_v22  ;;  %3010 = vmatpush1.msra.mxu1 %v2931_v21  ;;  %v5496_v21 = vld [vmem:[%s8387_s4 + $0x1c0] sm:$0xff]  ;;  %v2973_v22 = vunpack.c.l.bf16 %v5556_v15  ;;  %v2972_v30 = vunpack.c.h.bf16 %v5555_v17 }
 0x297   : > { %2842 = vmatpush1.msra.mxu0 %v2613_v23  ;;  %3011 = vmatprep.subr.mxu1 %v2930_v29  ;;  %v5554_v23 = vld [vmem:[%s8387_s4 + $0x560] sm:$0xff]  ;;  %v2655_v29 = vunpack.c.l.bf16 %v5497_v58  ;;  %v2654_v35 = vunpack.c.h.bf16 %v5496_v21  ;;  %v5609_v58 = vld [vmem:[%s8387_s4 + $0x8e8] sm:$0xff] }
 0x298   : > { %2843 = vmatprep.subr.mxu0 %v2612_v31  ;;  %3012 = vmatpush1.msra.mxu1 %v2929_v12  ;;  %v5495_v12 = vld [vmem:[%s8387_s4 + $0x1b8] sm:$0xff]  ;;  %v2971_v31 = vunpack.c.l.bf16 %v5555_v17  ;;  %v2970_v61 = vunpack.c.h.bf16 %v5554_v23 }
 0x299   : > { %2844 = vmatpush1.msra.mxu0 %v2611_v63  ;;  %3013 = vmatprep.subr.mxu1 %v2928_v41  ;;  %v5553_v63 = vld [vmem:[%s8387_s4 + $0x558] sm:$0xff]  ;;  %v2653_v41 = vunpack.c.l.bf16 %v5496_v21  ;;  %v2652_v43 = vunpack.c.h.bf16 %v5495_v12  ;;  %v3284_v21 = vunpack.c.h.bf16 %v5609_v58 }
 0x29a   : > { %2845 = vmatprep.subr.mxu0 %v2610_v10  ;;  %3014 = vmatpush1.msra.mxu1 %v2927_v9  ;;  %v5494_v9 = vld [vmem:[%s8387_s4 + $0x1b0] sm:$0xff]  ;;  %v2969_v10 = vunpack.c.l.bf16 %v5554_v23  ;;  %v2968_v38 = vunpack.c.h.bf16 %v5553_v63  ;;  %v3283_v23 = vunpack.c.l.bf16 %v5609_v58 }
 0x29b   : > { %2846 = vmatpush1.msra.mxu0 %v2609_v44  ;;  %3015 = vmatprep.subr.mxu1 %v2926_v39  ;;  %v5552_v44 = vld [vmem:[%s8387_s4 + $0x550] sm:$0xff]  ;;  %v2651_v39 = vunpack.c.l.bf16 %v5495_v12  ;;  %v2650_v13 = vunpack.c.h.bf16 %v5494_v9 }
 0x29c   : > { %2847 = vmatprep.subr.mxu0 %v2608_v40  ;;  %3016 = vmatpush1.msra.mxu1 %v2925_v25  ;;  %v5493_v25 = vld [vmem:[%s8387_s4 + $0x1a8] sm:$0xff]  ;;  %v2967_v40 = vunpack.c.l.bf16 %v5553_v63  ;;  %v2966_v33 = vunpack.c.h.bf16 %v5552_v44 }
 0x29d   : > { %2848 = vmatpush1.msra.mxu0 %v2607_v42  ;;  %3021 = vmatprep.subr.mxu1 %v2984_v60  ;;  %v5551_v42 = vld [vmem:[%s8387_s4 + $0x548] sm:$0xff]  ;;  %v2649_v60 = vunpack.c.l.bf16 %v5494_v9  ;;  %v2648_v2 = vunpack.c.h.bf16 %v5493_v25 }
 0x29e   : > { %2849 = vmatprep.subr.mxu0 %v2606_v52  ;;  %3022 = vmatpush2.msra.mxu1 %v2983_v36  ;;  %v5492_v36 = vld [vmem:[%s8387_s4 + $0x1a0] sm:$0xff]  ;;  %v2965_v52 = vunpack.c.l.bf16 %v5552_v44  ;;  %v2964_v32 = vunpack.c.h.bf16 %v5551_v42 }
 0x29f   : > { %2850 = vmatpush1.msra.mxu0 %v2605_v54  ;;  %3023 = vmatprep.subr.mxu1 %v2982_v3  ;;  %v5550_v54 = vld [vmem:[%s8387_s4 + $0x540] sm:$0xff]  ;;  %v2647_v3 = vunpack.c.l.bf16 %v5493_v25  ;;  %v2646_v5 = vunpack.c.h.bf16 %v5492_v36 }
 0x2a0   : > { %2851 = vmatprep.subr.mxu0 %v2604_v62  ;;  %3024 = vmatpush2.msra.mxu1 %v2981_v46  ;;  %v5491_v46 = vld [vmem:[%s8387_s4 + $0x198] sm:$0xff]  ;;  %v2963_v62 = vunpack.c.l.bf16 %v5551_v42  ;;  %v2962_v7 = vunpack.c.h.bf16 %v5550_v54  ;;  %v5604_v42 = vld [vmem:[%s8387_s4 + $0x8c0] sm:$0xff] }
 0x2a1   : > { %2852 = vmatpush1.msra.mxu0 %v2603_v49  ;;  %3025 = vmatprep.subr.mxu1 %v2980_v6  ;;  %v5549_v49 = vld [vmem:[%s8387_s4 + $0x538] sm:$0xff]  ;;  %v2645_v6 = vunpack.c.l.bf16 %v5492_v36  ;;  %v2644_v59 = vunpack.c.h.bf16 %v5491_v46 }
 0x2a2   : > { %2853 = vmatprep.subr.mxu0 %v2602_v57  ;;  %3026 = vmatpush2.msra.mxu1 %v2979_v47  ;;  %v5490_v47 = vld [vmem:[%s8387_s4 + $0x190] sm:$0xff]  ;;  %v2961_v57 = vunpack.c.l.bf16 %v5550_v54  ;;  %v2960_v51 = vunpack.c.h.bf16 %v5549_v49 }
 0x2a3   : > { %2854 = vmatpush1.msra.mxu0 %v2601_v45  ;;  %3027 = vmatprep.subr.mxu1 %v2978_v55  ;;  %v5548_v45 = vld [vmem:[%s8387_s4 + $0x530] sm:$0xff]  ;;  %v2643_v55 = vunpack.c.l.bf16 %v5491_v46  ;;  %v2642_v15 = vunpack.c.h.bf16 %v5490_v47  ;;  %v3273_v46 = vunpack.c.l.bf16 %v5604_v42 }
 0x2a4   : > { %2859 = vmatprep.subr.mxu0 %v2660_v14  ;;  %3028 = vmatpush2.msra.mxu1 %v2977_v11  ;;  %v5489_v11 = vld [vmem:[%s8387_s4 + $0x188] sm:$0xff]  ;;  %v2959_v14 = vunpack.c.l.bf16 %v5549_v49 }
 0x2a5   : > { %2860 = vmatpush2.msra.mxu0 %v2659_v1  ;;  %3029 = vmatprep.subr.mxu1 %v2976_v53  ;;  %v2641_v1 = vunpack.c.l.bf16 %v5490_v47  ;;  %v2958_v53 = vunpack.c.h.bf16 %v5548_v45  ;;  %v2640_v17 = vunpack.c.h.bf16 %v5489_v11 }
 0x2a6   : > { %2861 = vmatprep.subr.mxu0 %v2658_v50  ;;  %3030 = vmatpush2.msra.mxu1 %v2975_v16  ;;  %v5488_v16 = vld [vmem:[%s8387_s4 + $0x180] sm:$0xff]  ;;  %v2957_v50 = vunpack.c.l.bf16 %v5548_v45 }
 0x2a7   : > { %2862 = vmatpush2.msra.mxu0 %v2657_v48  ;;  %3031 = vmatprep.subr.mxu1 %v2974_v0  ;;  %v2639_v48 = vunpack.c.l.bf16 %v5489_v11  ;;  %v5608_v0 = vld [vmem:[%s8387_s4 + $0x8e0] sm:$0xff] }
 0x2a8   : > { %2863 = vmatprep.subr.mxu0 %v2656_v56  ;;  %3032 = vmatpush2.msra.mxu1 %v2973_v22  ;;  %v2638_v22 = vunpack.c.h.bf16 %v5488_v16  ;;  %v5487_v56 = vld [vmem:[%s8387_s4 + $0x178] sm:$0xff]  ;;  %v3282_v12 = vunpack.c.h.bf16 %v5608_v0  ;;  %v5600_v11 = vld [vmem:[%s8387_s4 + $0x8a0] sm:$0xff] }
 0x2a9   : > { %2864 = vmatpush2.msra.mxu0 %v2655_v29  ;;  %3033 = vmatprep.subr.mxu1 %v2972_v30  ;;  %v5607_v29 = vld [vmem:[%s8387_s4 + $0x8d8] sm:$0xff]  ;;  %v2637_v30 = vunpack.c.l.bf16 %v5488_v16  ;;  %v2636_v63 = vunpack.c.h.bf16 %v5487_v56 }
 0x2aa   : > { %2865 = vmatprep.subr.mxu0 %v2654_v35  ;;  %3034 = vmatpush2.msra.mxu1 %v2971_v31  ;;  %v5486_v31 = vld [vmem:[%s8387_s4 + $0x170] sm:$0xff]  ;;  %v3281_v35 = vunpack.c.l.bf16 %v5608_v0  ;;  %v3280_v9 = vunpack.c.h.bf16 %v5607_v29  ;;  %v5599_v16 = vld [vmem:[%s8387_s4 + $0x898] sm:$0xff]  ;;  %v3265_v0 = vunpack.c.l.bf16 %v5600_v11 }
 0x2ab   : > { %2866 = vmatpush2.msra.mxu0 %v2653_v41  ;;  %3035 = vmatprep.subr.mxu1 %v2970_v61  ;;  %v5606_v41 = vld [vmem:[%s8387_s4 + $0x8d0] sm:$0xff]  ;;  %v2635_v61 = vunpack.c.l.bf16 %v5487_v56  ;;  %v2633_v44 = vunpack.c.l.bf16 %v5486_v31 }
 0x2ac   : > { %2867 = vmatprep.subr.mxu0 %v2652_v43  ;;  %3036 = vmatpush2.msra.mxu1 %v2969_v10  ;;  %v5578_v10 = vld [vmem:[%s8387_s4 + $0x708] sm:$0xff]  ;;  %v3279_v43 = vunpack.c.l.bf16 %v5607_v29 }
 0x2ad   : > { %2868 = vmatpush2.msra.mxu0 %v2651_v39  ;;  %3037 = vmatprep.subr.mxu1 %v2968_v38  ;;  %v3278_v39 = vunpack.c.h.bf16 %v5606_v41  ;;  %v5605_v38 = vld [vmem:[%s8387_s4 + $0x8c8] sm:$0xff]  ;;  %v3120_v25 = vunpack.c.h.bf16 %v5578_v10 }
 0x2ae   : > { %2869 = vmatprep.subr.mxu0 %v2650_v13  ;;  %3038 = vmatpush2.msra.mxu1 %v2967_v40  ;;  %v5577_v40 = vld [vmem:[%s8387_s4 + $0x700] sm:$0xff]  ;;  %v3119_v13 = vunpack.c.l.bf16 %v5578_v10  ;;  %v3275_v36 = vunpack.c.l.bf16 %v5605_v38  ;;  %v5570_v29 = vld [vmem:[%s8387_s4 + $0x6c8] sm:$0xff] }
 0x2af   : > { %2870 = vmatpush2.msra.mxu0 %v2649_v60  ;;  %3039 = vmatprep.subr.mxu1 %v2966_v33  ;;  %v3276_v60 = vunpack.c.h.bf16 %v5605_v38  ;;  %v5576_v33 = vld [vmem:[%s8387_s4 + $0x6f8] sm:$0xff]  ;;  %v3117_v54 = vunpack.c.l.bf16 %v5577_v40  ;;  %v5596_v10 = vld [vmem:[%s8387_s4 + $0x880] sm:$0xff] }
 0x2b0   : > { %2871 = vmatprep.subr.mxu0 %v2648_v2  ;;  %3040 = vmatpush2.msra.mxu1 %v2965_v52  ;;  %v3118_v52 = vunpack.c.h.bf16 %v5577_v40  ;;  %v5603_v2 = vld [vmem:[%s8387_s4 + $0x8b8] sm:$0xff] }
 0x2b1   : > { %2872 = vmatpush2.msra.mxu0 %v2647_v3  ;;  %3041 = vmatprep.subr.mxu1 %v2964_v32  ;;  %v3274_v3 = vunpack.c.h.bf16 %v5604_v42  ;;  %v5575_v32 = vld [vmem:[%s8387_s4 + $0x6f0] sm:$0xff]  ;;  %v3272_v49 = vunpack.c.h.bf16 %v5603_v2  ;;  %v3257_v42 = vunpack.c.l.bf16 %v5596_v10 }
 0x2b2   : > { %2873 = vmatprep.subr.mxu0 %v2646_v5  ;;  %3042 = vmatpush2.msra.mxu1 %v2963_v62  ;;  %v3116_v62 = vunpack.c.h.bf16 %v5576_v33  ;;  %v5602_v5 = vld [vmem:[%s8387_s4 + $0x8b0] sm:$0xff]  ;;  %v3114_v47 = vunpack.c.h.bf16 %v5575_v32 }
 0x2b3   : > { %2874 = vmatpush2.msra.mxu0 %v2645_v6  ;;  %3043 = vmatprep.subr.mxu1 %v2962_v7  ;;  %v5574_v6 = vld [vmem:[%s8387_s4 + $0x6e8] sm:$0xff]  ;;  %v3271_v7 = vunpack.c.l.bf16 %v5603_v2  ;;  %v3270_v45 = vunpack.c.h.bf16 %v5602_v5 }
 0x2b4   : > { %2875 = vmatprep.subr.mxu0 %v2644_v59  ;;  %3044 = vmatpush2.msra.mxu1 %v2961_v57  ;;  %v5601_v57 = vld [vmem:[%s8387_s4 + $0x8a8] sm:$0xff]  ;;  %v3113_v59 = vunpack.c.l.bf16 %v5575_v32  ;;  %v5623_v32 = vld [vmem:[%s8387_s4 + $0x958] sm:$0xff] }
 0x2b5   : > { %2876 = vmatpush2.msra.mxu0 %v2643_v55  ;;  %3045 = vmatprep.subr.mxu1 %v2960_v51  ;;  %v3269_v55 = vunpack.c.l.bf16 %v5602_v5  ;;  %v3112_v51 = vunpack.c.h.bf16 %v5574_v6  ;;  %v5566_v2 = vld [vmem:[%s8387_s4 + $0x6a8] sm:$0xff]  ;;  %v5565_v5 = vld [vmem:[%s8387_s4 + $0x6a0] sm:$0xff] }
 0x2b6   : > { %2877 = vmatprep.subr.mxu0 %v2642_v15  ;;  %3046 = vmatpush2.msra.mxu1 %v2959_v14  ;;  %v3111_v14 = vunpack.c.l.bf16 %v5574_v6  ;;  %v3268_v15 = vunpack.c.h.bf16 %v5601_v57  ;;  %v5622_v6 = vld [vmem:[%s8387_s4 + $0x950] sm:$0xff] }
 0x2b7   : > { %2878 = vmatpush2.msra.mxu0 %v2641_v1  ;;  %3047 = vmatprep.subr.mxu1 %v2958_v53  ;;  %v5572_v1 = vld [vmem:[%s8387_s4 + $0x6d8] sm:$0xff]  ;;  %v3267_v53 = vunpack.c.l.bf16 %v5601_v57 }
 0x2b8   : > { %2879 = vmatprep.subr.mxu0 %v2640_v17  ;;  %3048 = vmatpush2.msra.mxu1 %v2957_v50  ;;  %v3266_v17 = vunpack.c.h.bf16 %v5600_v11  ;;  %v3107_v56 = vunpack.c.l.bf16 %v5572_v1  ;;  %v5564_v57 = vld [vmem:[%s8387_s4 + $0x698] sm:$0xff]  ;;  %v5563_v11 = vld [vmem:[%s8387_s4 + $0x690] sm:$0xff] }
 0x2b9   : > { %2880 = vmatpush2.msra.mxu0 %v2639_v48  ;;  %3050 = vmatmul.mubr.f32.vlgmr.msra.gmra.mxu1 %v7065_v37  ;;  %v2634_v37 = vunpack.c.h.bf16 %v5486_v31  ;;  %v5571_v48 = vld [vmem:[%s8387_s4 + $0x6d0] sm:$0xff]  ;;  %v5597_v31 = vld [vmem:[%s8387_s4 + $0x888] sm:$0xff] }
 0x2ba   : > { %3313 = vmatprep.subr.mxu1 %v3284_v21  ;;  %2881 = vmatprep.subr.mxu0 %v2638_v22  ;;  %v3108_v21 = vunpack.c.h.bf16 %v5572_v1  ;;  %v5598_v22 = vld [vmem:[%s8387_s4 + $0x890] sm:$0xff]  ;;  %v5620_v1 = vld [vmem:[%s8387_s4 + $0x940] sm:$0xff] }
 0x2bb   : > { %3314 = vmatpush1.msra.mxu1 %v3283_v23  ;;  %5624 = vmatprep.mubr.msk.f32.mxu1 %vm1904_vm6, %v7076_v28  ;;  %v3277_v28 = vunpack.c.l.bf16 %v5606_v41  ;;  %v3264_v23 = vunpack.c.h.bf16 %v5599_v16  ;;  %v5569_v41 = vld [vmem:[%s8387_s4 + $0x6c0] sm:$0xff] }
 0x2bc   : > { %2882 = vmatpush2.msra.mxu0 %v2637_v30  ;;  %3315 = vmatprep.subr.mxu1 %v3282_v12  ;;  %v3263_v30 = vunpack.c.l.bf16 %v5599_v16  ;;  %v3106_v12 = vunpack.c.h.bf16 %v5571_v48  ;;  %v3102_v38 = vunpack.c.h.bf16 %v5569_v41  ;;  %v3101_v40 = vunpack.c.l.bf16 %v5569_v41  ;;  %v5592_v16 = vld [vmem:[%s8387_s4 + $0x778] sm:$0xff]  ;;  %v5617_v41 = vld [vmem:[%s8387_s4 + $0x928] sm:$0xff] }
 0x2bd   : > { %2883 = vmatprep.subr.mxu0 %v2636_v63  ;;  %3316 = vmatpush1.msra.mxu1 %v3281_v35  ;;  %v3105_v35 = vunpack.c.l.bf16 %v5571_v48  ;;  %v3262_v63 = vunpack.c.h.bf16 %v5598_v22  ;;  %v5619_v48 = vld [vmem:[%s8387_s4 + $0x938] sm:$0xff] }
 0x2be   : > { %2884 = vmatpush2.msra.mxu0 %v2635_v61  ;;  %3317 = vmatprep.subr.mxu1 %v3280_v9  ;;  %v3261_v61 = vunpack.c.l.bf16 %v5598_v22  ;;  %v3104_v9 = vunpack.c.h.bf16 %v5570_v29  ;;  %v5591_v22 = vld [vmem:[%s8387_s4 + $0x770] sm:$0xff] }
 0x2bf   : > { %2885 = vmatprep.subr.mxu0 %v2634_v37  ;;  %3318 = vmatpush1.msra.mxu1 %v3279_v43  ;;  %v3103_v43 = vunpack.c.l.bf16 %v5570_v29  ;;  %v3260_v37 = vunpack.c.h.bf16 %v5597_v31  ;;  %v5618_v29 = vld [vmem:[%s8387_s4 + $0x930] sm:$0xff] }
 0x2c0   : > { %2886 = vmatpush2.msra.mxu0 %v2633_v44  ;;  %3319 = vmatprep.subr.mxu1 %v3278_v39  ;;  %v5568_v44 = vld [vmem:[%s8387_s4 + $0x6b8] sm:$0xff]  ;;  %v3259_v39 = vunpack.c.l.bf16 %v5597_v31  ;;  %v5590_v31 = vld [vmem:[%s8387_s4 + $0x768] sm:$0xff] }
 0x2c1   : > { %2888 = vmatmul.mubr.f32.vlgmr.msra.gmra.mxu0 %v6821_v24  ;;  %3149 = vmatprep.subr.mxu0 %v3120_v25  ;;  %v3115_v24 = vunpack.c.l.bf16 %v5576_v33  ;;  %v5595_v25 = vld [vmem:[%s8387_s4 + $0x878] sm:$0xff]  ;;  %v5594_v33 = vld [vmem:[%s8387_s4 + $0x870] sm:$0xff] }
 0x2c2   : > { %3320 = vmatpush1.msra.mxu1 %v3277_v28  ;;  %3150 = vmatpush1.msra.mxu0 %v3119_v13  ;;  %v3258_v28 = vunpack.c.h.bf16 %v5596_v10  ;;  %v5567_v13 = vld [vmem:[%s8387_s4 + $0x6b0] sm:$0xff]  ;;  %v5589_v10 = vld [vmem:[%s8387_s4 + $0x760] sm:$0xff] }
 0x2c3   : > { %5593 = vmatprep.mubr.msk.f32.mxu0 %vm1904_vm6, %v6853_v8  ;;  %3321 = vmatprep.subr.mxu1 %v3276_v60  ;;  %v5573_v8 = vld [vmem:[%s8387_s4 + $0x6e0] sm:$0xff]  ;;  %v3100_v60 = vunpack.c.h.bf16 %v5568_v44 }
 0x2c4   : > { %3151 = vmatprep.subr.mxu0 %v3118_v52  ;;  %3322 = vmatpush1.msra.mxu1 %v3275_v36  ;;  %v3110_v58 = vunpack.c.h.bf16 %v5573_v8  ;;  %v3109_v50 = vunpack.c.l.bf16 %v5573_v8  ;;  %v3099_v36 = vunpack.c.l.bf16 %v5568_v44  ;;  %v3256_v52 = vunpack.c.h.bf16 %v5595_v25  ;;  %v5621_v8 = vld [vmem:[%s8387_s4 + $0x948] sm:$0xff]  ;;  %v5616_v44 = vld [vmem:[%s8387_s4 + $0x920] sm:$0xff] }
 0x2c5   : > { %3152 = vmatpush1.msra.mxu0 %v3117_v54  ;;  %3323 = vmatprep.subr.mxu1 %v3274_v3  ;;  %v3255_v54 = vunpack.c.l.bf16 %v5595_v25  ;;  %v3098_v3 = vunpack.c.h.bf16 %v5567_v13  ;;  %v5588_v25 = vld [vmem:[%s8387_s4 + $0x758] sm:$0xff] }
 0x2c6   : > { %3153 = vmatprep.subr.mxu0 %v3116_v62  ;;  %3324 = vmatpush1.msra.mxu1 %v3273_v46  ;;  %v3097_v46 = vunpack.c.l.bf16 %v5567_v13  ;;  %v3254_v62 = vunpack.c.h.bf16 %v5594_v33  ;;  %v5615_v13 = vld [vmem:[%s8387_s4 + $0x918] sm:$0xff] }
 0x2c7   : > { %3154 = vmatpush1.msra.mxu0 %v3115_v24  ;;  %3325 = vmatprep.subr.mxu1 %v3272_v49  ;;  %v3253_v24 = vunpack.c.l.bf16 %v5594_v33  ;;  %v3096_v49 = vunpack.c.h.bf16 %v5566_v2  ;;  %v5587_v33 = vld [vmem:[%s8387_s4 + $0x750] sm:$0xff] }
 0x2c8   : > { %3155 = vmatprep.subr.mxu0 %v3114_v47  ;;  %3326 = vmatpush1.msra.mxu1 %v3271_v7  ;;  %v3095_v7 = vunpack.c.l.bf16 %v5566_v2  ;;  %v3312_v47 = vunpack.c.h.bf16 %v5623_v32  ;;  %v5614_v2 = vld [vmem:[%s8387_s4 + $0x910] sm:$0xff] }
 0x2c9   : > { %3156 = vmatpush1.msra.mxu0 %v3113_v59  ;;  %3327 = vmatprep.subr.mxu1 %v3270_v45  ;;  %v3311_v59 = vunpack.c.l.bf16 %v5623_v32  ;;  %v3094_v45 = vunpack.c.h.bf16 %v5565_v5  ;;  %v5586_v32 = vld [vmem:[%s8387_s4 + $0x748] sm:$0xff] }
 0x2ca   : > { %3157 = vmatprep.subr.mxu0 %v3112_v51  ;;  %3328 = vmatpush1.msra.mxu1 %v3269_v55  ;;  %v3093_v55 = vunpack.c.l.bf16 %v5565_v5  ;;  %v3310_v51 = vunpack.c.h.bf16 %v5622_v6  ;;  %v5613_v5 = vld [vmem:[%s8387_s4 + $0x908] sm:$0xff] }
 0x2cb   : > { %3158 = vmatpush1.msra.mxu0 %v3111_v14  ;;  %3329 = vmatprep.subr.mxu1 %v3268_v15  ;;  %v3309_v14 = vunpack.c.l.bf16 %v5622_v6  ;;  %v3092_v15 = vunpack.c.h.bf16 %v5564_v57  ;;  %v5585_v6 = vld [vmem:[%s8387_s4 + $0x740] sm:$0xff] }
 0x2cc   : > { %3159 = vmatprep.subr.mxu0 %v3110_v58  ;;  %3330 = vmatpush1.msra.mxu1 %v3267_v53  ;;  %v3091_v53 = vunpack.c.l.bf16 %v5564_v57  ;;  %v3308_v58 = vunpack.c.h.bf16 %v5621_v8  ;;  %v5612_v57 = vld [vmem:[%s8387_s4 + $0x900] sm:$0xff] }
 0x2cd   : > { %3160 = vmatpush1.msra.mxu0 %v3109_v50  ;;  %3331 = vmatprep.subr.mxu1 %v3266_v17  ;;  %v3307_v50 = vunpack.c.l.bf16 %v5621_v8  ;;  %v3090_v17 = vunpack.c.h.bf16 %v5563_v11  ;;  %v5584_v8 = vld [vmem:[%s8387_s4 + $0x738] sm:$0xff] }
 0x2ce   : > { %3161 = vmatprep.subr.mxu0 %v3108_v21  ;;  %3332 = vmatpush1.msra.mxu1 %v3265_v0  ;;  %v3089_v0 = vunpack.c.l.bf16 %v5563_v11  ;;  %v3306_v21 = vunpack.c.h.bf16 %v5620_v1  ;;  %v5611_v11 = vld [vmem:[%s8387_s4 + $0x8f8] sm:$0xff] }
 0x2cf   : > { %3162 = vmatpush1.msra.mxu0 %v3107_v56  ;;  %3333 = vmatprep.subr.mxu1 %v3264_v23  ;;  %v3305_v56 = vunpack.c.l.bf16 %v5620_v1  ;;  %v3148_v23 = vunpack.c.h.bf16 %v5592_v16  ;;  %v5583_v1 = vld [vmem:[%s8387_s4 + $0x730] sm:$0xff] }
 0x2d0   : > { %3163 = vmatprep.subr.mxu0 %v3106_v12  ;;  %3334 = vmatpush1.msra.mxu1 %v3263_v30  ;;  %v3147_v30 = vunpack.c.l.bf16 %v5592_v16  ;;  %v3304_v12 = vunpack.c.h.bf16 %v5619_v48  ;;  %v5610_v16 = vld [vmem:[%s8387_s4 + $0x8f0] sm:$0xff] }
 0x2d1   : > { %3164 = vmatpush1.msra.mxu0 %v3105_v35  ;;  %3335 = vmatprep.subr.mxu1 %v3262_v63  ;;  %v3303_v35 = vunpack.c.l.bf16 %v5619_v48  ;;  %v3146_v63 = vunpack.c.h.bf16 %v5591_v22  ;;  %v5582_v48 = vld [vmem:[%s8387_s4 + $0x728] sm:$0xff] }
 0x2d2   : > { %3165 = vmatprep.subr.mxu0 %v3104_v9  ;;  %3336 = vmatpush1.msra.mxu1 %v3261_v61  ;;  %v3145_v61 = vunpack.c.l.bf16 %v5591_v22  ;;  %v3302_v9 = vunpack.c.h.bf16 %v5618_v29  ;;  %v3129_v22 = vunpack.c.l.bf16 %v5583_v1 }
 0x2d3   : > { %3166 = vmatpush1.msra.mxu0 %v3103_v43  ;;  %3337 = vmatprep.subr.mxu1 %v3260_v37  ;;  %v3301_v43 = vunpack.c.l.bf16 %v5618_v29  ;;  %v3144_v37 = vunpack.c.h.bf16 %v5590_v31  ;;  %v3285_v29 = vunpack.c.l.bf16 %v5610_v16 }
 0x2d4   : > { %3167 = vmatprep.subr.mxu0 %v3102_v38  ;;  %3338 = vmatpush1.msra.mxu1 %v3259_v39  ;;  %v3143_v39 = vunpack.c.l.bf16 %v5590_v31  ;;  %v3300_v38 = vunpack.c.h.bf16 %v5617_v41  ;;  %v5580_v31 = vld [vmem:[%s8387_s4 + $0x718] sm:$0xff] }
 0x2d5   : > { %3168 = vmatpush1.msra.mxu0 %v3101_v40  ;;  %3339 = vmatprep.subr.mxu1 %v3258_v28  ;;  %v3299_v40 = vunpack.c.l.bf16 %v5617_v41  ;;  %v3142_v28 = vunpack.c.h.bf16 %v5589_v10  ;;  %v5579_v41 = vld [vmem:[%s8387_s4 + $0x710] sm:$0xff] }
 0x2d6   : > { %3169 = vmatprep.subr.mxu0 %v3100_v60  ;;  %3340 = vmatpush1.msra.mxu1 %v3257_v42  ;;  %v3141_v42 = vunpack.c.l.bf16 %v5589_v10  ;;  %v3298_v60 = vunpack.c.h.bf16 %v5616_v44  ;;  %v3122_v10 = vunpack.c.h.bf16 %v5579_v41 }
 0x2d7   : > { %3170 = vmatpush1.msra.mxu0 %v3099_v36  ;;  %3341 = vmatprep.subr.mxu1 %v3256_v52  ;;  %v3297_v36 = vunpack.c.l.bf16 %v5616_v44  ;;  %v3140_v52 = vunpack.c.h.bf16 %v5588_v25  ;;  %v2046_v44 = vpop.f32.mrf.mxu1 }
 0x2d8   : > { %3171 = vmatprep.subr.mxu0 %v3098_v3  ;;  %3342 = vmatpush1.msra.mxu1 %v3255_v54  ;;  %v3139_v54 = vunpack.c.l.bf16 %v5588_v25  ;;  %v3296_v3 = vunpack.c.h.bf16 %v5615_v13 }
 0x2d9   : > { %3172 = vmatpush1.msra.mxu0 %v3097_v46  ;;  %3343 = vmatprep.subr.mxu1 %v3254_v62  ;;  %v3295_v46 = vunpack.c.l.bf16 %v5615_v13  ;;  %v3138_v62 = vunpack.c.h.bf16 %v5587_v33 }
 0x2da   : > { %3173 = vmatprep.subr.mxu0 %v3096_v49  ;;  %3344 = vmatpush1.msra.mxu1 %v3253_v24  ;;  %v3137_v24 = vunpack.c.l.bf16 %v5587_v33  ;;  %v3294_v49 = vunpack.c.h.bf16 %v5614_v2 }
 0x2db   : > { %3174 = vmatpush1.msra.mxu0 %v3095_v7  ;;  %3349 = vmatprep.subr.mxu1 %v3312_v47  ;;  %v3293_v7 = vunpack.c.l.bf16 %v5614_v2  ;;  %v3136_v47 = vunpack.c.h.bf16 %v5586_v32 }
 0x2dc   : > { %3175 = vmatprep.subr.mxu0 %v3094_v45  ;;  %3350 = vmatpush2.msra.mxu1 %v3311_v59  ;;  %v3135_v59 = vunpack.c.l.bf16 %v5586_v32  ;;  %v3292_v45 = vunpack.c.h.bf16 %v5613_v5 }
 0x2dd   : > { %3176 = vmatpush1.msra.mxu0 %v3093_v55  ;;  %3351 = vmatprep.subr.mxu1 %v3310_v51  ;;  %v3291_v55 = vunpack.c.l.bf16 %v5613_v5  ;;  %v3134_v51 = vunpack.c.h.bf16 %v5585_v6 }
 0x2de   : > { %3177 = vmatprep.subr.mxu0 %v3092_v15  ;;  %3352 = vmatpush2.msra.mxu1 %v3309_v14  ;;  %v3133_v14 = vunpack.c.l.bf16 %v5585_v6  ;;  %v3290_v15 = vunpack.c.h.bf16 %v5612_v57 }
 0x2df   : > { %3178 = vmatpush1.msra.mxu0 %v3091_v53  ;;  %3353 = vmatprep.subr.mxu1 %v3308_v58  ;;  %v3289_v53 = vunpack.c.l.bf16 %v5612_v57  ;;  %v3132_v58 = vunpack.c.h.bf16 %v5584_v8 }
 0x2e0   : > { %3179 = vmatprep.subr.mxu0 %v3090_v17  ;;  %3354 = vmatpush2.msra.mxu1 %v3307_v50  ;;  %v3131_v50 = vunpack.c.l.bf16 %v5584_v8  ;;  %v3288_v17 = vunpack.c.h.bf16 %v5611_v11 }
 0x2e1   : > { %3180 = vmatpush1.msra.mxu0 %v3089_v0  ;;  %3355 = vmatprep.subr.mxu1 %v3306_v21  ;;  %v3287_v0 = vunpack.c.l.bf16 %v5611_v11  ;;  %v3130_v21 = vunpack.c.h.bf16 %v5583_v1 }
 0x2e2   : > { %3185 = vmatprep.subr.mxu0 %v3148_v23  ;;  %3356 = vmatpush2.msra.mxu1 %v3305_v56  ;;  %v3286_v56 = vunpack.c.h.bf16 %v5610_v16  ;;  %v5581_v23 = vld [vmem:[%s8387_s4 + $0x720] sm:$0xff]  ;;  %v3588_v16 = vld [vmem:[%s8390_s7 + $0xe8] sm:$0xff] }
 0x2e3   : > { %3186 = vmatpush2.msra.mxu0 %v3147_v30  ;;  %3357 = vmatprep.subr.mxu1 %v3304_v12  ;;  %v3128_v30 = vunpack.c.h.bf16 %v5582_v48  ;;  %v3127_v12 = vunpack.c.l.bf16 %v5582_v48  ;;  %v5626_v48 = vld [vmem:[%s8389_s6 + $0x4] sm:$0xf] }
 0x2e4   : > { %3187 = vmatprep.subr.mxu0 %v3146_v63  ;;  %3358 = vmatpush2.msra.mxu1 %v3303_v35  ;;  %v3126_v35 = vunpack.c.h.bf16 %v5581_v23  ;;  %v3125_v63 = vunpack.c.l.bf16 %v5581_v23  ;;  %v3585_v23 = vld [vmem:[%s8390_s7 + $0xd0] sm:$0xff] }
 0x2e5   : > { %3188 = vmatpush2.msra.mxu0 %v3145_v61  ;;  %3359 = vmatprep.subr.mxu1 %v3302_v9  ;;  %v3124_v61 = vunpack.c.h.bf16 %v5580_v31  ;;  %v3123_v9 = vunpack.c.l.bf16 %v5580_v31 }
 0x2e6   : > { %3189 = vmatprep.subr.mxu0 %v3144_v37  ;;  %3360 = vmatpush2.msra.mxu1 %v3301_v43  ;;  %v3121_v43 = vunpack.c.l.bf16 %v5579_v41  ;;  %v1973_v37 = vpop.f32.mrf.mxu0  ;;  %v3584_v41 = vld [vmem:[%s8390_s7 + $0xc8] sm:$0xff] }
 0x2e7   : > { %3190 = vmatpush2.msra.mxu0 %v3143_v39  ;;  %3361 = vmatprep.subr.mxu1 %v3300_v38  ;;  %v2047_v32 = vadd.f32 %v2046_v44, %v1973_v37  ;;  %v3581_v37 = vld [vmem:[%s8390_s7 + $0xb0] sm:$0xff]  ;;  %v3582_v44 = vld [vmem:[%s8390_s7 + $0xb8] sm:$0xff] }
 0x2e8   : > { %3191 = vmatprep.subr.mxu0 %v3142_v28  ;;  %3362 = vmatpush2.msra.mxu1 %v3299_v40  ;;  %v1975_v39 = vpop.f32.mrf.mxu0 }
 0x2e9   : > { %3192 = vmatpush2.msra.mxu0 %v3141_v42  ;;  %3363 = vmatprep.subr.mxu1 %v3298_v60 }
 0x2ea   : > { %3193 = vmatprep.subr.mxu0 %v3140_v52  ;;  %3364 = vmatpush2.msra.mxu1 %v3297_v36 }
 0x2eb   : > { %3194 = vmatpush2.msra.mxu0 %v3139_v54  ;;  %3365 = vmatprep.subr.mxu1 %v3296_v3 }
 0x2ec   : > { %3195 = vmatprep.subr.mxu0 %v3138_v62  ;;  %3366 = vmatpush2.msra.mxu1 %v3295_v46 }
 0x2ed   : > { %3196 = vmatpush2.msra.mxu0 %v3137_v24  ;;  %3367 = vmatprep.subr.mxu1 %v3294_v49 }
 0x2ee   : > { %3197 = vmatprep.subr.mxu0 %v3136_v47  ;;  %3368 = vmatpush2.msra.mxu1 %v3293_v7 }
 0x2ef   : > { %3198 = vmatpush2.msra.mxu0 %v3135_v59  ;;  %3369 = vmatprep.subr.mxu1 %v3292_v45 }
 0x2f0   : > { %3199 = vmatprep.subr.mxu0 %v3134_v51  ;;  %3370 = vmatpush2.msra.mxu1 %v3291_v55 }
 0x2f1   : > { %3200 = vmatpush2.msra.mxu0 %v3133_v14  ;;  %3371 = vmatprep.subr.mxu1 %v3290_v15  ;;  %v3589_v14 = vld [vmem:[%s8390_s7 + $0xf0] sm:$0xff]  ;;  %v3590_v15 = vld [vmem:[%s8390_s7 + $0xf8] sm:$0xff] }
 0x2f2   : > { %3201 = vmatprep.subr.mxu0 %v3132_v58  ;;  %3372 = vmatpush2.msra.mxu1 %v3289_v53  ;;  %v3587_v58 = vld [vmem:[%s8390_s7 + $0xe0] sm:$0xff] }
 0x2f3   : > { %3202 = vmatpush2.msra.mxu0 %v3131_v50  ;;  %3373 = vmatprep.subr.mxu1 %v3288_v17  ;;  %v3388_v17 = vld [vmem:[%s8389_s6] sm:$0xf]  ;;  %v3665_v31 = vunpack.c.l.bf16 %v3587_v58 }
 0x2f4   : > { %3203 = vmatprep.subr.mxu0 %v3130_v21  ;;  %3374 = vmatpush2.msra.mxu1 %v3287_v0  ;;  %v3670_v0 = vunpack.c.h.bf16 %v3589_v14  ;;  %v3672_v21 = vunpack.c.h.bf16 %v3590_v15 }
 0x2f5   : > { %3204 = vmatpush2.msra.mxu0 %v3129_v22  ;;  %3375 = vmatprep.subr.mxu1 %v3286_v56  ;;  %v3669_v22 = vunpack.c.l.bf16 %v3589_v14  ;;  %v3671_v56 = vunpack.c.l.bf16 %v3590_v15  ;;  %v3569_v15 = vld [vmem:[%s8390_s7 + $0x50] sm:$0xff] }
 0x2f6   : > { %3205 = vmatprep.subr.mxu0 %v3128_v30  ;;  %3376 = vmatpush2.msra.mxu1 %v3285_v29  ;;  %v3586_v29 = vld [vmem:[%s8390_s7 + $0xd8] sm:$0xff]  ;;  %v3666_v30 = vunpack.c.h.bf16 %v3587_v58 }
 0x2f7   : > { %3206 = vmatpush2.msra.mxu0 %v3127_v12  ;;  %3378 = vmatmul.mubr.f32.vlgmr.msra.gmra.mxu1 %v7260_v27  ;;  %v2048_v27 = vpop.f32.mrf.mxu1  ;;  %v3668_v12 = vunpack.c.h.bf16 %v3588_v16 }
 0x2f8   : > { %3207 = vmatprep.subr.mxu0 %v3126_v35  ;;  %3533 = vmatprep.mubr.f32.mxu1 %v8413_v34  ;;  %v2049_v3 = vadd.f32 %v2048_v27, %v1975_v39  ;;  %v3667_v35 = vunpack.c.l.bf16 %v3588_v16 }
 0x2f9   : > { %3208 = vmatpush2.msra.mxu0 %v3125_v63  ;;  %v3583_v63 = vld [vmem:[%s8390_s7 + $0xc0] sm:$0xff] }
 0x2fa   : > { %3209 = vmatprep.subr.mxu0 %v3124_v61  ;;  %v3662_v61 = vunpack.c.h.bf16 %v3585_v23  ;;  %v3658_v39 = vunpack.c.h.bf16 %v3583_v63  ;;  %v3657_v27 = vunpack.c.l.bf16 %v3583_v63  ;;  %v3563_v63 = vld [vmem:[%s8390_s7 + $0x20] sm:$0xff] }
 0x2fb   : > { %3210 = vmatpush2.msra.mxu0 %v3123_v9  ;;  %v3664_v9 = vunpack.c.h.bf16 %v3586_v29 }
 0x2fc   : > { %3211 = vmatprep.subr.mxu0 %v3122_v10  ;;  %v3661_v10 = vunpack.c.l.bf16 %v3585_v23  ;;  %v3565_v23 = vld [vmem:[%s8390_s7 + $0x30] sm:$0xff] }
 0x2fd   : > { %3212 = vmatpush2.msra.mxu0 %v3121_v43  ;;  %v2390_v25 = vpop.f32.mrf.mxu1  ;;  %v3663_v43 = vunpack.c.l.bf16 %v3586_v29  ;;  %v3566_v29 = vld [vmem:[%s8390_s7 + $0x38] sm:$0xff] }
 0x2fe   : > { %3214 = vmatmul.mubr.f32.vlgmr.msra.gmra.mxu0 %v7035_v4 }
 0x2ff   : > { %3457 = vmatprep.mubr.f32.mxu0 %v8413_v34  ;;  %v2392_v13 = vpop.f32.mrf.mxu1 }
 0x305   : > { %v2217_v38 = vpop.f32.mrf.mxu0 }
 0x306   : > { %v2222_v5 = vadd.f32 %v2217_v38, %v2047_v32  ;;  %v3660_v38 = vunpack.c.h.bf16 %v3584_v41  ;;  %v3575_v32 = vld [vmem:[%s8390_s7 + $0x80] sm:$0xff] }
 0x307   : > { %v2219_v40 = vpop.f32.mrf.mxu0 }
 0x308   : > { %v2223_v46 = vadd.f32 %v2219_v40, %v2049_v3  ;;  %v2395_v45 = vadd.f32 %v2390_v25, %v2222_v5  ;;  %v3659_v25 = vunpack.c.l.bf16 %v3584_v41  ;;  %v3579_v40 = vld [vmem:[%s8390_s7 + $0xa0] sm:$0xff]  ;;  %v3564_v41 = vld [vmem:[%s8390_s7 + $0x28] sm:$0xff] }
 0x309   : > { %v3649_v3 = vunpack.c.l.bf16 %v3579_v40 }
 0x30a   : > { %v2396_v57 = vadd.f32 %v2392_v13, %v2223_v46  ;;  %v3654_v13 = vunpack.c.h.bf16 %v3581_v37 }
 0x33b   : > { %v2818_v42 = vpop.f32.mrf.mxu1 }
 0x33d   : > { %v2820_v36 = vpop.f32.mrf.mxu1 }
 0x343   : > { %v2563_v28 = vpop.f32.mrf.mxu0 }
 0x344   : > { %v2568_v1 = vadd.f32 %v2563_v28, %v2395_v45  ;;  %v3580_v28 = vld [vmem:[%s8390_s7 + $0xa8] sm:$0xff]  ;;  %v3571_v45 = vld [vmem:[%s8390_s7 + $0x60] sm:$0xff] }
 0x345   : > { %v2565_v60 = vpop.f32.mrf.mxu0  ;;  %v3633_v16 = vunpack.c.l.bf16 %v3571_v45 }
 0x346   : > { %v2569_v51 = vadd.f32 %v2565_v60, %v2396_v57  ;;  %v3653_v60 = vunpack.c.l.bf16 %v3581_v37  ;;  %v3641_v57 = vunpack.c.l.bf16 %v3575_v32  ;;  %v3561_v37 = vld [vmem:[%s8390_s7 + $0x10] sm:$0xff] }
 0x379   : > { %v3051_v52 = vpop.f32.mrf.mxu1 }
 0x37b   : > { %v3053_v34 = vpop.f32.mrf.mxu1 }
 0x381   : > { %v2889_v33 = vpop.f32.mrf.mxu0 }
 0x382   : > { %v2890_v54 = vadd.f32 %v2889_v33, %v2818_v42  ;;  %v3656_v42 = vunpack.c.h.bf16 %v3582_v44  ;;  %v3655_v33 = vunpack.c.l.bf16 %v3582_v44  ;;  %v3562_v44 = vld [vmem:[%s8390_s7 + $0x18] sm:$0xff] }
 0x383   : > { %v2891_v2 = vpop.f32.mrf.mxu0 }
 0x384   : > { %v2892_v4 = vadd.f32 %v2891_v2, %v2820_v36  ;;  %v3056_v62 = vadd.f32 %v3051_v52, %v2890_v54  ;;  %v3577_v36 = vld [vmem:[%s8390_s7 + $0x90] sm:$0xff]  ;;  %v3578_v52 = vld [vmem:[%s8390_s7 + $0x98] sm:$0xff]  ;;  %v3650_v2 = vunpack.c.h.bf16 %v3579_v40  ;;  %v3652_v54 = vunpack.c.h.bf16 %v3580_v28  ;;  %v3559_v40 = vld [vmem:[%s8390_s7] sm:$0xff] }
 0x385   : > { %v3646_v46 = vunpack.c.h.bf16 %v3577_v36  ;;  %v3645_v5 = vunpack.c.l.bf16 %v3577_v36  ;;  %v3607_v36 = vld [vmem:[%s8390_s7 + $0x180] sm:$0xff] }
 0x386   : > { %v3057_v7 = vadd.f32 %v3053_v34, %v2892_v4  ;;  %v3651_v4 = vunpack.c.l.bf16 %v3580_v28  ;;  %v3576_v34 = vld [vmem:[%s8390_s7 + $0x88] sm:$0xff] }
 0x387   : > { %v3560_v28 = vld [vmem:[%s8390_s7 + $0x8] sm:$0xff] }
 0x3b7   : > { %v3379_v24 = vpop.f32.mrf.mxu1 }
 0x3b9   : > { %v3381_v8 = vpop.f32.mrf.mxu1 }
 0x3be   : > { %v3215_v49 = vpop.f32.mrf.mxu0 }
 0x3bf   : > { %v3220_v6 = vadd.f32 %v3215_v49, %v3056_v62  ;;  %v3648_v62 = vunpack.c.h.bf16 %v3578_v52  ;;  %v3573_v49 = vld [vmem:[%s8390_s7 + $0x70] sm:$0xff] }
 0x3c0   : > { %v3217_v47 = vpop.f32.mrf.mxu0 }
 0x3c1   : > { %v3221_v59 = vadd.f32 %v3217_v47, %v3057_v7  ;;  %v3384_v55 = vadd.f32 %v3379_v24, %v3220_v6  ;;  %v3647_v24 = vunpack.c.l.bf16 %v3578_v52  ;;  %v3574_v6 = vld [vmem:[%s8390_s7 + $0x78] sm:$0xff]  ;;  %v3642_v7 = vunpack.c.h.bf16 %v3575_v32  ;;  %v3608_v52 = vld [vmem:[%s8390_s7 + $0x188] sm:$0xff]  ;;  %v3605_v32 = vld [vmem:[%s8390_s7 + $0x170] sm:$0xff] }
 0x3c2   : > { %v3644_v47 = vunpack.c.h.bf16 %v3576_v34  ;;  %v3639_v14 = vunpack.c.l.bf16 %v3574_v6 }
 0x3c3   : > { %v3385_v11 = vadd.f32 %v3381_v8, %v3221_v59  ;;  %v3386_v50 = vmax.f32 %v2568_v1, %v3384_v55  ;;  %v3643_v59 = vunpack.c.l.bf16 %v3576_v34  ;;  %v3572_v8 = vld [vmem:[%s8390_s7 + $0x68] sm:$0xff]  ;;  %v3638_v55 = vunpack.c.h.bf16 %v3573_v49  ;;  %v3570_v1 = vld [vmem:[%s8390_s7 + $0x58] sm:$0xff] }
 0x3c4   : > { %v3636_v58 = vunpack.c.h.bf16 %v3572_v8  ;;  %v3606_v34 = vld [vmem:[%s8390_s7 + $0x178] sm:$0xff] }
 0x3c5   : > { %v3387_v53 = vmax.f32 %v2569_v51, %v3385_v11  ;;  %v3640_v51 = vunpack.c.h.bf16 %v3574_v6  ;;  %v3637_v11 = vunpack.c.l.bf16 %v3573_v49  ;;  %v3603_v49 = vld [vmem:[%s8390_s7 + $0x160] sm:$0xff]  ;;  %v3604_v6 = vld [vmem:[%s8390_s7 + $0x168] sm:$0xff] }
 0x3c7   : > { %3423 = vmatprep.subr.mxu0 %v3387_v53  ;;  %3499 = vmatprep.subr.mxu1 %v3387_v53  ;;  %v3634_v53 = vunpack.c.h.bf16 %v3571_v45  ;;  %v3601_v45 = vld [vmem:[%s8390_s7 + $0x150] sm:$0xff] }
 0x3c8   : > { %3424 = vmatpush1.msra.mxu0 %v3386_v50  ;;  %3500 = vmatpush1.msra.mxu1 %v3386_v50  ;;  %v3635_v50 = vunpack.c.l.bf16 %v3572_v8  ;;  %v3602_v8 = vld [vmem:[%s8390_s7 + $0x158] sm:$0xff] }
 0x3c9   : > { %5625 = vmatmul.mubr.msk.f32.vlgmr.msra.gmra.mxu0 %vm3389_vm7, %v3388_v17  ;;  %5627 = vmatmul.mubr.msk.f32.vlgmr.msra.gmra.mxu1 %vm3389_vm7, %v5626_v48  ;;  %v3567_v17 = vld [vmem:[%s8390_s7 + $0x40] sm:$0xff]  ;;  %v3568_v48 = vld [vmem:[%s8390_s7 + $0x48] sm:$0xff] }
 0x3ca   : > { %3713 = vmatprep.subr.mxu0 %v3670_v0  ;;  %3784 = vmatprep.subr.mxu1 %v3672_v21  ;;  %v3630_v0 = vunpack.c.h.bf16 %v3569_v15  ;;  %v3632_v21 = vunpack.c.h.bf16 %v3570_v1 }
 0x3cb   : > { %3714 = vmatpush1.msra.mxu0 %v3669_v22  ;;  %3785 = vmatpush1.msra.mxu1 %v3671_v56  ;;  %v3629_v22 = vunpack.c.l.bf16 %v3569_v15  ;;  %v3631_v56 = vunpack.c.l.bf16 %v3570_v1  ;;  %v3599_v15 = vld [vmem:[%s8390_s7 + $0x140] sm:$0xff]  ;;  %v3600_v1 = vld [vmem:[%s8390_s7 + $0x148] sm:$0xff] }
 0x3cc   : > { %3715 = vmatprep.subr.mxu0 %v3666_v30  ;;  %3786 = vmatprep.subr.mxu1 %v3668_v12  ;;  %v3626_v30 = vunpack.c.h.bf16 %v3567_v17  ;;  %v3628_v12 = vunpack.c.h.bf16 %v3568_v48 }
 0x3cd   : > { %3716 = vmatpush1.msra.mxu0 %v3665_v31  ;;  %3787 = vmatpush1.msra.mxu1 %v3667_v35  ;;  %v3625_v31 = vunpack.c.l.bf16 %v3567_v17  ;;  %v3627_v35 = vunpack.c.l.bf16 %v3568_v48  ;;  %v3690_v17 = vunpack.c.h.bf16 %v3599_v15  ;;  %v3692_v48 = vunpack.c.h.bf16 %v3600_v1 }
 0x3ce   : > { %3717 = vmatprep.subr.mxu0 %v3662_v61  ;;  %3788 = vmatprep.subr.mxu1 %v3664_v9  ;;  %v3622_v61 = vunpack.c.h.bf16 %v3565_v23  ;;  %v3624_v9 = vunpack.c.h.bf16 %v3566_v29 }
 0x3cf   : > { %3718 = vmatpush1.msra.mxu0 %v3661_v10  ;;  %3789 = vmatpush1.msra.mxu1 %v3663_v43  ;;  %v3621_v10 = vunpack.c.l.bf16 %v3565_v23  ;;  %v3623_v43 = vunpack.c.l.bf16 %v3566_v29 }
 0x3d0   : > { %3719 = vmatprep.subr.mxu0 %v3658_v39  ;;  %3790 = vmatprep.subr.mxu1 %v3660_v38  ;;  %v3618_v39 = vunpack.c.h.bf16 %v3563_v63  ;;  %v3620_v38 = vunpack.c.h.bf16 %v3564_v41 }
 0x3d1   : > { %3720 = vmatpush1.msra.mxu0 %v3657_v27  ;;  %3791 = vmatpush1.msra.mxu1 %v3659_v25  ;;  %v3617_v27 = vunpack.c.l.bf16 %v3563_v63  ;;  %v3619_v25 = vunpack.c.l.bf16 %v3564_v41 }
 0x3d2   : > { %3721 = vmatprep.subr.mxu0 %v3654_v13  ;;  %3792 = vmatprep.subr.mxu1 %v3656_v42  ;;  %v3614_v13 = vunpack.c.h.bf16 %v3561_v37  ;;  %v3616_v42 = vunpack.c.h.bf16 %v3562_v44 }
 0x3d3   : > { %3722 = vmatpush1.msra.mxu0 %v3653_v60  ;;  %3793 = vmatpush1.msra.mxu1 %v3655_v33  ;;  %v3613_v60 = vunpack.c.l.bf16 %v3561_v37  ;;  %v3615_v33 = vunpack.c.l.bf16 %v3562_v44 }
 0x3d4   : > { %3723 = vmatprep.subr.mxu0 %v3650_v2  ;;  %3794 = vmatprep.subr.mxu1 %v3652_v54  ;;  %v3610_v2 = vunpack.c.h.bf16 %v3559_v40  ;;  %v3612_v54 = vunpack.c.h.bf16 %v3560_v28 }
 0x3d5   : > { %3724 = vmatpush1.msra.mxu0 %v3649_v3  ;;  %3795 = vmatpush1.msra.mxu1 %v3651_v4  ;;  %v3609_v3 = vunpack.c.l.bf16 %v3559_v40  ;;  %v3611_v4 = vunpack.c.l.bf16 %v3560_v28 }
 0x3d6   : > { %3725 = vmatprep.subr.mxu0 %v3646_v46  ;;  %3796 = vmatprep.subr.mxu1 %v3648_v62  ;;  %v3706_v46 = vunpack.c.h.bf16 %v3607_v36  ;;  %v3708_v62 = vunpack.c.h.bf16 %v3608_v52 }
 0x3d7   : > { %3726 = vmatpush1.msra.mxu0 %v3645_v5  ;;  %3797 = vmatpush1.msra.mxu1 %v3647_v24  ;;  %v3705_v5 = vunpack.c.l.bf16 %v3607_v36  ;;  %v3707_v24 = vunpack.c.l.bf16 %v3608_v52 }
 0x3d8   : > { %3727 = vmatprep.subr.mxu0 %v3642_v7  ;;  %3798 = vmatprep.subr.mxu1 %v3644_v47  ;;  %v3702_v7 = vunpack.c.h.bf16 %v3605_v32  ;;  %v3704_v47 = vunpack.c.h.bf16 %v3606_v34 }
 0x3d9   : > { %3728 = vmatpush1.msra.mxu0 %v3641_v57  ;;  %3799 = vmatpush1.msra.mxu1 %v3643_v59  ;;  %v3701_v57 = vunpack.c.l.bf16 %v3605_v32  ;;  %v3703_v59 = vunpack.c.l.bf16 %v3606_v34 }
 0x3da   : > { %3729 = vmatprep.subr.mxu0 %v3638_v55  ;;  %3800 = vmatprep.subr.mxu1 %v3640_v51  ;;  %v3698_v55 = vunpack.c.h.bf16 %v3603_v49  ;;  %v3700_v51 = vunpack.c.h.bf16 %v3604_v6 }
 0x3db   : > { %3730 = vmatpush1.msra.mxu0 %v3637_v11  ;;  %3801 = vmatpush1.msra.mxu1 %v3639_v14  ;;  %v3697_v11 = vunpack.c.l.bf16 %v3603_v49  ;;  %v3699_v14 = vunpack.c.l.bf16 %v3604_v6  ;;  %v5658_v6 = vld [vmem:[%s8390_s7 + $0x270] sm:$0xff] }
 0x3dc   : > { %3731 = vmatprep.subr.mxu0 %v3634_v53  ;;  %3802 = vmatprep.subr.mxu1 %v3636_v58  ;;  %v3694_v53 = vunpack.c.h.bf16 %v3601_v45  ;;  %v3696_v58 = vunpack.c.h.bf16 %v3602_v8 }
 0x3dd   : > { %3732 = vmatpush1.msra.mxu0 %v3633_v16  ;;  %3803 = vmatpush1.msra.mxu1 %v3635_v50  ;;  %v3693_v16 = vunpack.c.l.bf16 %v3601_v45  ;;  %v3695_v50 = vunpack.c.l.bf16 %v3602_v8  ;;  %v5656_v45 = vld [vmem:[%s8390_s7 + $0x260] sm:$0xff]  ;;  %v5657_v8 = vld [vmem:[%s8390_s7 + $0x268] sm:$0xff] }
 0x3de   : > { %3733 = vmatprep.subr.mxu0 %v3630_v0  ;;  %3804 = vmatprep.subr.mxu1 %v3632_v21  ;;  %v3689_v0 = vunpack.c.l.bf16 %v3599_v15  ;;  %v3691_v21 = vunpack.c.l.bf16 %v3600_v1  ;;  %v5654_v1 = vld [vmem:[%s8390_s7 + $0x250] sm:$0xff] }
 0x3df   : > { %3734 = vmatpush1.msra.mxu0 %v3629_v22  ;;  %3805 = vmatpush1.msra.mxu1 %v3631_v56  ;;  %v3597_v22 = vld [vmem:[%s8390_s7 + $0x130] sm:$0xff]  ;;  %v3598_v56 = vld [vmem:[%s8390_s7 + $0x138] sm:$0xff] }
 0x3e0   : > { %3735 = vmatprep.subr.mxu0 %v3626_v30  ;;  %3806 = vmatprep.subr.mxu1 %v3628_v12  ;;  %v3686_v23 = vunpack.c.h.bf16 %v3597_v22  ;;  %v3688_v29 = vunpack.c.h.bf16 %v3598_v56  ;;  %v3685_v30 = vunpack.c.l.bf16 %v3597_v22  ;;  %v3687_v12 = vunpack.c.l.bf16 %v3598_v56  ;;  %v5653_v22 = vld [vmem:[%s8390_s7 + $0x248] sm:$0xff] }
 0x3e1   : > { %3736 = vmatpush1.msra.mxu0 %v3625_v31  ;;  %3807 = vmatpush1.msra.mxu1 %v3627_v35  ;;  %v3595_v31 = vld [vmem:[%s8390_s7 + $0x120] sm:$0xff]  ;;  %v3596_v35 = vld [vmem:[%s8390_s7 + $0x128] sm:$0xff]  ;;  %v3984_v56 = vunpack.c.l.bf16 %v5654_v1 }
 0x3e2   : > { %3737 = vmatprep.subr.mxu0 %v3622_v61  ;;  %3808 = vmatprep.subr.mxu1 %v3624_v9  ;;  %v3682_v63 = vunpack.c.h.bf16 %v3595_v31  ;;  %v3684_v41 = vunpack.c.h.bf16 %v3596_v35  ;;  %v3681_v61 = vunpack.c.l.bf16 %v3595_v31  ;;  %v3683_v9 = vunpack.c.l.bf16 %v3596_v35 }
 0x3e3   : > { %3738 = vmatpush1.msra.mxu0 %v3621_v10  ;;  %3809 = vmatpush1.msra.mxu1 %v3623_v43  ;;  %v3593_v10 = vld [vmem:[%s8390_s7 + $0x110] sm:$0xff]  ;;  %v3594_v43 = vld [vmem:[%s8390_s7 + $0x118] sm:$0xff]  ;;  %v3983_v35 = vunpack.c.h.bf16 %v5653_v22 }
 0x3e4   : > { %3739 = vmatprep.subr.mxu0 %v3618_v39  ;;  %3810 = vmatprep.subr.mxu1 %v3620_v38  ;;  %v3678_v37 = vunpack.c.h.bf16 %v3593_v10  ;;  %v3680_v44 = vunpack.c.h.bf16 %v3594_v43  ;;  %v3677_v39 = vunpack.c.l.bf16 %v3593_v10  ;;  %v3679_v38 = vunpack.c.l.bf16 %v3594_v43 }
 0x3e5   : > { %3740 = vmatpush1.msra.mxu0 %v3617_v27  ;;  %3811 = vmatpush1.msra.mxu1 %v3619_v25  ;;  %v3591_v27 = vld [vmem:[%s8390_s7 + $0x100] sm:$0xff]  ;;  %v3592_v25 = vld [vmem:[%s8390_s7 + $0x108] sm:$0xff] }
 0x3e6   : > { %3741 = vmatprep.subr.mxu0 %v3614_v13  ;;  %3812 = vmatprep.subr.mxu1 %v3616_v42  ;;  %v3674_v40 = vunpack.c.h.bf16 %v3591_v27  ;;  %v3676_v28 = vunpack.c.h.bf16 %v3592_v25  ;;  %v3673_v13 = vunpack.c.l.bf16 %v3591_v27  ;;  %v3675_v42 = vunpack.c.l.bf16 %v3592_v25 }
 0x3e7   : > { %3742 = vmatpush1.msra.mxu0 %v3613_v60  ;;  %3813 = vmatpush1.msra.mxu1 %v3615_v33  ;;  %v5660_v60 = vld [vmem:[%s8390_s7 + $0x280] sm:$0xff]  ;;  %v5661_v33 = vld [vmem:[%s8390_s7 + $0x288] sm:$0xff] }
 0x3e8   : > { %3743 = vmatprep.subr.mxu0 %v3610_v2  ;;  %3814 = vmatprep.subr.mxu1 %v3612_v54  ;;  %v3997_v36 = vunpack.c.h.bf16 %v5660_v60  ;;  %v3999_v52 = vunpack.c.h.bf16 %v5661_v33  ;;  %v3542_v2 = vld [vmem:[%s8388_s5] sm:$0x3] }
 0x3e9   : > { %3744 = vmatpush1.msra.mxu0 %v3609_v3  ;;  %3815 = vmatpush1.msra.mxu1 %v3611_v4  ;;  %v3547_v4 = vrot.slane %v3542_v2, %v6802_v26  ;;  %v3551_v34 = vrot.slane %v3542_v2, %v6808_v20  ;;  %v5642_v2 = vld [vmem:[%s8390_s7 + $0x1f0] sm:$0xff] }
 0x3ea   : > { %3759 = vmatprep.subr.mxu0 %v3706_v46  ;;  %3830 = vmatprep.subr.mxu1 %v3708_v62 }
 0x3eb   : > { %3760 = vmatpush2.msra.mxu0 %v3705_v5  ;;  %3831 = vmatpush2.msra.mxu1 %v3707_v24 }
 0x3ec   : > { %3761 = vmatprep.subr.mxu0 %v3702_v7  ;;  %3832 = vmatprep.subr.mxu1 %v3704_v47  ;;  %v5659_v7 = vld [vmem:[%s8390_s7 + $0x278] sm:$0xff] }
 0x3ed   : > { %3762 = vmatpush2.msra.mxu0 %v3701_v57  ;;  %3833 = vmatpush2.msra.mxu1 %v3703_v59  ;;  %v3996_v57 = vunpack.c.l.bf16 %v5660_v60  ;;  %v3998_v59 = vunpack.c.l.bf16 %v5661_v33  ;;  %v3994_v15 = vunpack.c.l.bf16 %v5659_v7 }
 0x3ee   : > { %3763 = vmatprep.subr.mxu0 %v3698_v55  ;;  %3834 = vmatprep.subr.mxu1 %v3700_v51  ;;  %v3993_v51 = vunpack.c.h.bf16 %v5658_v6 }
 0x3ef   : > { %3764 = vmatpush2.msra.mxu0 %v3697_v11  ;;  %3835 = vmatpush2.msra.mxu1 %v3699_v14  ;;  %v3995_v11 = vunpack.c.h.bf16 %v5659_v7  ;;  %v3992_v14 = vunpack.c.l.bf16 %v5658_v6  ;;  %v5638_v7 = vld [vmem:[%s8390_s7 + $0x1d0] sm:$0xff] }
 0x3f0   : > { %3765 = vmatprep.subr.mxu0 %v3694_v53  ;;  %3836 = vmatprep.subr.mxu1 %v3696_v58  ;;  %v5655_v53 = vld [vmem:[%s8390_s7 + $0x258] sm:$0xff]  ;;  %v3989_v58 = vunpack.c.h.bf16 %v5656_v45 }
 0x3f1   : > { %3766 = vmatpush2.msra.mxu0 %v3693_v16  ;;  %3837 = vmatpush2.msra.mxu1 %v3695_v50  ;;  %v3991_v16 = vunpack.c.h.bf16 %v5657_v8  ;;  %v3988_v50 = vunpack.c.l.bf16 %v5656_v45 }
 0x3f2   : > { %3767 = vmatprep.subr.mxu0 %v3690_v17  ;;  %3838 = vmatprep.subr.mxu1 %v3692_v48  ;;  %v3990_v17 = vunpack.c.l.bf16 %v5657_v8  ;;  %v3985_v48 = vunpack.c.h.bf16 %v5654_v1 }
 0x3f3   : > { %3768 = vmatpush2.msra.mxu0 %v3689_v0  ;;  %3839 = vmatpush2.msra.mxu1 %v3691_v21  ;;  %v3987_v0 = vunpack.c.h.bf16 %v5655_v53  ;;  %v5652_v21 = vld [vmem:[%s8390_s7 + $0x240] sm:$0xff] }
 0x3f4   : > { %3769 = vmatprep.subr.mxu0 %v3686_v23  ;;  %3840 = vmatprep.subr.mxu1 %v3688_v29  ;;  %v3986_v29 = vunpack.c.l.bf16 %v5655_v53  ;;  %v3981_v31 = vunpack.c.h.bf16 %v5652_v21  ;;  %v3952_v53 = vunpack.c.l.bf16 %v5638_v7 }
 0x3f5   : > { %3770 = vmatpush2.msra.mxu0 %v3685_v30  ;;  %3841 = vmatpush2.msra.mxu1 %v3687_v12  ;;  %v5650_v30 = vld [vmem:[%s8390_s7 + $0x230] sm:$0xff]  ;;  %v5651_v12 = vld [vmem:[%s8390_s7 + $0x238] sm:$0xff] }
 0x3f6   : > { %3771 = vmatprep.subr.mxu0 %v3682_v63  ;;  %3842 = vmatprep.subr.mxu1 %v3684_v41  ;;  %v3980_v63 = vunpack.c.l.bf16 %v5652_v21  ;;  %v3982_v41 = vunpack.c.l.bf16 %v5653_v22  ;;  %v3977_v10 = vunpack.c.h.bf16 %v5650_v30  ;;  %v3979_v43 = vunpack.c.h.bf16 %v5651_v12  ;;  %v5632_v22 = vld [vmem:[%s8390_s7 + $0x1a0] sm:$0xff] }
 0x3f7   : > { %3772 = vmatpush2.msra.mxu0 %v3681_v61  ;;  %3843 = vmatpush2.msra.mxu1 %v3683_v9  ;;  %v5648_v61 = vld [vmem:[%s8390_s7 + $0x220] sm:$0xff]  ;;  %v5649_v9 = vld [vmem:[%s8390_s7 + $0x228] sm:$0xff] }
 0x3f8   : > { %3773 = vmatprep.subr.mxu0 %v3678_v37  ;;  %3844 = vmatprep.subr.mxu1 %v3680_v44  ;;  %v3976_v37 = vunpack.c.l.bf16 %v5650_v30  ;;  %v3978_v44 = vunpack.c.l.bf16 %v5651_v12  ;;  %v3973_v27 = vunpack.c.h.bf16 %v5648_v61  ;;  %v3975_v25 = vunpack.c.h.bf16 %v5649_v9 }
 0x3f9   : > { %3774 = vmatpush2.msra.mxu0 %v3677_v39  ;;  %3845 = vmatpush2.msra.mxu1 %v3679_v38  ;;  %v5646_v39 = vld [vmem:[%s8390_s7 + $0x210] sm:$0xff]  ;;  %v5647_v38 = vld [vmem:[%s8390_s7 + $0x218] sm:$0xff] }
 0x3fa   : > { %3775 = vmatprep.subr.mxu0 %v3674_v40  ;;  %3846 = vmatprep.subr.mxu1 %v3676_v28  ;;  %v3972_v40 = vunpack.c.l.bf16 %v5648_v61  ;;  %v3974_v28 = vunpack.c.l.bf16 %v5649_v9  ;;  %v3969_v60 = vunpack.c.h.bf16 %v5646_v39  ;;  %v3971_v33 = vunpack.c.h.bf16 %v5647_v38 }
 0x3fb   : > { %3776 = vmatpush2.msra.mxu0 %v3673_v13  ;;  %3847 = vmatpush2.msra.mxu1 %v3675_v42  ;;  %v5644_v13 = vld [vmem:[%s8390_s7 + $0x200] sm:$0xff]  ;;  %v5645_v42 = vld [vmem:[%s8390_s7 + $0x208] sm:$0xff]  ;;  %v3940_v61 = vunpack.c.l.bf16 %v5632_v22 }
 0x3fc   : > { %4042 = vmatprep.subr.mxu0 %v3997_v36  ;;  %4113 = vmatprep.subr.mxu1 %v3999_v52  ;;  %v3968_v36 = vunpack.c.l.bf16 %v5646_v39  ;;  %v3970_v52 = vunpack.c.l.bf16 %v5647_v38 }
 0x489   : > { %v3459_v54 = vpop.f32.mrf.mxu0  ;;  %v3535_v3 = vpop.f32.mrf.mxu1 }
 0x48a   : > { %v3540_v32 = vmax.f32 %v3459_v54, %v3535_v3  ;;  %v5643_v54 = vld [vmem:[%s8390_s7 + $0x1f8] sm:$0xff]  ;;  %v3965_v3 = vunpack.c.h.bf16 %v5644_v13 }
 0x48b   : > { %v3461_v46 = vpop.f32.mrf.mxu0  ;;  %v3537_v62 = vpop.f32.mrf.mxu1  ;;  %v3962_v6 = vunpack.c.l.bf16 %v5643_v54 }
 0x48c   : > { %v3541_v5 = vmax.f32 %v3461_v46, %v3537_v62  ;;  %v3554_v24 = vadd.f32 %v3547_v4, %v3540_v32  ;;  %v3967_v4 = vunpack.c.h.bf16 %v5645_v42  ;;  %v3964_v32 = vunpack.c.l.bf16 %v5644_v13  ;;  %v5640_v46 = vld [vmem:[%s8390_s7 + $0x1e0] sm:$0xff]  ;;  %v5641_v62 = vld [vmem:[%s8390_s7 + $0x1e8] sm:$0xff] }
 0x48d   : > { %v3959_v45 = vunpack.c.h.bf16 %v5641_v62  ;;  %v3956_v8 = vunpack.c.l.bf16 %v5640_v46 }
 0x48e   : > { %v3555_v49 = vadd.f32 %v3551_v34, %v3541_v5  ;;  %v7789_v55 = vmax.f32 %v3554_v24, 0.0  ;;  %v3966_v34 = vunpack.c.l.bf16 %v5645_v42  ;;  %v3961_v5 = vunpack.c.h.bf16 %v5642_v2 }
 0x48f   : > { %v3963_v24 = vunpack.c.h.bf16 %v5643_v54 }
 0x490   : > { %v7781_v47 = vmax.f32 %v3555_v49, 0.0  ;;  %v3960_v49 = vunpack.c.l.bf16 %v5642_v2 }
 0x492   : > { %5628 = vmatprep.mubr.msk.f32.mxu0 %vm3709_vm8, %v7781_v47  ;;  %5629 = vmatprep.mubr.msk.f32.mxu1 %vm3709_vm8, %v7781_v47  ;;  %v4038_v23 = vrot.slane %v7781_v47, 1 }
 0x493   : > { %3778 = vmatmul.mubr.f32.vlgmr.msra.gmra.mxu0 %v7789_v55  ;;  %3849 = vmatmul.mubr.f32.vlgmr.msra.gmra.mxu1 %v7789_v55 }
 0x494   : > { %4043 = vmatpush1.msra.mxu0 %v3996_v57  ;;  %4114 = vmatpush1.msra.mxu1 %v3998_v59  ;;  %v5639_v57 = vld [vmem:[%s8390_s7 + $0x1d8] sm:$0xff]  ;;  %v3957_v59 = vunpack.c.h.bf16 %v5640_v46 }
 0x495   : > { %4044 = vmatprep.subr.mxu0 %v3993_v51  ;;  %4115 = vmatprep.subr.mxu1 %v3995_v11  ;;  %v3958_v51 = vunpack.c.l.bf16 %v5641_v62  ;;  %v5636_v11 = vld [vmem:[%s8390_s7 + $0x1c0] sm:$0xff]  ;;  %v3955_v1 = vunpack.c.h.bf16 %v5639_v57 }
 0x496   : > { %4045 = vmatpush1.msra.mxu0 %v3992_v14  ;;  %4116 = vmatpush1.msra.mxu1 %v3994_v15  ;;  %v5637_v14 = vld [vmem:[%s8390_s7 + $0x1c8] sm:$0xff]  ;;  %v3953_v15 = vunpack.c.h.bf16 %v5638_v7 }
 0x497   : > { %4046 = vmatprep.subr.mxu0 %v3989_v58  ;;  %4117 = vmatprep.subr.mxu1 %v3991_v16  ;;  %v3954_v58 = vunpack.c.l.bf16 %v5639_v57  ;;  %v5634_v16 = vld [vmem:[%s8390_s7 + $0x1b0] sm:$0xff]  ;;  %v3950_v21 = vunpack.c.l.bf16 %v5637_v14 }
 0x498   : > { %4047 = vmatpush1.msra.mxu0 %v3988_v50  ;;  %4118 = vmatpush1.msra.mxu1 %v3990_v17  ;;  %v5635_v50 = vld [vmem:[%s8390_s7 + $0x1b8] sm:$0xff]  ;;  %v3949_v17 = vunpack.c.h.bf16 %v5636_v11  ;;  %v3944_v30 = vunpack.c.l.bf16 %v5634_v16 }
 0x499   : > { %4048 = vmatprep.subr.mxu0 %v3985_v48  ;;  %4119 = vmatprep.subr.mxu1 %v3987_v0  ;;  %v3951_v48 = vunpack.c.h.bf16 %v5637_v14  ;;  %v3948_v0 = vunpack.c.l.bf16 %v5636_v11  ;;  %v3946_v12 = vunpack.c.l.bf16 %v5635_v50 }
 0x49a   : > { %4049 = vmatpush1.msra.mxu0 %v3984_v56  ;;  %5680 = vmatprep.mubr.msk.f32.mxu0 %vm3709_vm8, %v4038_v23  ;;  %v5633_v56 = vld [vmem:[%s8390_s7 + $0x1a8] sm:$0xff] }
 0x49b   : > { %4120 = vmatpush1.msra.mxu1 %v3986_v29  ;;  %5681 = vmatprep.mubr.msk.f32.mxu1 %vm3709_vm8, %v4038_v23  ;;  %v3945_v23 = vunpack.c.h.bf16 %v5634_v16  ;;  %v3947_v29 = vunpack.c.h.bf16 %v5635_v50  ;;  %v3942_v9 = vunpack.c.l.bf16 %v5633_v56 }
 0x49c   : > { %4050 = vmatprep.subr.mxu0 %v3981_v31  ;;  %4121 = vmatprep.subr.mxu1 %v3983_v35  ;;  %v5630_v31 = vld [vmem:[%s8390_s7 + $0x190] sm:$0xff]  ;;  %v5631_v35 = vld [vmem:[%s8390_s7 + $0x198] sm:$0xff] }
 0x49d   : > { %4051 = vmatpush1.msra.mxu0 %v3980_v63  ;;  %4122 = vmatpush1.msra.mxu1 %v3982_v41  ;;  %v3941_v63 = vunpack.c.h.bf16 %v5632_v22  ;;  %v3943_v41 = vunpack.c.h.bf16 %v5633_v56  ;;  %v3936_v39 = vunpack.c.l.bf16 %v5630_v31  ;;  %v3938_v38 = vunpack.c.l.bf16 %v5631_v35 }
 0x49e   : > { %4052 = vmatprep.subr.mxu0 %v3977_v10  ;;  %4123 = vmatprep.subr.mxu1 %v3979_v43  ;;  %v5678_v10 = vld [vmem:[%s8390_s7 + $0x310] sm:$0xff]  ;;  %v5679_v43 = vld [vmem:[%s8390_s7 + $0x318] sm:$0xff] }
 0x49f   : > { %4053 = vmatpush1.msra.mxu0 %v3976_v37  ;;  %4124 = vmatpush1.msra.mxu1 %v3978_v44  ;;  %v3937_v37 = vunpack.c.h.bf16 %v5630_v31  ;;  %v3939_v44 = vunpack.c.h.bf16 %v5631_v35  ;;  %v4032_v13 = vunpack.c.l.bf16 %v5678_v10  ;;  %v4034_v42 = vunpack.c.l.bf16 %v5679_v43 }
 0x4a0   : > { %4054 = vmatprep.subr.mxu0 %v3973_v27  ;;  %4125 = vmatprep.subr.mxu1 %v3975_v25  ;;  %v5676_v27 = vld [vmem:[%s8390_s7 + $0x300] sm:$0xff]  ;;  %v5677_v25 = vld [vmem:[%s8390_s7 + $0x308] sm:$0xff] }
 0x4a1   : > { %4055 = vmatpush1.msra.mxu0 %v3972_v40  ;;  %4126 = vmatpush1.msra.mxu1 %v3974_v28  ;;  %v4033_v40 = vunpack.c.h.bf16 %v5678_v10  ;;  %v4035_v28 = vunpack.c.h.bf16 %v5679_v43  ;;  %v4028_v2 = vunpack.c.l.bf16 %v5676_v27  ;;  %v4030_v54 = vunpack.c.l.bf16 %v5677_v25 }
 0x4a2   : > { %4056 = vmatprep.subr.mxu0 %v3969_v60  ;;  %4127 = vmatprep.subr.mxu1 %v3971_v33  ;;  %v5674_v60 = vld [vmem:[%s8390_s7 + $0x2f0] sm:$0xff]  ;;  %v5675_v33 = vld [vmem:[%s8390_s7 + $0x2f8] sm:$0xff] }
 0x4a3   : > { %4057 = vmatpush1.msra.mxu0 %v3968_v36  ;;  %4128 = vmatpush1.msra.mxu1 %v3970_v52  ;;  %v4029_v36 = vunpack.c.h.bf16 %v5676_v27  ;;  %v4031_v52 = vunpack.c.h.bf16 %v5677_v25  ;;  %v4024_v46 = vunpack.c.l.bf16 %v5674_v60  ;;  %v4026_v62 = vunpack.c.l.bf16 %v5675_v33 }
 0x4a4   : > { %4058 = vmatprep.subr.mxu0 %v3965_v3  ;;  %4129 = vmatprep.subr.mxu1 %v3967_v4  ;;  %v5672_v3 = vld [vmem:[%s8390_s7 + $0x2e0] sm:$0xff]  ;;  %v5673_v4 = vld [vmem:[%s8390_s7 + $0x2e8] sm:$0xff]  ;;  %v4037_v27 = vrot.slane %v7789_v55, 1 }
 0x4a5   : > { %4059 = vmatpush1.msra.mxu0 %v3964_v32  ;;  %4130 = vmatpush1.msra.mxu1 %v3966_v34  ;;  %v4025_v32 = vunpack.c.h.bf16 %v5674_v60  ;;  %v4027_v34 = vunpack.c.h.bf16 %v5675_v33  ;;  %v4020_v7 = vunpack.c.l.bf16 %v5672_v3  ;;  %v4022_v57 = vunpack.c.l.bf16 %v5673_v4 }
 0x4a6   : > { %4060 = vmatprep.subr.mxu0 %v3961_v5  ;;  %4131 = vmatprep.subr.mxu1 %v3963_v24  ;;  %v5670_v5 = vld [vmem:[%s8390_s7 + $0x2d0] sm:$0xff]  ;;  %v5671_v24 = vld [vmem:[%s8390_s7 + $0x2d8] sm:$0xff] }
 0x4a7   : > { %4061 = vmatpush1.msra.mxu0 %v3960_v49  ;;  %4132 = vmatpush1.msra.mxu1 %v3962_v6  ;;  %v4021_v49 = vunpack.c.h.bf16 %v5672_v3  ;;  %v4023_v6 = vunpack.c.h.bf16 %v5673_v4  ;;  %v4016_v11 = vunpack.c.l.bf16 %v5670_v5  ;;  %v4018_v14 = vunpack.c.l.bf16 %v5671_v24 }
 0x4a8   : > { %4062 = vmatprep.subr.mxu0 %v3957_v59  ;;  %4133 = vmatprep.subr.mxu1 %v3959_v45  ;;  %v5668_v59 = vld [vmem:[%s8390_s7 + $0x2c0] sm:$0xff]  ;;  %v5669_v45 = vld [vmem:[%s8390_s7 + $0x2c8] sm:$0xff] }
 0x4a9   : > { %4063 = vmatpush1.msra.mxu0 %v3956_v8  ;;  %4134 = vmatpush1.msra.mxu1 %v3958_v51  ;;  %v4017_v8 = vunpack.c.h.bf16 %v5670_v5  ;;  %v4019_v51 = vunpack.c.h.bf16 %v5671_v24  ;;  %v4012_v16 = vunpack.c.l.bf16 %v5668_v59  ;;  %v4014_v50 = vunpack.c.l.bf16 %v5669_v45 }
 0x4aa   : > { %4064 = vmatprep.subr.mxu0 %v3953_v15  ;;  %4135 = vmatprep.subr.mxu1 %v3955_v1  ;;  %v5666_v15 = vld [vmem:[%s8390_s7 + $0x2b0] sm:$0xff]  ;;  %v5667_v1 = vld [vmem:[%s8390_s7 + $0x2b8] sm:$0xff] }
 0x4ab   : > { %4065 = vmatpush1.msra.mxu0 %v3952_v53  ;;  %4136 = vmatpush1.msra.mxu1 %v3954_v58  ;;  %v4013_v53 = vunpack.c.h.bf16 %v5668_v59  ;;  %v4015_v58 = vunpack.c.h.bf16 %v5669_v45  ;;  %v4008_v22 = vunpack.c.l.bf16 %v5666_v15  ;;  %v4010_v56 = vunpack.c.l.bf16 %v5667_v1 }
 0x4ac   : > { %4066 = vmatprep.subr.mxu0 %v3949_v17  ;;  %4137 = vmatprep.subr.mxu1 %v3951_v48  ;;  %v5664_v17 = vld [vmem:[%s8390_s7 + $0x2a0] sm:$0xff]  ;;  %v5665_v48 = vld [vmem:[%s8390_s7 + $0x2a8] sm:$0xff] }
 0x4ad   : > { %4067 = vmatpush1.msra.mxu0 %v3948_v0  ;;  %4138 = vmatpush1.msra.mxu1 %v3950_v21  ;;  %v4009_v0 = vunpack.c.h.bf16 %v5666_v15  ;;  %v4011_v21 = vunpack.c.h.bf16 %v5667_v1  ;;  %v4004_v31 = vunpack.c.l.bf16 %v5664_v17  ;;  %v4006_v35 = vunpack.c.l.bf16 %v5665_v48 }
 0x4ae   : > { %4068 = vmatprep.subr.mxu0 %v3945_v23  ;;  %4139 = vmatprep.subr.mxu1 %v3947_v29  ;;  %v5662_v23 = vld [vmem:[%s8390_s7 + $0x290] sm:$0xff]  ;;  %v5663_v29 = vld [vmem:[%s8390_s7 + $0x298] sm:$0xff] }
 0x4af   : > { %4069 = vmatpush1.msra.mxu0 %v3944_v30  ;;  %4140 = vmatpush1.msra.mxu1 %v3946_v12  ;;  %v4005_v30 = vunpack.c.h.bf16 %v5664_v17  ;;  %v4007_v12 = vunpack.c.h.bf16 %v5665_v48  ;;  %v4000_v10 = vunpack.c.l.bf16 %v5662_v23  ;;  %v4002_v43 = vunpack.c.l.bf16 %v5663_v29 }
 0x4b0   : > { %4070 = vmatprep.subr.mxu0 %v3941_v63  ;;  %4141 = vmatprep.subr.mxu1 %v3943_v41  ;;  %v4001_v63 = vunpack.c.h.bf16 %v5662_v23  ;;  %v4003_v41 = vunpack.c.h.bf16 %v5663_v29 }
 0x4b1   : > { %4071 = vmatpush1.msra.mxu0 %v3940_v61  ;;  %4142 = vmatpush1.msra.mxu1 %v3942_v9  ;;  %v5712_v61 = vld [vmem:[%s8390_s7 + $0x410] sm:$0xff]  ;;  %v5713_v9 = vld [vmem:[%s8390_s7 + $0x418] sm:$0xff] }
 0x4b2   : > { %4072 = vmatprep.subr.mxu0 %v3937_v37  ;;  %4143 = vmatprep.subr.mxu1 %v3939_v44  ;;  %v4326_v37 = vunpack.c.h.bf16 %v5712_v61  ;;  %v4328_v44 = vunpack.c.h.bf16 %v5713_v9  ;;  %v4325_v25 = vunpack.c.l.bf16 %v5712_v61 }
 0x4b3   : > { %4073 = vmatpush1.msra.mxu0 %v3936_v39  ;;  %4144 = vmatpush1.msra.mxu1 %v3938_v38  ;;  %v5710_v39 = vld [vmem:[%s8390_s7 + $0x400] sm:$0xff]  ;;  %v5711_v38 = vld [vmem:[%s8390_s7 + $0x408] sm:$0xff] }
 0x4b4   : > { %4088 = vmatprep.subr.mxu0 %v4033_v40  ;;  %4159 = vmatprep.subr.mxu1 %v4035_v28  ;;  %v4327_v40 = vunpack.c.l.bf16 %v5713_v9  ;;  %v5708_v28 = vld [vmem:[%s8390_s7 + $0x3f0] sm:$0xff]  ;;  %v4322_v60 = vunpack.c.h.bf16 %v5710_v39  ;;  %v4324_v33 = vunpack.c.h.bf16 %v5711_v38 }
 0x4b5   : > { %4089 = vmatpush2.msra.mxu0 %v4032_v13  ;;  %4160 = vmatpush2.msra.mxu1 %v4034_v42  ;;  %v5709_v13 = vld [vmem:[%s8390_s7 + $0x3f8] sm:$0xff]  ;;  %v4366_v42 = vrot.slane %v7781_v47, 2  ;;  %v4318_v3 = vunpack.c.h.bf16 %v5708_v28 }
 0x4b6   : > { %4090 = vmatprep.subr.mxu0 %v4029_v36  ;;  %4161 = vmatprep.subr.mxu1 %v4031_v52  ;;  %v4321_v36 = vunpack.c.l.bf16 %v5710_v39  ;;  %v4323_v52 = vunpack.c.l.bf16 %v5711_v38  ;;  %v4320_v4 = vunpack.c.h.bf16 %v5709_v13 }
 0x4b7   : > { %4091 = vmatpush2.msra.mxu0 %v4028_v2  ;;  %4162 = vmatpush2.msra.mxu1 %v4030_v54  ;;  %v5706_v2 = vld [vmem:[%s8390_s7 + $0x3e0] sm:$0xff]  ;;  %v5707_v54 = vld [vmem:[%s8390_s7 + $0x3e8] sm:$0xff] }
 0x4b8   : > { %4092 = vmatprep.subr.mxu0 %v4025_v32  ;;  %4163 = vmatprep.subr.mxu1 %v4027_v34  ;;  %v4317_v32 = vunpack.c.l.bf16 %v5708_v28  ;;  %v4319_v34 = vunpack.c.l.bf16 %v5709_v13  ;;  %v4314_v5 = vunpack.c.h.bf16 %v5706_v2  ;;  %v4316_v24 = vunpack.c.h.bf16 %v5707_v54 }
 0x4b9   : > { %4093 = vmatpush2.msra.mxu0 %v4024_v46  ;;  %4164 = vmatpush2.msra.mxu1 %v4026_v62  ;;  %v5704_v46 = vld [vmem:[%s8390_s7 + $0x3d0] sm:$0xff]  ;;  %v5705_v62 = vld [vmem:[%s8390_s7 + $0x3d8] sm:$0xff] }
 0x4ba   : > { %4094 = vmatprep.subr.mxu0 %v4021_v49  ;;  %4165 = vmatprep.subr.mxu1 %v4023_v6  ;;  %v4313_v49 = vunpack.c.l.bf16 %v5706_v2  ;;  %v4315_v6 = vunpack.c.l.bf16 %v5707_v54  ;;  %v4310_v59 = vunpack.c.h.bf16 %v5704_v46  ;;  %v4312_v45 = vunpack.c.h.bf16 %v5705_v62 }
 0x4bb   : > { %4095 = vmatpush2.msra.mxu0 %v4020_v7  ;;  %4166 = vmatpush2.msra.mxu1 %v4022_v57  ;;  %v5702_v7 = vld [vmem:[%s8390_s7 + $0x3c0] sm:$0xff]  ;;  %v5703_v57 = vld [vmem:[%s8390_s7 + $0x3c8] sm:$0xff] }
 0x4bc   : > { %4096 = vmatprep.subr.mxu0 %v4017_v8  ;;  %4167 = vmatprep.subr.mxu1 %v4019_v51  ;;  %v4309_v8 = vunpack.c.l.bf16 %v5704_v46  ;;  %v4311_v51 = vunpack.c.l.bf16 %v5705_v62  ;;  %v4306_v15 = vunpack.c.h.bf16 %v5702_v7  ;;  %v4308_v1 = vunpack.c.h.bf16 %v5703_v57 }
 0x4bd   : > { %4097 = vmatpush2.msra.mxu0 %v4016_v11  ;;  %4168 = vmatpush2.msra.mxu1 %v4018_v14  ;;  %v5700_v11 = vld [vmem:[%s8390_s7 + $0x3b0] sm:$0xff]  ;;  %v5701_v14 = vld [vmem:[%s8390_s7 + $0x3b8] sm:$0xff] }
 0x4be   : > { %4098 = vmatprep.subr.mxu0 %v4013_v53  ;;  %4169 = vmatprep.subr.mxu1 %v4015_v58  ;;  %v4305_v53 = vunpack.c.l.bf16 %v5702_v7  ;;  %v4307_v58 = vunpack.c.l.bf16 %v5703_v57  ;;  %v4302_v17 = vunpack.c.h.bf16 %v5700_v11  ;;  %v4304_v48 = vunpack.c.h.bf16 %v5701_v14 }
 0x4bf   : > { %4099 = vmatpush2.msra.mxu0 %v4012_v16  ;;  %4170 = vmatpush2.msra.mxu1 %v4014_v50  ;;  %v5698_v16 = vld [vmem:[%s8390_s7 + $0x3a0] sm:$0xff]  ;;  %v5699_v50 = vld [vmem:[%s8390_s7 + $0x3a8] sm:$0xff] }
 0x4c0   : > { %4100 = vmatprep.subr.mxu0 %v4009_v0  ;;  %4171 = vmatprep.subr.mxu1 %v4011_v21  ;;  %v4301_v0 = vunpack.c.l.bf16 %v5700_v11  ;;  %v4303_v21 = vunpack.c.l.bf16 %v5701_v14  ;;  %v4298_v23 = vunpack.c.h.bf16 %v5698_v16  ;;  %v4300_v29 = vunpack.c.h.bf16 %v5699_v50 }
 0x4c1   : > { %4101 = vmatpush2.msra.mxu0 %v4008_v22  ;;  %4172 = vmatpush2.msra.mxu1 %v4010_v56  ;;  %v5696_v22 = vld [vmem:[%s8390_s7 + $0x390] sm:$0xff]  ;;  %v5697_v56 = vld [vmem:[%s8390_s7 + $0x398] sm:$0xff] }
 0x4c2   : > { %4102 = vmatprep.subr.mxu0 %v4005_v30  ;;  %4173 = vmatprep.subr.mxu1 %v4007_v12  ;;  %v4297_v30 = vunpack.c.l.bf16 %v5698_v16  ;;  %v4299_v12 = vunpack.c.l.bf16 %v5699_v50  ;;  %v4293_v61 = vunpack.c.l.bf16 %v5696_v22  ;;  %v4295_v9 = vunpack.c.l.bf16 %v5697_v56 }
 0x4c3   : > { %4103 = vmatpush2.msra.mxu0 %v4004_v31  ;;  %4174 = vmatpush2.msra.mxu1 %v4006_v35  ;;  %v5694_v31 = vld [vmem:[%s8390_s7 + $0x380] sm:$0xff]  ;;  %v5695_v35 = vld [vmem:[%s8390_s7 + $0x388] sm:$0xff] }
 0x4c4   : > { %4104 = vmatprep.subr.mxu0 %v4001_v63  ;;  %4175 = vmatprep.subr.mxu1 %v4003_v41  ;;  %v4294_v63 = vunpack.c.h.bf16 %v5696_v22  ;;  %v4296_v41 = vunpack.c.h.bf16 %v5697_v56  ;;  %v4289_v39 = vunpack.c.l.bf16 %v5694_v31  ;;  %v4291_v38 = vunpack.c.l.bf16 %v5695_v35 }
 0x4c5   : > { %4105 = vmatpush2.msra.mxu0 %v4000_v10  ;;  %4176 = vmatpush2.msra.mxu1 %v4002_v43  ;;  %v5692_v10 = vld [vmem:[%s8390_s7 + $0x370] sm:$0xff]  ;;  %v5693_v43 = vld [vmem:[%s8390_s7 + $0x378] sm:$0xff] }
 0x4c6   : > { %4107 = vmatmul.mubr.f32.vlgmr.msra.gmra.mxu0 %v4037_v27  ;;  %4178 = vmatmul.mubr.f32.vlgmr.msra.gmra.mxu1 %v4037_v27  ;;  %v5690_v27 = vld [vmem:[%s8390_s7 + $0x360] sm:$0xff]  ;;  %v4288_v28 = vunpack.c.h.bf16 %v5693_v43  ;;  %v4285_v13 = vunpack.c.l.bf16 %v5692_v10 }
 0x4c7   : > { %4370 = vmatprep.subr.mxu0 %v4326_v37  ;;  %4441 = vmatprep.subr.mxu1 %v4328_v44  ;;  %v4290_v37 = vunpack.c.h.bf16 %v5694_v31  ;;  %v4292_v44 = vunpack.c.h.bf16 %v5695_v35  ;;  %v4281_v2 = vunpack.c.l.bf16 %v5690_v27 }
 0x4c8   : > { %4371 = vmatpush1.msra.mxu0 %v4325_v25  ;;  %5732 = vmatprep.mubr.msk.f32.mxu0 %vm3709_vm8, %v4366_v42  ;;  %v5691_v25 = vld [vmem:[%s8390_s7 + $0x368] sm:$0xff] }
 0x4c9   : > { %4442 = vmatpush1.msra.mxu1 %v4327_v40  ;;  %5733 = vmatprep.mubr.msk.f32.mxu1 %vm3709_vm8, %v4366_v42  ;;  %v4286_v40 = vunpack.c.h.bf16 %v5692_v10  ;;  %v4287_v42 = vunpack.c.l.bf16 %v5693_v43  ;;  %v4283_v54 = vunpack.c.l.bf16 %v5691_v25 }
 0x4ca   : > { %4372 = vmatprep.subr.mxu0 %v4322_v60  ;;  %4443 = vmatprep.subr.mxu1 %v4324_v33  ;;  %v5688_v60 = vld [vmem:[%s8390_s7 + $0x350] sm:$0xff]  ;;  %v5689_v33 = vld [vmem:[%s8390_s7 + $0x358] sm:$0xff] }
 0x4cb   : > { %4373 = vmatpush1.msra.mxu0 %v4321_v36  ;;  %4444 = vmatpush1.msra.mxu1 %v4323_v52  ;;  %v4282_v36 = vunpack.c.h.bf16 %v5690_v27  ;;  %v4284_v52 = vunpack.c.h.bf16 %v5691_v25  ;;  %v4277_v46 = vunpack.c.l.bf16 %v5688_v60  ;;  %v4279_v62 = vunpack.c.l.bf16 %v5689_v33 }
 0x4cc   : > { %4374 = vmatprep.subr.mxu0 %v4318_v3  ;;  %4445 = vmatprep.subr.mxu1 %v4320_v4  ;;  %v5686_v3 = vld [vmem:[%s8390_s7 + $0x340] sm:$0xff]  ;;  %v5687_v4 = vld [vmem:[%s8390_s7 + $0x348] sm:$0xff] }
 0x4cd   : > { %4375 = vmatpush1.msra.mxu0 %v4317_v32  ;;  %4446 = vmatpush1.msra.mxu1 %v4319_v34  ;;  %v4278_v32 = vunpack.c.h.bf16 %v5688_v60  ;;  %v4280_v34 = vunpack.c.h.bf16 %v5689_v33  ;;  %v4273_v7 = vunpack.c.l.bf16 %v5686_v3  ;;  %v4275_v57 = vunpack.c.l.bf16 %v5687_v4 }
 0x4ce   : > { %4376 = vmatprep.subr.mxu0 %v4314_v5  ;;  %4447 = vmatprep.subr.mxu1 %v4316_v24  ;;  %v5684_v5 = vld [vmem:[%s8390_s7 + $0x330] sm:$0xff]  ;;  %v5685_v24 = vld [vmem:[%s8390_s7 + $0x338] sm:$0xff] }
 0x4cf   : > { %4377 = vmatpush1.msra.mxu0 %v4313_v49  ;;  %4448 = vmatpush1.msra.mxu1 %v4315_v6  ;;  %v4274_v49 = vunpack.c.h.bf16 %v5686_v3  ;;  %v4276_v6 = vunpack.c.h.bf16 %v5687_v4  ;;  %v4269_v11 = vunpack.c.l.bf16 %v5684_v5  ;;  %v4271_v14 = vunpack.c.l.bf16 %v5685_v24 }
 0x4d0   : > { %4378 = vmatprep.subr.mxu0 %v4310_v59  ;;  %4449 = vmatprep.subr.mxu1 %v4312_v45  ;;  %v5682_v59 = vld [vmem:[%s8390_s7 + $0x320] sm:$0xff]  ;;  %v5683_v45 = vld [vmem:[%s8390_s7 + $0x328] sm:$0xff] }
 0x4d1   : > { %4379 = vmatpush1.msra.mxu0 %v4309_v8  ;;  %4450 = vmatpush1.msra.mxu1 %v4311_v51  ;;  %v4270_v8 = vunpack.c.h.bf16 %v5684_v5  ;;  %v4272_v51 = vunpack.c.h.bf16 %v5685_v24  ;;  %v4265_v16 = vunpack.c.l.bf16 %v5682_v59  ;;  %v4267_v50 = vunpack.c.l.bf16 %v5683_v45 }
 0x4d2   : > { %4380 = vmatprep.subr.mxu0 %v4306_v15  ;;  %4451 = vmatprep.subr.mxu1 %v4308_v1  ;;  %v5730_v15 = vld [vmem:[%s8390_s7 + $0x4a0] sm:$0xff]  ;;  %v5731_v1 = vld [vmem:[%s8390_s7 + $0x4a8] sm:$0xff] }
 0x4d3   : > { %4381 = vmatpush1.msra.mxu0 %v4305_v53  ;;  %4452 = vmatpush1.msra.mxu1 %v4307_v58  ;;  %v4266_v53 = vunpack.c.h.bf16 %v5682_v59  ;;  %v4268_v58 = vunpack.c.h.bf16 %v5683_v45  ;;  %v4361_v22 = vunpack.c.l.bf16 %v5730_v15  ;;  %v4363_v56 = vunpack.c.l.bf16 %v5731_v1 }
 0x4d4   : > { %4382 = vmatprep.subr.mxu0 %v4302_v17  ;;  %4453 = vmatprep.subr.mxu1 %v4304_v48  ;;  %v5728_v17 = vld [vmem:[%s8390_s7 + $0x490] sm:$0xff]  ;;  %v5729_v48 = vld [vmem:[%s8390_s7 + $0x498] sm:$0xff] }
 0x4d5   : > { %4383 = vmatpush1.msra.mxu0 %v4301_v0  ;;  %4454 = vmatpush1.msra.mxu1 %v4303_v21  ;;  %v4362_v0 = vunpack.c.h.bf16 %v5730_v15  ;;  %v4364_v21 = vunpack.c.h.bf16 %v5731_v1  ;;  %v4357_v31 = vunpack.c.l.bf16 %v5728_v17  ;;  %v4359_v35 = vunpack.c.l.bf16 %v5729_v48 }
 0x4d6   : > { %4384 = vmatprep.subr.mxu0 %v4298_v23  ;;  %4455 = vmatprep.subr.mxu1 %v4300_v29  ;;  %v5726_v23 = vld [vmem:[%s8390_s7 + $0x480] sm:$0xff]  ;;  %v5727_v29 = vld [vmem:[%s8390_s7 + $0x488] sm:$0xff] }
 0x4d7   : > { %4385 = vmatpush1.msra.mxu0 %v4297_v30  ;;  %4456 = vmatpush1.msra.mxu1 %v4299_v12  ;;  %v4358_v30 = vunpack.c.h.bf16 %v5728_v17  ;;  %v4360_v12 = vunpack.c.h.bf16 %v5729_v48  ;;  %v4353_v10 = vunpack.c.l.bf16 %v5726_v23  ;;  %v4355_v43 = vunpack.c.l.bf16 %v5727_v29 }
 0x4d8   : > { %4386 = vmatprep.subr.mxu0 %v4294_v63  ;;  %4457 = vmatprep.subr.mxu1 %v4296_v41  ;;  %v5724_v63 = vld [vmem:[%s8390_s7 + $0x470] sm:$0xff]  ;;  %v5725_v41 = vld [vmem:[%s8390_s7 + $0x478] sm:$0xff]  ;;  %v4365_v17 = vrot.slane %v7789_v55, 2 }
 0x4d9   : > { %4387 = vmatpush1.msra.mxu0 %v4293_v61  ;;  %4458 = vmatpush1.msra.mxu1 %v4295_v9  ;;  %v4354_v61 = vunpack.c.h.bf16 %v5726_v23  ;;  %v4356_v9 = vunpack.c.h.bf16 %v5727_v29  ;;  %v4349_v27 = vunpack.c.l.bf16 %v5724_v63  ;;  %v4351_v25 = vunpack.c.l.bf16 %v5725_v41 }
 0x4da   : > { %4388 = vmatprep.subr.mxu0 %v4290_v37  ;;  %4459 = vmatprep.subr.mxu1 %v4292_v44  ;;  %v5722_v37 = vld [vmem:[%s8390_s7 + $0x460] sm:$0xff]  ;;  %v5723_v44 = vld [vmem:[%s8390_s7 + $0x468] sm:$0xff] }
 0x4db   : > { %4389 = vmatpush1.msra.mxu0 %v4289_v39  ;;  %4460 = vmatpush1.msra.mxu1 %v4291_v38  ;;  %v4350_v39 = vunpack.c.h.bf16 %v5724_v63  ;;  %v4352_v38 = vunpack.c.h.bf16 %v5725_v41  ;;  %v4345_v60 = vunpack.c.l.bf16 %v5722_v37  ;;  %v4347_v33 = vunpack.c.l.bf16 %v5723_v44 }
 0x4dc   : > { %4390 = vmatprep.subr.mxu0 %v4286_v40  ;;  %4461 = vmatprep.subr.mxu1 %v4288_v28  ;;  %v5720_v40 = vld [vmem:[%s8390_s7 + $0x450] sm:$0xff]  ;;  %v5721_v28 = vld [vmem:[%s8390_s7 + $0x458] sm:$0xff] }
 0x4dd   : > { %4391 = vmatpush1.msra.mxu0 %v4285_v13  ;;  %4462 = vmatpush1.msra.mxu1 %v4287_v42  ;;  %v4346_v13 = vunpack.c.h.bf16 %v5722_v37  ;;  %v4348_v42 = vunpack.c.h.bf16 %v5723_v44  ;;  %v4341_v3 = vunpack.c.l.bf16 %v5720_v40  ;;  %v4343_v4 = vunpack.c.l.bf16 %v5721_v28 }
 0x4de   : > { %4392 = vmatprep.subr.mxu0 %v4282_v36  ;;  %4463 = vmatprep.subr.mxu1 %v4284_v52  ;;  %v5718_v36 = vld [vmem:[%s8390_s7 + $0x440] sm:$0xff]  ;;  %v5719_v52 = vld [vmem:[%s8390_s7 + $0x448] sm:$0xff] }
 0x4df   : > { %4393 = vmatpush1.msra.mxu0 %v4281_v2  ;;  %4464 = vmatpush1.msra.mxu1 %v4283_v54  ;;  %v4342_v2 = vunpack.c.h.bf16 %v5720_v40  ;;  %v4344_v54 = vunpack.c.h.bf16 %v5721_v28  ;;  %v4337_v5 = vunpack.c.l.bf16 %v5718_v36  ;;  %v4339_v24 = vunpack.c.l.bf16 %v5719_v52 }
 0x4e0   : > { %4394 = vmatprep.subr.mxu0 %v4278_v32  ;;  %4465 = vmatprep.subr.mxu1 %v4280_v34  ;;  %v5716_v32 = vld [vmem:[%s8390_s7 + $0x430] sm:$0xff]  ;;  %v5717_v34 = vld [vmem:[%s8390_s7 + $0x438] sm:$0xff] }
 0x4e1   : > { %4395 = vmatpush1.msra.mxu0 %v4277_v46  ;;  %4466 = vmatpush1.msra.mxu1 %v4279_v62  ;;  %v4338_v46 = vunpack.c.h.bf16 %v5718_v36  ;;  %v4340_v62 = vunpack.c.h.bf16 %v5719_v52  ;;  %v4333_v59 = vunpack.c.l.bf16 %v5716_v32  ;;  %v4335_v45 = vunpack.c.l.bf16 %v5717_v34 }
 0x4e2   : > { %4396 = vmatprep.subr.mxu0 %v4274_v49  ;;  %4467 = vmatprep.subr.mxu1 %v4276_v6  ;;  %v5714_v49 = vld [vmem:[%s8390_s7 + $0x420] sm:$0xff]  ;;  %v5715_v6 = vld [vmem:[%s8390_s7 + $0x428] sm:$0xff] }
 0x4e3   : > { %4397 = vmatpush1.msra.mxu0 %v4273_v7  ;;  %4468 = vmatpush1.msra.mxu1 %v4275_v57  ;;  %v4334_v7 = vunpack.c.h.bf16 %v5716_v32  ;;  %v4336_v57 = vunpack.c.h.bf16 %v5717_v34  ;;  %v4329_v15 = vunpack.c.l.bf16 %v5714_v49  ;;  %v4331_v1 = vunpack.c.l.bf16 %v5715_v6 }
 0x4e4   : > { %4398 = vmatprep.subr.mxu0 %v4270_v8  ;;  %4469 = vmatprep.subr.mxu1 %v4272_v51  ;;  %v4330_v8 = vunpack.c.h.bf16 %v5714_v49  ;;  %v4332_v51 = vunpack.c.h.bf16 %v5715_v6 }
 0x4e5   : > { %4399 = vmatpush1.msra.mxu0 %v4269_v11  ;;  %4470 = vmatpush1.msra.mxu1 %v4271_v14  ;;  %v5764_v11 = vld [vmem:[%s8390_s7 + $0x5a0] sm:$0xff]  ;;  %v5765_v14 = vld [vmem:[%s8390_s7 + $0x5a8] sm:$0xff] }
 0x4e6   : > { %4400 = vmatprep.subr.mxu0 %v4266_v53  ;;  %4471 = vmatprep.subr.mxu1 %v4268_v58  ;;  %v4654_v53 = vunpack.c.h.bf16 %v5764_v11  ;;  %v4656_v58 = vunpack.c.h.bf16 %v5765_v14  ;;  %v4653_v48 = vunpack.c.l.bf16 %v5764_v11 }
 0x4e7   : > { %4401 = vmatpush1.msra.mxu0 %v4265_v16  ;;  %4472 = vmatpush1.msra.mxu1 %v4267_v50  ;;  %v5762_v16 = vld [vmem:[%s8390_s7 + $0x590] sm:$0xff]  ;;  %v5763_v50 = vld [vmem:[%s8390_s7 + $0x598] sm:$0xff] }
 0x4e8   : > { %4416 = vmatprep.subr.mxu0 %v4362_v0  ;;  %4487 = vmatprep.subr.mxu1 %v4364_v21  ;;  %v4655_v0 = vunpack.c.l.bf16 %v5765_v14  ;;  %v5760_v21 = vld [vmem:[%s8390_s7 + $0x580] sm:$0xff]  ;;  %v4650_v23 = vunpack.c.h.bf16 %v5762_v16  ;;  %v4652_v29 = vunpack.c.h.bf16 %v5763_v50 }
 0x4e9   : > { %4417 = vmatpush2.msra.mxu0 %v4361_v22  ;;  %4488 = vmatpush2.msra.mxu1 %v4363_v56  ;;  %v5761_v22 = vld [vmem:[%s8390_s7 + $0x588] sm:$0xff]  ;;  %v4694_v56 = vrot.slane %v7781_v47, 3  ;;  %v4646_v63 = vunpack.c.h.bf16 %v5760_v21  ;;  %v4645_v47 = vunpack.c.l.bf16 %v5760_v21  ;;  %v5744_v14 = vld [vmem:[%s8390_s7 + $0x500] sm:$0xff] }
 0x4ea   : > { %4418 = vmatprep.subr.mxu0 %v4358_v30  ;;  %4489 = vmatprep.subr.mxu1 %v4360_v12  ;;  %v4649_v30 = vunpack.c.l.bf16 %v5762_v16  ;;  %v4651_v12 = vunpack.c.l.bf16 %v5763_v50  ;;  %v4648_v41 = vunpack.c.h.bf16 %v5761_v22  ;;  %v5742_v50 = vld [vmem:[%s8390_s7 + $0x4f0] sm:$0xff]  ;;  %v4613_v21 = vunpack.c.l.bf16 %v5744_v14 }
 0x4eb   : > { %4419 = vmatpush2.msra.mxu0 %v4357_v31  ;;  %4490 = vmatpush2.msra.mxu1 %v4359_v35  ;;  %v5758_v31 = vld [vmem:[%s8390_s7 + $0x570] sm:$0xff]  ;;  %v5759_v35 = vld [vmem:[%s8390_s7 + $0x578] sm:$0xff] }
 0x4ec   : > { %4420 = vmatprep.subr.mxu0 %v4354_v61  ;;  %4491 = vmatprep.subr.mxu1 %v4356_v9  ;;  %v4647_v61 = vunpack.c.l.bf16 %v5761_v22  ;;  %v5756_v9 = vld [vmem:[%s8390_s7 + $0x560] sm:$0xff]  ;;  %v4644_v37 = vunpack.c.h.bf16 %v5759_v35  ;;  %v4641_v44 = vunpack.c.l.bf16 %v5758_v31 }
 0x4ed   : > { %4421 = vmatpush2.msra.mxu0 %v4353_v10  ;;  %4492 = vmatpush2.msra.mxu1 %v4355_v43  ;;  %v5757_v10 = vld [vmem:[%s8390_s7 + $0x568] sm:$0xff]  ;;  %v4642_v43 = vunpack.c.h.bf16 %v5758_v31  ;;  %v4637_v28 = vunpack.c.l.bf16 %v5756_v9 }
 0x4ee   : > { %4422 = vmatprep.subr.mxu0 %v4350_v39  ;;  %4493 = vmatprep.subr.mxu1 %v4352_v38  ;;  %v4643_v39 = vunpack.c.l.bf16 %v5759_v35  ;;  %v5754_v38 = vld [vmem:[%s8390_s7 + $0x550] sm:$0xff]  ;;  %v4640_v40 = vunpack.c.h.bf16 %v5757_v10 }
 0x4ef   : > { %4423 = vmatpush2.msra.mxu0 %v4349_v27  ;;  %4494 = vmatpush2.msra.mxu1 %v4351_v25  ;;  %v5755_v27 = vld [vmem:[%s8390_s7 + $0x558] sm:$0xff]  ;;  %v4638_v25 = vunpack.c.h.bf16 %v5756_v9  ;;  %v4633_v52 = vunpack.c.l.bf16 %v5754_v38  ;;  %v5738_v35 = vld [vmem:[%s8390_s7 + $0x4d0] sm:$0xff] }
 0x4f0   : > { %4424 = vmatprep.subr.mxu0 %v4346_v13  ;;  %4495 = vmatprep.subr.mxu1 %v4348_v42  ;;  %v4639_v13 = vunpack.c.l.bf16 %v5757_v10  ;;  %v5752_v42 = vld [vmem:[%s8390_s7 + $0x540] sm:$0xff]  ;;  %v4636_v36 = vunpack.c.h.bf16 %v5755_v27 }
 0x4f1   : > { %4425 = vmatpush2.msra.mxu0 %v4345_v60  ;;  %4496 = vmatpush2.msra.mxu1 %v4347_v33  ;;  %v5753_v60 = vld [vmem:[%s8390_s7 + $0x548] sm:$0xff]  ;;  %v4634_v33 = vunpack.c.h.bf16 %v5754_v38  ;;  %v4629_v34 = vunpack.c.l.bf16 %v5752_v42  ;;  %v5736_v10 = vld [vmem:[%s8390_s7 + $0x4c0] sm:$0xff] }
 0x4f2   : > { %4426 = vmatprep.subr.mxu0 %v4342_v2  ;;  %4497 = vmatprep.subr.mxu1 %v4344_v54  ;;  %v4635_v2 = vunpack.c.l.bf16 %v5755_v27  ;;  %v5750_v54 = vld [vmem:[%s8390_s7 + $0x530] sm:$0xff]  ;;  %v4632_v32 = vunpack.c.h.bf16 %v5753_v60 }
 0x4f3   : > { %4427 = vmatpush2.msra.mxu0 %v4341_v3  ;;  %4498 = vmatpush2.msra.mxu1 %v4343_v4  ;;  %v5751_v3 = vld [vmem:[%s8390_s7 + $0x538] sm:$0xff]  ;;  %v4630_v4 = vunpack.c.h.bf16 %v5752_v42  ;;  %v4625_v6 = vunpack.c.l.bf16 %v5750_v54  ;;  %v5734_v27 = vld [vmem:[%s8390_s7 + $0x4b0] sm:$0xff] }
 0x4f4   : > { %4428 = vmatprep.subr.mxu0 %v4338_v46  ;;  %4499 = vmatprep.subr.mxu1 %v4340_v62  ;;  %v4631_v46 = vunpack.c.l.bf16 %v5753_v60  ;;  %v5748_v62 = vld [vmem:[%s8390_s7 + $0x520] sm:$0xff]  ;;  %v4628_v49 = vunpack.c.h.bf16 %v5751_v3  ;;  %v5782_v60 = vld [vmem:[%s8390_s7 + $0x630] sm:$0xff] }
 0x4f5   : > { %4429 = vmatpush2.msra.mxu0 %v4337_v5  ;;  %4500 = vmatpush2.msra.mxu1 %v4339_v24  ;;  %v5749_v5 = vld [vmem:[%s8390_s7 + $0x528] sm:$0xff]  ;;  %v4626_v24 = vunpack.c.h.bf16 %v5750_v54 }
 0x4f6   : > { %4430 = vmatprep.subr.mxu0 %v4334_v7  ;;  %4501 = vmatprep.subr.mxu1 %v4336_v57  ;;  %v4627_v7 = vunpack.c.l.bf16 %v5751_v3  ;;  %v5746_v57 = vld [vmem:[%s8390_s7 + $0x510] sm:$0xff]  ;;  %v4623_v11 = vunpack.c.l.bf16 %v5749_v5  ;;  %v5780_v3 = vld [vmem:[%s8390_s7 + $0x620] sm:$0xff] }
 0x4f7   : > { %4431 = vmatpush2.msra.mxu0 %v4333_v59  ;;  %4502 = vmatpush2.msra.mxu1 %v4335_v45  ;;  %v5747_v59 = vld [vmem:[%s8390_s7 + $0x518] sm:$0xff]  ;;  %v4622_v45 = vunpack.c.h.bf16 %v5748_v62 }
 0x4f8   : > { %4432 = vmatprep.subr.mxu0 %v4330_v8  ;;  %4503 = vmatprep.subr.mxu1 %v4332_v51  ;;  %v4624_v8 = vunpack.c.h.bf16 %v5749_v5  ;;  %v4621_v51 = vunpack.c.l.bf16 %v5748_v62  ;;  %v4619_v16 = vunpack.c.l.bf16 %v5747_v59  ;;  %v5778_v5 = vld [vmem:[%s8390_s7 + $0x610] sm:$0xff] }
 0x4f9   : > { %4433 = vmatpush2.msra.mxu0 %v4329_v15  ;;  %4504 = vmatpush2.msra.mxu1 %v4331_v1  ;;  %v5745_v15 = vld [vmem:[%s8390_s7 + $0x508] sm:$0xff]  ;;  %v4618_v1 = vunpack.c.h.bf16 %v5746_v57 }
 0x4fa   : > { %4435 = vmatmul.mubr.f32.vlgmr.msra.gmra.mxu0 %v4365_v17  ;;  %4506 = vmatmul.mubr.f32.vlgmr.msra.gmra.mxu1 %v4365_v17  ;;  %v5743_v17 = vld [vmem:[%s8390_s7 + $0x4f8] sm:$0xff]  ;;  %v4615_v22 = vunpack.c.l.bf16 %v5745_v15 }
 0x4fb   : > { %4698 = vmatprep.subr.mxu0 %v4654_v53  ;;  %4769 = vmatprep.subr.mxu1 %v4656_v58  ;;  %v4620_v53 = vunpack.c.h.bf16 %v5747_v59  ;;  %v4617_v58 = vunpack.c.l.bf16 %v5746_v57  ;;  %v4611_v31 = vunpack.c.l.bf16 %v5743_v17  ;;  %v5776_v59 = vld [vmem:[%s8390_s7 + $0x600] sm:$0xff] }
 0x4fc   : > { %4699 = vmatpush1.msra.mxu0 %v4653_v48  ;;  %5784 = vmatprep.mubr.msk.f32.mxu0 %vm3709_vm8, %v4694_v56  ;;  %v4614_v48 = vunpack.c.h.bf16 %v5744_v14 }
 0x4fd   : > { %4770 = vmatpush1.msra.mxu1 %v4655_v0  ;;  %5785 = vmatprep.mubr.msk.f32.mxu1 %vm3709_vm8, %v4694_v56  ;;  %v4616_v0 = vunpack.c.h.bf16 %v5745_v15  ;;  %v5740_v56 = vld [vmem:[%s8390_s7 + $0x4e0] sm:$0xff]  ;;  %v5774_v15 = vld [vmem:[%s8390_s7 + $0x5f0] sm:$0xff] }
 0x4fe   : > { %4700 = vmatprep.subr.mxu0 %v4650_v23  ;;  %4771 = vmatprep.subr.mxu1 %v4652_v29  ;;  %v5741_v23 = vld [vmem:[%s8390_s7 + $0x4e8] sm:$0xff]  ;;  %v4610_v29 = vunpack.c.h.bf16 %v5742_v50 }
 0x4ff   : > { %4701 = vmatpush1.msra.mxu0 %v4649_v30  ;;  %4772 = vmatpush1.msra.mxu1 %v4651_v12  ;;  %v4612_v30 = vunpack.c.h.bf16 %v5743_v17  ;;  %v4609_v12 = vunpack.c.l.bf16 %v5742_v50  ;;  %v4607_v9 = vunpack.c.l.bf16 %v5741_v23  ;;  %v5772_v17 = vld [vmem:[%s8390_s7 + $0x5e0] sm:$0xff] }
 0x500   : > { %4702 = vmatprep.subr.mxu0 %v4646_v63  ;;  %4773 = vmatprep.subr.mxu1 %v4648_v41  ;;  %v5739_v63 = vld [vmem:[%s8390_s7 + $0x4d8] sm:$0xff]  ;;  %v4606_v41 = vunpack.c.h.bf16 %v5740_v56 }
 0x501   : > { %4703 = vmatpush1.msra.mxu0 %v4645_v47  ;;  %4774 = vmatpush1.msra.mxu1 %v4647_v61  ;;  %v4608_v47 = vunpack.c.h.bf16 %v5741_v23  ;;  %v4605_v61 = vunpack.c.l.bf16 %v5740_v56  ;;  %v4603_v38 = vunpack.c.l.bf16 %v5739_v63  ;;  %v5770_v23 = vld [vmem:[%s8390_s7 + $0x5d0] sm:$0xff] }
 0x502   : > { %4704 = vmatprep.subr.mxu0 %v4642_v43  ;;  %4775 = vmatprep.subr.mxu1 %v4644_v37  ;;  %v5737_v43 = vld [vmem:[%s8390_s7 + $0x4c8] sm:$0xff]  ;;  %v4602_v37 = vunpack.c.h.bf16 %v5738_v35 }
 0x503   : > { %4705 = vmatpush1.msra.mxu0 %v4641_v44  ;;  %4776 = vmatpush1.msra.mxu1 %v4643_v39  ;;  %v4604_v44 = vunpack.c.h.bf16 %v5739_v63  ;;  %v4601_v39 = vunpack.c.l.bf16 %v5738_v35  ;;  %v4599_v42 = vunpack.c.l.bf16 %v5737_v43  ;;  %v5768_v63 = vld [vmem:[%s8390_s7 + $0x5c0] sm:$0xff] }
 0x504   : > { %4706 = vmatprep.subr.mxu0 %v4638_v25  ;;  %4777 = vmatprep.subr.mxu1 %v4640_v40  ;;  %v5735_v25 = vld [vmem:[%s8390_s7 + $0x4b8] sm:$0xff]  ;;  %v4598_v40 = vunpack.c.h.bf16 %v5736_v10 }
 0x505   : > { %4707 = vmatpush1.msra.mxu0 %v4637_v28  ;;  %4778 = vmatpush1.msra.mxu1 %v4639_v13  ;;  %v4600_v28 = vunpack.c.h.bf16 %v5737_v43  ;;  %v4597_v13 = vunpack.c.l.bf16 %v5736_v10  ;;  %v4595_v54 = vunpack.c.l.bf16 %v5735_v25  ;;  %v5766_v43 = vld [vmem:[%s8390_s7 + $0x5b0] sm:$0xff] }
 0x506   : > { %4708 = vmatprep.subr.mxu0 %v4634_v33  ;;  %4779 = vmatprep.subr.mxu1 %v4636_v36  ;;  %v5783_v33 = vld [vmem:[%s8390_s7 + $0x638] sm:$0xff]  ;;  %v4594_v36 = vunpack.c.h.bf16 %v5734_v27 }
 0x507   : > { %4709 = vmatpush1.msra.mxu0 %v4633_v52  ;;  %4780 = vmatpush1.msra.mxu1 %v4635_v2  ;;  %v4596_v52 = vunpack.c.h.bf16 %v5735_v25  ;;  %v4593_v2 = vunpack.c.l.bf16 %v5734_v27  ;;  %v4691_v62 = vunpack.c.l.bf16 %v5783_v33  ;;  %v4658_v25 = vunpack.c.h.bf16 %v5766_v43 }
 0x508   : > { %4710 = vmatprep.subr.mxu0 %v4630_v4  ;;  %4781 = vmatprep.subr.mxu1 %v4632_v32  ;;  %v5781_v4 = vld [vmem:[%s8390_s7 + $0x628] sm:$0xff]  ;;  %v4690_v32 = vunpack.c.h.bf16 %v5782_v60 }
 0x509   : > { %4711 = vmatpush1.msra.mxu0 %v4629_v34  ;;  %4782 = vmatpush1.msra.mxu1 %v4631_v46  ;;  %v4692_v34 = vunpack.c.h.bf16 %v5783_v33  ;;  %v4689_v46 = vunpack.c.l.bf16 %v5782_v60  ;;  %v4687_v57 = vunpack.c.l.bf16 %v5781_v4  ;;  %v5932_v60 = vld [vmem:[%s8392_s9 + $0x78] sm:$0xff]  }
 0x50a   : > { %4712 = vmatprep.subr.mxu0 %v4626_v24  ;;  %4783 = vmatprep.subr.mxu1 %v4628_v49  ;;  %v5779_v24 = vld [vmem:[%s8390_s7 + $0x618] sm:$0xff]  ;;  %v4686_v49 = vunpack.c.h.bf16 %v5780_v3 }
 0x50b   : > { %4713 = vmatpush1.msra.mxu0 %v4625_v6  ;;  %4784 = vmatpush1.msra.mxu1 %v4627_v7  ;;  %v4688_v6 = vunpack.c.h.bf16 %v5781_v4  ;;  %v4685_v7 = vunpack.c.l.bf16 %v5780_v3  ;;  %v4683_v14 = vunpack.c.l.bf16 %v5779_v24  ;;  %v5948_v33 = vld [vmem:[%s8392_s9 + $0xf8] sm:$0xff]   ;;  %v5852_v3 = vunpack.c.l.bf16 %v5932_v60  ;;  %v5931_v4 = vld [vmem:[%s8392_s9 + $0x70] sm:$0xff]  }
 0x50c   : > { %4714 = vmatprep.subr.mxu0 %v4622_v45  ;;  %4785 = vmatprep.subr.mxu1 %v4624_v8  ;;  %v5777_v45 = vld [vmem:[%s8390_s7 + $0x608] sm:$0xff]  ;;  %v4682_v8 = vunpack.c.h.bf16 %v5778_v5 }
 0x50d   : > { %4715 = vmatpush1.msra.mxu0 %v4621_v51  ;;  %4786 = vmatpush1.msra.mxu1 %v4623_v11  ;;  %v4684_v51 = vunpack.c.h.bf16 %v5779_v24  ;;  %v4681_v11 = vunpack.c.l.bf16 %v5778_v5  ;;  %v4679_v50 = vunpack.c.l.bf16 %v5777_v45  ;;  %v5923_v24 = vld [vmem:[%s8392_s9 + $0x30] sm:$0xff]  }
 0x50e   : > { %4716 = vmatprep.subr.mxu0 %v4618_v1  ;;  %4787 = vmatprep.subr.mxu1 %v4620_v53  ;;  %v5775_v1 = vld [vmem:[%s8390_s7 + $0x5f8] sm:$0xff]  ;;  %v4678_v53 = vunpack.c.h.bf16 %v5776_v59 }
 0x50f   : > { %4717 = vmatpush1.msra.mxu0 %v4617_v58  ;;  %4788 = vmatpush1.msra.mxu1 %v4619_v16  ;;  %v4680_v58 = vunpack.c.h.bf16 %v5777_v45  ;;  %v4677_v16 = vunpack.c.l.bf16 %v5776_v59  ;;  %v4675_v56 = vunpack.c.l.bf16 %v5775_v1  ;;  %v5930_v45 = vld [vmem:[%s8392_s9 + $0x68] sm:$0xff]  }
 0x510   : > { %4718 = vmatprep.subr.mxu0 %v4614_v48  ;;  %4789 = vmatprep.subr.mxu1 %v4616_v0  ;;  %v5773_v48 = vld [vmem:[%s8390_s7 + $0x5e8] sm:$0xff]  ;;  %v4674_v0 = vunpack.c.h.bf16 %v5774_v15 }
 0x511   : > { %4719 = vmatpush1.msra.mxu0 %v4613_v21  ;;  %4790 = vmatpush1.msra.mxu1 %v4615_v22  ;;  %v4676_v21 = vunpack.c.h.bf16 %v5775_v1  ;;  %v4673_v22 = vunpack.c.l.bf16 %v5774_v15  ;;  %v4671_v35 = vunpack.c.l.bf16 %v5773_v48  ;;  %v5938_v15 = vld [vmem:[%s8392_s9 + $0xa8] sm:$0xff]   ;;  %v5816_v1 = vunpack.c.l.bf16 %v5923_v24 }
 0x512   : > { %4720 = vmatprep.subr.mxu0 %v4610_v29  ;;  %4791 = vmatprep.subr.mxu1 %v4612_v30  ;;  %v5771_v29 = vld [vmem:[%s8390_s7 + $0x5d8] sm:$0xff]  ;;  %v4670_v30 = vunpack.c.h.bf16 %v5772_v17 }
 0x513   : > { %4721 = vmatpush1.msra.mxu0 %v4609_v12  ;;  %4792 = vmatpush1.msra.mxu1 %v4611_v31  ;;  %v4672_v12 = vunpack.c.h.bf16 %v5773_v48  ;;  %v4669_v31 = vunpack.c.l.bf16 %v5772_v17  ;;  %v4667_v10 = vunpack.c.l.bf16 %v5771_v29  ;;  %v5877_v17 = vunpack.c.h.bf16 %v5938_v15  ;;  %v5929_v48 = vld [vmem:[%s8392_s9 + $0x60] sm:$0xff]  }
 0x514   : > { %4722 = vmatprep.subr.mxu0 %v4606_v41  ;;  %4793 = vmatprep.subr.mxu1 %v4608_v47  ;;  %v5769_v41 = vld [vmem:[%s8390_s7 + $0x5c8] sm:$0xff]  ;;  %v4666_v47 = vunpack.c.h.bf16 %v5770_v23 }
 0x515   : > { %4723 = vmatpush1.msra.mxu0 %v4605_v61  ;;  %4794 = vmatpush1.msra.mxu1 %v4607_v9  ;;  %v4668_v61 = vunpack.c.h.bf16 %v5771_v29  ;;  %v4665_v9 = vunpack.c.l.bf16 %v5770_v23  ;;  %v4663_v27 = vunpack.c.l.bf16 %v5769_v41  ;;  %v5937_v23 = vld [vmem:[%s8392_s9 + $0xa0] sm:$0xff]  }
 0x516   : > { %4724 = vmatprep.subr.mxu0 %v4602_v37  ;;  %4795 = vmatprep.subr.mxu1 %v4604_v44  ;;  %v5767_v37 = vld [vmem:[%s8390_s7 + $0x5b8] sm:$0xff]  ;;  %v4662_v44 = vunpack.c.h.bf16 %v5768_v63 }
 0x517   : > { %4725 = vmatpush1.msra.mxu0 %v4601_v39  ;;  %4796 = vmatpush1.msra.mxu1 %v4603_v38  ;;  %v4664_v39 = vunpack.c.h.bf16 %v5769_v41  ;;  %v4661_v38 = vunpack.c.l.bf16 %v5768_v63  ;;  %v5873_v63 = vunpack.c.h.bf16 %v5937_v23  ;;  %v5840_v41 = vunpack.c.l.bf16 %v5929_v48 }
 0x518   : > { %4726 = vmatprep.subr.mxu0 %v4598_v40  ;;  %4797 = vmatprep.subr.mxu1 %v4600_v28  ;;  %v4660_v40 = vunpack.c.h.bf16 %v5767_v37  ;;  %v4657_v28 = vunpack.c.l.bf16 %v5766_v43  ;;  %v5944_v43 = vld [vmem:[%s8392_s9 + $0xd8] sm:$0xff]  }
 0x519   : > { %4727 = vmatpush1.msra.mxu0 %v4597_v13  ;;  %4798 = vmatpush1.msra.mxu1 %v4599_v42  ;;  %v4659_v13 = vunpack.c.l.bf16 %v5767_v37  ;;  %v4693_v42 = vrot.slane %v7789_v55, 3  ;;  %v5940_v55 = vld [vmem:[%s8392_s9 + $0xb8] sm:$0xff]  }
 0x51a   : > { %4728 = vmatprep.subr.mxu0 %v4594_v36  ;;  %4799 = vmatprep.subr.mxu1 %v4596_v52  ;;  %v5924_v36 = vld [vmem:[%s8392_s9 + $0x38] sm:$0xff]   ;;  %v5853_v52 = vunpack.c.h.bf16 %v5932_v60  ;;  %v5884_v5 = vunpack.c.l.bf16 %v5940_v55  ;;  %v5927_v60 = vld [vmem:[%s8392_s9 + $0x50] sm:$0xff]  }
 0x51b   : > { %4729 = vmatpush1.msra.mxu0 %v4593_v2  ;;  %4800 = vmatpush1.msra.mxu1 %v4595_v54  ;;  %v5917_v2 = vunpack.c.h.bf16 %v5948_v33  ;;  %v5821_v54 = vunpack.c.h.bf16 %v5924_v36 }
 0x51c   : > { %4744 = vmatprep.subr.mxu0 %v4690_v32  ;;  %4815 = vmatprep.subr.mxu1 %v4692_v34  ;;  %v5947_v32 = vld [vmem:[%s8392_s9 + $0xf0] sm:$0xff]   ;;  %v5885_v34 = vunpack.c.h.bf16 %v5940_v55 }
 0x51d   : > { %4745 = vmatpush2.msra.mxu0 %v4689_v46  ;;  %4816 = vmatpush2.msra.mxu1 %v4691_v62  ;;  %v5916_v46 = vunpack.c.l.bf16 %v5948_v33  ;;  %v5820_v62 = vunpack.c.l.bf16 %v5924_v36  ;;  %v5943_v33 = vld [vmem:[%s8392_s9 + $0xd0] sm:$0xff]   ;;  %v5833_v36 = vunpack.c.h.bf16 %v5927_v60 }
 0x51e   : > { %4746 = vmatprep.subr.mxu0 %v4686_v49  ;;  %4817 = vmatprep.subr.mxu1 %v4688_v6  ;;  %v5939_v49 = vld [vmem:[%s8392_s9 + $0xb0] sm:$0xff]   ;;  %v5849_v6 = vunpack.c.h.bf16 %v5931_v4 }
 0x51f   : > { %4747 = vmatpush2.msra.mxu0 %v4685_v7  ;;  %4818 = vmatpush2.msra.mxu1 %v4687_v57  ;;  %v5913_v7 = vunpack.c.h.bf16 %v5947_v32  ;;  %v5817_v57 = vunpack.c.h.bf16 %v5923_v24  ;;  %v5881_v59 = vunpack.c.h.bf16 %v5939_v49 }
 0x520   : > { %4748 = vmatprep.subr.mxu0 %v4682_v8  ;;  %4819 = vmatprep.subr.mxu1 %v4684_v51  ;;  %v5946_v8 = vld [vmem:[%s8392_s9 + $0xe8] sm:$0xff]   ;;  %v5848_v51 = vunpack.c.l.bf16 %v5931_v4  ;;  %v5832_v4 = vunpack.c.l.bf16 %v5927_v60 }
 0x521   : > { %4749 = vmatpush2.msra.mxu0 %v4681_v11  ;;  %4820 = vmatpush2.msra.mxu1 %v4683_v14  ;;  %v5912_v11 = vunpack.c.l.bf16 %v5947_v32  ;;  %v5922_v14 = vld [vmem:[%s8392_s9 + $0x28] sm:$0xff]   ;;  %v5896_v32 = vunpack.c.l.bf16 %v5943_v33 }
 0x522   : > { %4750 = vmatprep.subr.mxu0 %v4678_v53  ;;  %4821 = vmatprep.subr.mxu1 %v4680_v58  ;;  %v5880_v53 = vunpack.c.l.bf16 %v5939_v49  ;;  %v5845_v58 = vunpack.c.h.bf16 %v5930_v45  ;;  %v5812_v29 = vunpack.c.l.bf16 %v5922_v14 }
 0x523   : > { %4751 = vmatpush2.msra.mxu0 %v4677_v16  ;;  %4822 = vmatpush2.msra.mxu1 %v4679_v50  ;;  %v5909_v16 = vunpack.c.h.bf16 %v5946_v8  ;;  %v5813_v50 = vunpack.c.h.bf16 %v5922_v14  ;;  %v5925_v14 = vld [vmem:[%s8392_s9 + $0x40] sm:$0xff]  }
 0x524   : > { %4752 = vmatprep.subr.mxu0 %v4674_v0  ;;  %4823 = vmatprep.subr.mxu1 %v4676_v21  ;;  %v5945_v0 = vld [vmem:[%s8392_s9 + $0xe0] sm:$0xff]   ;;  %v5844_v21 = vunpack.c.l.bf16 %v5930_v45 }
 0x525   : > { %4753 = vmatpush2.msra.mxu0 %v4673_v22  ;;  %4824 = vmatpush2.msra.mxu1 %v4675_v56  ;;  %v5908_v22 = vunpack.c.l.bf16 %v5946_v8  ;;  %v5921_v56 = vld [vmem:[%s8392_s9 + $0x20] sm:$0xff]  }
 0x526   : > { %4754 = vmatprep.subr.mxu0 %v4670_v30  ;;  %4825 = vmatprep.subr.mxu1 %v4672_v12  ;;  %v5876_v30 = vunpack.c.l.bf16 %v5938_v15  ;;  %v5841_v12 = vunpack.c.h.bf16 %v5929_v48  ;;  %v5941_v15 = vld [vmem:[%s8392_s9 + $0xc0] sm:$0xff]  }
 0x527   : > { %4755 = vmatpush2.msra.mxu0 %v4669_v31  ;;  %4826 = vmatpush2.msra.mxu1 %v4671_v35  ;;  %v5905_v31 = vunpack.c.h.bf16 %v5945_v0  ;;  %v5809_v35 = vunpack.c.h.bf16 %v5921_v56 }
 0x528   : > { %4756 = vmatprep.subr.mxu0 %v4666_v47  ;;  %4827 = vmatprep.subr.mxu1 %v4668_v61  ;;  %v5904_v47 = vunpack.c.l.bf16 %v5945_v0  ;;  %v5808_v61 = vunpack.c.l.bf16 %v5921_v56 }
 0x529   : > { %4757 = vmatpush2.msra.mxu0 %v4665_v9  ;;  %4828 = vmatpush2.msra.mxu1 %v4667_v10  ;;  %v5872_v9 = vunpack.c.l.bf16 %v5937_v23  ;;  %v5928_v10 = vld [vmem:[%s8392_s9 + $0x58] sm:$0xff]  }
 0x52a   : > { %4758 = vmatprep.subr.mxu0 %v4662_v44  ;;  %4829 = vmatprep.subr.mxu1 %v4664_v39  ;;  %v5837_v37 = vunpack.c.h.bf16 %v5928_v10  ;;  %v5901_v44 = vunpack.c.h.bf16 %v5944_v43  ;;  %v5920_v39 = vld [vmem:[%s8392_s9 + $0x18] sm:$0xff]  }
 0x52b   : > { %4759 = vmatpush2.msra.mxu0 %v4661_v38  ;;  %4830 = vmatpush2.msra.mxu1 %v4663_v27  ;;  %v5936_v38 = vld [vmem:[%s8392_s9 + $0x98] sm:$0xff]   ;;  %v5805_v27 = vunpack.c.h.bf16 %v5920_v39 }
 0x52c   : > { %4760 = vmatprep.subr.mxu0 %v4658_v25  ;;  %4831 = vmatprep.subr.mxu1 %v4660_v40  ;;  %v5869_v25 = vunpack.c.h.bf16 %v5936_v38  ;;  %v5836_v40 = vunpack.c.l.bf16 %v5928_v10 }
 0x52d   : > { %4761 = vmatpush2.msra.mxu0 %v4657_v28  ;;  %4832 = vmatpush2.msra.mxu1 %v4659_v13  ;;  %v5900_v28 = vunpack.c.l.bf16 %v5944_v43  ;;  %v5804_v13 = vunpack.c.l.bf16 %v5920_v39 }
 0x52e   : > { %4763 = vmatmul.mubr.f32.vlgmr.msra.gmra.mxu0 %v4693_v42  ;;  %4834 = vmatmul.mubr.f32.vlgmr.msra.gmra.mxu1 %v4693_v42  ;;  %v5868_v42 = vunpack.c.l.bf16 %v5936_v38 }
 0x52f   : > { %5949 = vmatprep.subr.mxu0 %v5853_v52  ;;  %5984 = vmatprep.subr.mxu1 %v5917_v2  ;;  %v5897_v52 = vunpack.c.h.bf16 %v5943_v33  ;;  %v5919_v2 = vld [vmem:[%s8392_s9 + $0x10] sm:$0xff]  }
 0x530   : > { %5950 = vmatpush3.msra.mxu0 %v5821_v54  ;;  %5985 = vmatpush3.msra.mxu1 %v5885_v34  ;;  %v5935_v54 = vld [vmem:[%s8392_s9 + $0x90] sm:$0xff]   ;;  %v5801_v55 = vunpack.c.h.bf16 %v5919_v2  ;;  %v5800_v34 = vunpack.c.l.bf16 %v5919_v2 }
 0x531   : > { %5951 = vmatprep.subr.mxu0 %v5852_v3  ;;  %5986 = vmatprep.subr.mxu1 %v5916_v46  ;;  %v5865_v3 = vunpack.c.h.bf16 %v5935_v54  ;;  %v5864_v46 = vunpack.c.l.bf16 %v5935_v54 }
 0x532   : > { %5952 = vmatpush3.msra.mxu0 %v5820_v62  ;;  %5987 = vmatpush3.msra.mxu1 %v5884_v5  ;;  %v5926_v62 = vld [vmem:[%s8392_s9 + $0x48] sm:$0xff]  }
 0x533   : > { %5953 = vmatprep.subr.mxu0 %v5849_v6  ;;  %5988 = vmatprep.subr.mxu1 %v5913_v7  ;;  %v5942_v5 = vld [vmem:[%s8392_s9 + $0xc8] sm:$0xff]   ;;  %v5829_v24 = vunpack.c.h.bf16 %v5926_v62  ;;  %v5828_v45 = vunpack.c.l.bf16 %v5926_v62 }
 0x534   : > { %5954 = vmatpush3.msra.mxu0 %v5817_v57  ;;  %5989 = vmatpush3.msra.mxu1 %v5881_v59  ;;  %v5893_v49 = vunpack.c.h.bf16 %v5942_v5  ;;  %v5918_v6 = vld [vmem:[%s8392_s9 + $0x8] sm:$0xff]   ;;  %v5892_v8 = vunpack.c.l.bf16 %v5942_v5 }
 0x535   : > { %5955 = vmatprep.subr.mxu0 %v5848_v51  ;;  %5990 = vmatprep.subr.mxu1 %v5912_v11  ;;  %v5934_v7 = vld [vmem:[%s8392_s9 + $0x88] sm:$0xff]   ;;  %v5797_v57 = vunpack.c.h.bf16 %v5918_v6  ;;  %v5796_v51 = vunpack.c.l.bf16 %v5918_v6 }
 0x536   : > { %5956 = vmatpush3.msra.mxu0 %v5816_v1  ;;  %5991 = vmatpush3.msra.mxu1 %v5880_v53  ;;  %v5861_v59 = vunpack.c.h.bf16 %v5934_v7  ;;  %v5860_v11 = vunpack.c.l.bf16 %v5934_v7  ;;  %v5825_v1 = vunpack.c.h.bf16 %v5925_v14  ;;  %v5889_v53 = vunpack.c.h.bf16 %v5941_v15 }
 0x537   : > { %5957 = vmatprep.subr.mxu0 %v5845_v58  ;;  %5992 = vmatprep.subr.mxu1 %v5909_v16  ;;  %v5791_v58 = vld [vmem:[%s8392_s9] sm:$0xff]  }
 0x538   : > { %5958 = vmatpush3.msra.mxu0 %v5813_v50  ;;  %5993 = vmatpush3.msra.mxu1 %v5877_v17  ;;  %v5933_v16 = vld [vmem:[%s8392_s9 + $0x80] sm:$0xff]   ;;  %v5824_v50 = vunpack.c.l.bf16 %v5925_v14  ;;  %v5888_v17 = vunpack.c.l.bf16 %v5941_v15  ;;  %v5793_v48 = vunpack.c.h.bf16 %v5791_v58  ;;  %v5015_v15 = vsub.s32 3, %v6799_v19 }
 0x539   : > { %5959 = vmatprep.subr.mxu0 %v5844_v21  ;;  %5994 = vmatprep.subr.mxu1 %v5908_v22  ;;  %v5857_v0 = vunpack.c.h.bf16 %v5933_v16  ;;  %v5792_v21 = vunpack.c.l.bf16 %v5791_v58  ;;  %v5856_v22 = vunpack.c.l.bf16 %v5933_v16 }
 0x53a   : > { %5960 = vmatpush3.msra.mxu0 %v5812_v29  ;;  %5995 = vmatpush3.msra.mxu1 %v5876_v30 }
 0x53b   : > { %5961 = vmatprep.subr.mxu0 %v5841_v12  ;;  %5996 = vmatprep.subr.mxu1 %v5905_v31 }
 0x53c   : > { %5962 = vmatpush3.msra.mxu0 %v5809_v35  ;;  %5997 = vmatpush3.msra.mxu1 %v5873_v63  ;;  %v6127_v35 = vmov 1966171168  }
 0x53d   : > { %5963 = vmatprep.subr.mxu0 %v5840_v41  ;;  %5998 = vmatprep.subr.mxu1 %v5904_v47  ;;  %v3862_v63 = vunpack.c.l.s4 %v6127_v35 }
 0x53e   : > { %5964 = vmatpush3.msra.mxu0 %v5808_v61  ;;  %5999 = vmatpush3.msra.mxu1 %v5872_v9 }
 0x53f   : > { %5965 = vmatprep.subr.mxu0 %v5837_v37  ;;  %6000 = vmatprep.subr.mxu1 %v5901_v44  ;;  %v3863_v61 = vunpack.c.0.s8 %v3862_v63 }
 0x540   : > { %5966 = vmatpush3.msra.mxu0 %v5805_v27  ;;  %6001 = vmatpush3.msra.mxu1 %v5869_v25 }
 0x541   : > { %5967 = vmatprep.subr.mxu0 %v5836_v40  ;;  %6002 = vmatprep.subr.mxu1 %v5900_v28  ;;  %v3866_v43 = vsub.s32 %v3863_v61, %v6799_v19 }
 0x542   : > { %5968 = vmatpush3.msra.mxu0 %v5804_v13  ;;  %6003 = vmatpush3.msra.mxu1 %v5868_v42 }
 0x543   : > { %5969 = vmatprep.subr.mxu0 %v5833_v36  ;;  %6004 = vmatprep.subr.mxu1 %v5897_v52 }
 0x544   : > { %5970 = vmatpush3.msra.mxu0 %v5801_v55  ;;  %6005 = vmatpush3.msra.mxu1 %v5865_v3 }
 0x545   : > { %5971 = vmatprep.subr.mxu0 %v5832_v4  ;;  %6006 = vmatprep.subr.mxu1 %v5896_v32 }
 0x546   : > { %5972 = vmatpush3.msra.mxu0 %v5800_v34  ;;  %6007 = vmatpush3.msra.mxu1 %v5864_v46  ;;  %v3558_v34 = vld [vmem:[%s8391_s8] sm:$0xf] }
 0x547   : > { %5973 = vmatprep.subr.mxu0 %v5829_v24  ;;  %6008 = vmatprep.subr.mxu1 %v5893_v49 }
 0x548   : > { %5974 = vmatpush3.msra.mxu0 %v5797_v57  ;;  %6009 = vmatpush3.msra.mxu1 %v5861_v59 }
 0x549   : > { %5975 = vmatprep.subr.mxu0 %v5828_v45  ;;  %6010 = vmatprep.subr.mxu1 %v5892_v8 }
 0x54a   : > { %5976 = vmatpush3.msra.mxu0 %v5796_v51  ;;  %6011 = vmatpush3.msra.mxu1 %v5860_v11 }
 0x54b   : > { %5977 = vmatprep.subr.mxu0 %v5825_v1  ;;  %6012 = vmatprep.subr.mxu1 %v5889_v53  ;;  %v5011_v1 = vsub.s32 2, %v6799_v19  ;;  %v5162_v19 = vand.u32 127, %v1694_v18 }
 0x54c   : > { %5978 = vmatpush3.msra.mxu0 %v5793_v48  ;;  %6013 = vmatpush3.msra.mxu1 %v5857_v0 }
 0x54d   : > { %5979 = vmatprep.subr.mxu0 %v5824_v50  ;;  %6014 = vmatprep.subr.mxu1 %v5888_v17  ;;  %vm5163_vm9 = vcmp.lt.s32.totalorder %v5162_v19, 10 }
 0x54e   : > { %5980 = vmatpush3.msra.mxu0 %v5792_v21  ;;  %6015 = vmatpush3.msra.mxu1 %v5856_v22  ;;  %v4999_v21 = vld [vmem:[%s8393_s10] sm:$0x1] }
 0x553   : > { %v3779_v56 = vpop.f32.mrf.mxu0  ;;  %v3850_v23 = vpop.f32.mrf.mxu1 }
 0x555   : > { %v3781_v29 = vpop.f32.mrf.mxu0  ;;  %v3852_v30 = vpop.f32.mrf.mxu1 }
 0x556   : > { %v3859_v37 = vcombine.low %v3779_v56, %v3781_v29  ;;  %v3860_v44 = vcombine.low %v3850_v23, %v3852_v30 }
 0x558   : > { %v3867_v40 = vrot.slane %v3859_v37, %v3866_v43  ;;  %v3874_v28 = vrot.slane %v3860_v44, %v3866_v43 }
 0x55a   : > { %v3875_v36 = vcombine.low %v3867_v40, %v3874_v28 }
 0x55c   : > { %v3882_v4 = vrot.slane %v3875_v36, %v3866_v43 }
 0x55e   : > { %v3884_v6 = vadd.f32 %v3882_v4, %v3558_v34 }
 0x586   : > { %v4108_v12 = vpop.f32.mrf.mxu0  ;;  %v4179_v31 = vpop.f32.mrf.mxu1 }
 0x588   : > { %v4110_v41 = vpop.f32.mrf.mxu0  ;;  %v4181_v47 = vpop.f32.mrf.mxu1 }
 0x589   : > { %v4188_v27 = vcombine.low %v4108_v12, %v4110_v41  ;;  %v4189_v25 = vcombine.low %v4179_v31, %v4181_v47 }
 0x58b   : > { %v4196_v60 = vrot.slane %v4188_v27, %v3866_v43  ;;  %v4203_v33 = vrot.slane %v4189_v25, %v3866_v43 }
 0x58d   : > { %v4204_v54 = vcombine.low %v4196_v60, %v4203_v33 }
 0x58f   : > { %v4211_v5 = vrot.slane %v4204_v54, %v3866_v43 }
 0x591   : > { %v4213_v45 = vadd.f32 %v4211_v5, %v3884_v6 }
 0x5ba   : > { %v4436_v9 = vpop.f32.mrf.mxu0  ;;  %v4507_v10 = vpop.f32.mrf.mxu1 }
 0x5bc   : > { %v4438_v39 = vpop.f32.mrf.mxu0  ;;  %v4509_v38 = vpop.f32.mrf.mxu1 }
 0x5bd   : > { %v4516_v13 = vcombine.low %v4436_v9, %v4438_v39  ;;  %v4517_v42 = vcombine.low %v4507_v10, %v4509_v38 }
 0x5bf   : > { %v4524_v52 = vrot.slane %v4516_v13, %v3866_v43  ;;  %v4531_v2 = vrot.slane %v4517_v42, %v3866_v43 }
 0x5c1   : > { %v4532_v32 = vcombine.low %v4524_v52, %v4531_v2 }
 0x5c3   : > { %v4539_v7 = vrot.slane %v4532_v32, %v3866_v43 }
 0x5c5   : > { %v4541_v51 = vadd.f32 %v4539_v7, %v4213_v45 }
 0x5ee   : > { %v4764_v55 = vpop.f32.mrf.mxu0  ;;  %v4835_v3 = vpop.f32.mrf.mxu1 }
 0x5f0   : > { %v4766_v46 = vpop.f32.mrf.mxu0  ;;  %v4837_v62 = vpop.f32.mrf.mxu1 }
 0x5f1   : > { %v4844_v24 = vcombine.low %v4764_v55, %v4766_v46  ;;  %v4845_v49 = vcombine.low %v4835_v3, %v4837_v62 }
 0x5f3   : > { %v4852_v57 = vrot.slane %v4844_v24, %v3866_v43  ;;  %v4859_v59 = vrot.slane %v4845_v49, %v3866_v43 }
 0x5f5   : > { %v4860_v8 = vcombine.low %v4852_v57, %v4859_v59 }
 0x5f7   : > { %v4867_v11 = vrot.slane %v4860_v8, %v3866_v43 }
 0x5f9   : > { %v4869_v14 = vadd.f32 %v4867_v11, %v4541_v51 }
 0x5fb   : > { %v4870_v53 = vmax.f32 %v4869_v14, 0.0 }
 0x5fd   : > { %v5008_v58 = vrot.slane %v4870_v53, %v6808_v20  ;;  %v5016_v16 = vrot.slane %v4870_v53, %v5015_v15  ;;  %v5004_v50 = vrot.slane %v4870_v53, %v6802_v26  ;;  %v5012_v17 = vrot.slane %v4870_v53, %v5011_v1 }
 0x5ff   : > { %5085 = vmatprep.mubr.f32.mxu0 %v5008_v58  ;;  %5155 = vmatprep.mubr.f32.mxu1 %v5016_v16 }
 0x600   : > { %5086 = vmatmul.mubr.f32.vlgmr.msra.gmra.mxu0 %v5004_v50  ;;  %5156 = vmatmul.mubr.f32.vlgmr.msra.gmra.mxu1 %v5012_v17 }
 0x6c0   : > { %v5981_v48 = vpop.f32.mrf.mxu0  ;;  %v6016_v0 = vpop.f32.mrf.mxu1 }
 0x6c2   : > { %v5982_v22 = vpop.f32.mrf.mxu0  ;;  %v6017_v56 = vpop.f32.mrf.mxu1 }
 0x6c3   : > { %v5983_v23 = vadd.f32 %v5982_v22, %v5981_v48  ;;  %v6018_v29 = vadd.f32 %v6017_v56, %v6016_v0 }
 0x6c5   : > { %v5088_v20 = vadd.f32 %v5983_v23, %v4999_v21 }
 0x6c7   : > { %v5158_v26 = vadd.f32 %v6018_v29, %v5088_v20 }
 0x6c9   : > { %v5164_v30 = vsel %vm5163_vm9, %v5158_v26, -1e+30 }
 0x6ca   : > { %v5166_v12 = vsel %vm5165_vm10, %v5164_v30, -inf }
 0x6cb   : > { %5167 = vmax.xlane.f32.xlu0 %v5166_v12 }
 0x754   : > { %v5168_v31 = vpop.xlane.xlu0 %5167 }
 0x755   : > { %v5169_v35 = vsub.f32 %v5164_v30, %v5168_v31 }
 0x757   : > { %v5170_v63 = vmul.f32 1.442695, %v5169_v35 }
 0x759   : > { %6060 = vpow2.f32 %v5170_v63 }
 0x766   : > { %v6061_v41 = vpop.eup %6060 }
 0x767   : > { %v5172_v47 = vsel %vm5165_vm10, %v6061_v41, 0.0 }
 0x768   : > { %5173 = vadd.xlane.f32.xlu0 %v5172_v47 }
 0x7f1   : > { %v5174_v18 = vpop.xlane.xlu0 %5173 }
 0x7f2   : > { %6062 = vlog2.f32 %v5174_v18 }
 0x7ff   : > { %v6063_v61 = vpop.eup %6062 }
 0x800   : > { %v5176_v9 = vmul.f32 0.6931472, %v6063_v61 }
 0x802   : > { %v5177_v10 = vsub.f32 %v5169_v35, %v5176_v9 }
 0x804   : > { %5178 = vst [vmem:[%s378_s30] sm:$0x1] %v5177_v10 }
 0x805   : > { %6077 = shalt.err (!%p6074_p3)
}
 0x806   : > { %s6078_s1 = scalar_lea.hbm %s5190_s15, 16  ;;  %s6082_s30 = scalar_lea.hbm %s8394_s11, 32 }
 0x807   : > { %p6079_p4 = scmp.ne.s32.totalorder %s5190_s15, %s6078_s1  ;;  %p6083_p9 = scmp.lt.s32.totalorder %s5190_s15, %s8394_s11 }
 0x808   : > { %p6084_p10 = scmp.lt.s32.totalorder %s6082_s30, %s6078_s1 }
 0x809   : > { %p6080_p7 = pnand %p6079_p4, %p6227_p5 }
 0x80a   : > { %p6085_p11 = por %p6084_p10, %p6083_p9 }
 0x80b   : > { %p6081_p8 = pneg %p6080_p7 }
 0x80d   : > { %p6086_p12 = pnand %p6085_p11, %p6081_p8 }
 0x80f   : > { %6089 = shalt.err (!%p6086_p12)
}
 0x810   : > { %6019 = dma.vmem_to_hbm [thread:$0]  (%p6227_p5), %s5193_s12, 16, %s5190_s15, %s5180_s16  }
 0x811 PF: > { %p6025_p13 = scmp.ge.s32.totalorder %s6124_s20, 2  ;;  %s5204_s0 = sand.u32 1, %s6112_s17  }
 0x812   : > { %s5205_s22 = scalar_lea.sflag [#allocation3], %s5204_s0 }
 0x813   : > { %p6022_p0 = pnand %p6025_p13, %p6231_p6 }
 0x815   : > { %p6023_p1 = pneg %p6022_p0 }
 0x817   : > { %6107 = dma.done.wait (%p6023_p1), %s5205_s22, 16  }
 0x818   : > { %6109 = vsyncadd (%p6023_p1), %s5205_s22, 4294967280  ;;  %p21_p2 = scmp.ge.s32.totalorder %s6214_s23, 4   ;;  %s8414_s17 = smov %s6116_s18 }
 0x819   : > { %s8415_s18 = smov %s6120_s19  ;;  %s8416_s19 = smov %s6225_s26 }
 0x81a   : > { %s8417_s20 = smov %s6214_s23  ;;  %23 = sbr.rel (!%p21_p2) target bundleno = 6 (0x6), region = 122 }
 0x81f   :  { %5209 = vsyncpa [#allocation3], 1 }
 0x820   :  { %5211 = vsyncpa [#allocation3 + $0x1], 1 }

</bundles_post_ra>
